<compile_context>
chip_gen: v5e
topology: v5e:2x2
jax: 0.10.0
libtpu: 0.0.40
codegen_flags: <defaults>
</compile_context>

<pallas_src>
import jax
import jax.numpy as jnp
from jax import lax
from jax.experimental import pallas as pl
from jax.experimental.pallas import tpu as pltpu
import numpy as np

EPS = 1e-5
_LANE = 128                      # lane-dense channel padding target
_VMEM_LIMIT = 64 * 1024 * 1024   # explicit budget, fits v5e/v6e/v7x
# Set to jnp.bfloat16 on v6e/v7x for ~2x MXU throughput (accumulation stays f32);
# default f32 keeps strict parity with the fp32 PyTorch forward.
_COMPUTE_DTYPE = jnp.float32


def _cparams():
    return pltpu.CompilerParams(dimension_semantics=("parallel",),
                                vmem_limit_bytes=_VMEM_LIMIT)


def _round_up(n, m):
    return ((n + m - 1) // m) * m


def _pick_tile_m(m):
    """Largest convenient row tile that divides M exactly (keeps partial stats exact)
    and, when possible, yields >= 2 grid steps so pipelining/megacore have work."""
    for t in (512, 256, 128, 64, 32, 16, 8):
        if m % t == 0 and m // t >= 2:
            return t
    for t in (1024, 512, 256, 128, 64, 32, 16, 8):
        if m % t == 0:
            return t
    return m


def _pad_last(x, target):
    pad = target - x.shape[-1]
    if pad == 0:
        return x
    cfg = [(0, 0)] * (x.ndim - 1) + [(0, pad)]
    return jnp.pad(x, cfg)


def _pad_vec(v, target):
    return _pad_last(v.astype(jnp.float32), target)


def _pad_mat(w, kt, nt):
    w = w.astype(jnp.float32)
    return jnp.pad(w, ((0, kt - w.shape[0]), (0, nt - w.shape[1])))


def _pad_w2(w, kt, nt):
    w = w.astype(jnp.float32)
    return jnp.pad(w, ((0, 0), (0, 0), (0, kt - w.shape[2]), (0, nt - w.shape[3])))


# ----------------------------- Pallas kernels ------------------------------ #

def _bn_relu_mm_kernel(x_ref, s_ref, b_ref, w_ref, o_ref):
    # fused BN(precomputed scale/bias) + ReLU + 1x1 conv matmul
    act = jnp.maximum(x_ref[...] * s_ref[...] + b_ref[...], 0.0)
    o_ref[...] = jnp.dot(act.astype(_COMPUTE_DTYPE),
                         w_ref[...].astype(_COMPUTE_DTYPE),
                         preferred_element_type=jnp.float32)


def _bn_relu_mm_stats_kernel(x_ref, s_ref, b_ref, w_ref, o_ref, ps_ref, pss_ref):
    # same as above, but also emits per-tile column (sum, sum^2) so the next BN's
    # statistics never need an extra full-tensor HBM pass.
    act = jnp.maximum(x_ref[...] * s_ref[...] + b_ref[...], 0.0)
    y = jnp.dot(act.astype(_COMPUTE_DTYPE), w_ref[...].astype(_COMPUTE_DTYPE),
                preferred_element_type=jnp.float32)
    o_ref[...] = y
    ps_ref[...] = jnp.broadcast_to(jnp.sum(y, axis=0, keepdims=True), ps_ref.shape)
    pss_ref[...] = jnp.broadcast_to(jnp.sum(y * y, axis=0, keepdims=True), pss_ref.shape)


def _bn_relu_mm_add_kernel(x_ref, s_ref, b_ref, w_ref, r_ref, o_ref):
    # fused BN + ReLU + final 1x1 conv + residual add (output aliases the residual)
    act = jnp.maximum(x_ref[...] * s_ref[...] + b_ref[...], 0.0)
    o_ref[...] = jnp.dot(act.astype(_COMPUTE_DTYPE),
                         w_ref[...].astype(_COMPUTE_DTYPE),
                         preferred_element_type=jnp.float32) + r_ref[...]


def _bn_relu_kernel(x_ref, s_ref, b_ref, o_ref):
    # identity-shortcut path only (stride==1 and in_planes==expansion*planes)
    o_ref[...] = jnp.maximum(x_ref[...] * s_ref[...] + b_ref[...], 0.0)


def bn_relu_matmul(x2d, scale, bias, w, *, want_stats=False):
    """relu(x*scale+bias) @ w, M-tiled, optionally with partial BN stats outputs."""
    M, K = x2d.shape
    _, N = w.shape
    tm = _pick_tile_m(M)
    ntiles = M // tm
    in_specs = [pl.BlockSpec((tm, K), lambda i: (i, 0)),
                pl.BlockSpec((1, K), lambda i: (0, 0)),
                pl.BlockSpec((1, K), lambda i: (0, 0)),
                pl.BlockSpec((K, N), lambda i: (0, 0))]   # weight resident across steps
    if not want_stats:
        return pl.pallas_call(
            _bn_relu_mm_kernel,
            out_shape=jax.ShapeDtypeStruct((M, N), jnp.float32),
            grid=(ntiles,),
            in_specs=in_specs,
            out_specs=pl.BlockSpec((tm, N), lambda i: (i, 0)),
            compiler_params=_cparams(),
        )(x2d, scale, bias, w)

    y, ps, pss = pl.pallas_call(
        _bn_relu_mm_stats_kernel,
        out_shape=(jax.ShapeDtypeStruct((M, N), jnp.float32),
                   jax.ShapeDtypeStruct((8 * ntiles, N), jnp.float32),
                   jax.ShapeDtypeStruct((8 * ntiles, N), jnp.float32)),
        grid=(ntiles,),
        in_specs=in_specs,
        out_specs=(pl.BlockSpec((tm, N), lambda i: (i, 0)),
                   pl.BlockSpec((8, N), lambda i: (i, 0)),
                   pl.BlockSpec((8, N), lambda i: (i, 0))),
        compiler_params=_cparams(),
    )(x2d, scale, bias, w)
    # each tile broadcast its column sums to 8 identical rows -> divide by 8
    col_sum = jnp.sum(ps, axis=0) / 8.0
    col_sumsq = jnp.sum(pss, axis=0) / 8.0
    return y, col_sum, col_sumsq


def bn_relu_matmul_add(x2d, scale, bias, w, residual):
    """relu(x*scale+bias) @ w + residual; result written in place over `residual`."""
    M, K = x2d.shape
    _, N = w.shape
    tm = _pick_tile_m(M)
    return pl.pallas_call(
        _bn_relu_mm_add_kernel,
        out_shape=jax.ShapeDtypeStruct((M, N), jnp.float32),
        grid=(M // tm,),
        in_specs=[pl.BlockSpec((tm, K), lambda i: (i, 0)),
                  pl.BlockSpec((1, K), lambda i: (0, 0)),
                  pl.BlockSpec((1, K), lambda i: (0, 0)),
                  pl.BlockSpec((K, N), lambda i: (0, 0)),
                  pl.BlockSpec((tm, N), lambda i: (i, 0))],
        out_specs=pl.BlockSpec((tm, N), lambda i: (i, 0)),
        input_output_aliases={4: 0},      # accumulate into the shortcut buffer in place
        compiler_params=_cparams(),
    )(x2d, scale, bias, w, residual)


def bn_relu(x2d, scale, bias):
    M, C = x2d.shape
    tm = _pick_tile_m(M)
    return pl.pallas_call(
        _bn_relu_kernel,
        out_shape=jax.ShapeDtypeStruct((M, C), jnp.float32),
        grid=(M // tm,),
        in_specs=[pl.BlockSpec((tm, C), lambda i: (i, 0)),
                  pl.BlockSpec((1, C), lambda i: (0, 0)),
                  pl.BlockSpec((1, C), lambda i: (0, 0))],
        out_specs=pl.BlockSpec((tm, C), lambda i: (i, 0)),
        compiler_params=_cparams(),
    )(x2d, scale, bias)


def conv3x3_bn_relu(x_nhwc, scale, bias, w_hwio, stride):
    """Fused relu(bn(x)) -> 3x3 conv (padding=1, stride) as 9 tap matmuls per image.

    BN+ReLU and the spatial zero-padding happen inside the kernel (zeroed VMEM
    scratch), so the padded activation never round-trips through HBM. Also emits
    per-image partial (sum, sum^2) for the following BatchNorm.
    """
    N, H, W, C = x_nhwc.shape
    KH, KW, _, Co = w_hwio.shape
    Hp, Wp = H + 2, W + 2
    Ho = (Hp - KH) // stride + 1
    Wo = (Wp - KW) // stride + 1

    # TODO(synk): for large images on v7x (64 MiB VMEM) tile H with halo rows instead
    # of whole-image blocks; whole images are fine at these shapes.
    def kernel(x_ref, s_ref, b_ref, w_ref, o_ref, ps_ref, pss_ref, xpad_ref):
        # fused BN+ReLU written into the interior of a zeroed padded VMEM scratch
        xpad_ref[...] = jnp.zeros_like(xpad_ref)
        xpad_ref[1:H + 1, 1:W + 1, :] = jnp.maximum(
            x_ref[0] * s_ref[0] + b_ref[0], 0.0)
        xp = xpad_ref[...]
        wk = w_ref[...]
        acc = jnp.zeros((Ho * Wo, Co), jnp.float32)
        for ky in range(KH):
            for kx in range(KW):
                patch = xp[ky: ky + stride * (Ho - 1) + 1: stride,
                           kx: kx + stride * (Wo - 1) + 1: stride, :]
                acc = acc + jnp.dot(
                    patch.reshape(Ho * Wo, C).astype(_COMPUTE_DTYPE),
                    wk[ky, kx].astype(_COMPUTE_DTYPE),
                    preferred_element_type=jnp.float32)
        o_ref[0] = acc.reshape(Ho, Wo, Co)
        ps_ref[...] = jnp.broadcast_to(jnp.sum(acc, axis=0, keepdims=True), ps_ref.shape)
        pss_ref[...] = jnp.broadcast_to(jnp.sum(acc * acc, axis=0, keepdims=True),
                                        pss_ref.shape)

    out, ps, pss = pl.pallas_call(
        kernel,
        out_shape=(jax.ShapeDtypeStruct((N, Ho, Wo, Co), jnp.float32),
                   jax.ShapeDtypeStruct((8 * N, Co), jnp.float32),
                   jax.ShapeDtypeStruct((8 * N, Co), jnp.float32)),
        grid=(N,),
        in_specs=[pl.BlockSpec((1, H, W, C), lambda n: (n, 0, 0, 0)),
                  pl.BlockSpec((1, C), lambda n: (0, 0)),
                  pl.BlockSpec((1, C), lambda n: (0, 0)),
                  pl.BlockSpec((KH, KW, C, Co), lambda n: (0, 0, 0, 0))],
        out_specs=(pl.BlockSpec((1, Ho, Wo, Co), lambda n: (n, 0, 0, 0)),
                   pl.BlockSpec((8, Co), lambda n: (n, 0)),
                   pl.BlockSpec((8, Co), lambda n: (n, 0))),
        scratch_shapes=[pltpu.VMEM((Hp, Wp, C), jnp.float32)],
        compiler_params=_cparams(),
    )(x_nhwc, scale, bias, w_hwio)
    col_sum = jnp.sum(ps, axis=0) / 8.0
    col_sumsq = jnp.sum(pss, axis=0) / 8.0
    return out, col_sum, col_sumsq


# ------------------------------ forward wrapper ----------------------------- #

def preact_bottleneck(x_nchw, params, stride=1):
    """Pallas implementation of PreActBottleneck.forward (expansion = 4)."""
    N, Cin, H, W = x_nchw.shape
    planes = params["w1"].shape[1]
    out_ch = params["w3"].shape[1]                 # expansion * planes

    cin_p = _round_up(Cin, _LANE)
    pln_p = _round_up(planes, _LANE)
    out_p = _round_up(out_ch, _LANE)

    xh = jnp.transpose(x_nchw, (0, 2, 3, 1)).astype(jnp.float32)     # NHWC

    # bn1 statistics come straight from the input (tiny per-channel reduction in JAX)
    mean1 = jnp.mean(xh, axis=(0, 1, 2))
    var1 = jnp.mean(jnp.square(xh - mean1), axis=(0, 1, 2))
    sc1 = params["gamma1"].astype(jnp.float32) / jnp.sqrt(var1 + EPS)
    s1 = _pad_vec(sc1, cin_p).reshape(1, -1)
    b1 = _pad_vec(params["beta1"].astype(jnp.float32) - mean1 * sc1, cin_p).reshape(1, -1)

    # channel-pad once so every matmul is 128-lane dense / MXU native
    xh = _pad_last(xh, cin_p)
    w1 = _pad_mat(params["w1"], cin_p, pln_p)
    w2 = _pad_w2(params["w2"], pln_p, pln_p)
    w3 = _pad_mat(params["w3"], pln_p, out_p)
    g2 = _pad_vec(params["gamma2"], pln_p)
    be2 = _pad_vec(params["beta2"], pln_p)
    g3 = _pad_vec(params["gamma3"], pln_p)
    be3 = _pad_vec(params["beta3"], pln_p)

    x2d = xh.reshape(-1, cin_p)                    # (M, cin_p), M = N*H*W
    M = x2d.shape[0]

    # ---- conv1 (1x1) fused with bn1+relu; also emits bn2 partial stats ----
    out1_2d, sum2, sumsq2 = bn_relu_matmul(x2d, s1, b1, w1, want_stats=True)
    mean2 = sum2 / M
    var2 = jnp.maximum(sumsq2 / M - mean2 * mean2, 0.0)
    sc2 = g2 / jnp.sqrt(var2 + EPS)
    s2 = sc2.reshape(1, -1)
    b2 = (be2 - mean2 * sc2).reshape(1, -1)

    # ---- shortcut (bn1+relu fused into the projection matmul) ----
    has_proj = (stride != 1) or (Cin != out_ch)
    if has_proj:
        w_sc = _pad_mat(params["w_sc"], cin_p, out_p)
        if stride == 1:
            xsc2d = x2d
        else:
            # TODO(synk): fold the strided subsample into the BlockSpec index_map
            xsc2d = xh[:, ::stride, ::stride, :].reshape(-1, cin_p)
        shortcut2d = bn_relu_matmul(xsc2d, s1, b1, w_sc, want_stats=False)
    else:
        shortcut2d = bn_relu(x2d, s1, b1)          # identity shortcut (cin_p == out_p)

    # ---- conv2 (3x3, stride, pad=1) fused with bn2+relu; emits bn3 partial stats ----
    out1 = out1_2d.reshape(N, H, W, pln_p)
    out2, sum3, sumsq3 = conv3x3_bn_relu(out1, s2, b2, w2, stride)
    Ho, Wo = out2.shape[1], out2.shape[2]
    M2 = N * Ho * Wo
    mean3 = sum3 / M2
    var3 = jnp.maximum(sumsq3 / M2 - mean3 * mean3, 0.0)
    sc3 = g3 / jnp.sqrt(var3 + EPS)
    s3 = sc3.reshape(1, -1)
    b3 = (be3 - mean3 * sc3).reshape(1, -1)

    # ---- conv3 (1x1) fused with bn3+relu and the residual add (in-place) ----
    out3_2d = bn_relu_matmul_add(out2.reshape(-1, pln_p), s3, b3, w3, shortcut2d)

    out = out3_2d[:, :out_ch].reshape(N, Ho, Wo, out_ch)
    return jnp.transpose(out, (0, 3, 1, 2))        # back to NCHW


# ------------------------------ pure-JAX reference -------------------------- #

def _ref_forward(x_nchw, params, stride=1):
    def bn(x, gamma, beta):
        mean = jnp.mean(x, axis=(0, 2, 3), keepdims=True)
        var = jnp.mean((x - mean) ** 2, axis=(0, 2, 3), keepdims=True)
        return ((x - mean) / jnp.sqrt(var + EPS)) * gamma.reshape(1, -1, 1, 1) \
            + beta.reshape(1, -1, 1, 1)

    def conv(x, w_hwio, s, pad):
        return lax.conv_general_dilated(
            x, w_hwio, (s, s), pad, dimension_numbers=("NCHW", "HWIO", "NCHW"))

    Cin = x_nchw.shape[1]
    out_ch = params["w3"].shape[1]
    out = jax.nn.relu(bn(x_nchw, params["gamma1"], params["beta1"]))
    if stride != 1 or Cin != out_ch:
        sc = conv(out, params["w_sc"][None, None], stride, "VALID")
    else:
        sc = out
    o = conv(out, params["w1"][None, None], 1, "VALID")
    o = conv(jax.nn.relu(bn(o, params["gamma2"], params["beta2"])),
             params["w2"], stride, [(1, 1), (1, 1)])
    o = conv(jax.nn.relu(bn(o, params["gamma3"], params["beta3"])),
             params["w3"][None, None], 1, "VALID")
    return o + sc


# ----------------------------------- main ----------------------------------- #

if __name__ == "__main__":
    # small shapes consistent with the module: in_planes=4, planes=4, expansion=4
    N, in_planes, H, W = 2, 4, 16, 16
    planes, expansion, stride = 4, 4, 1
    out_ch = expansion * planes

    key = jax.random.PRNGKey(0)
    ks = jax.random.split(key, 12)

    params = {
        "gamma1": 1.0 + 0.1 * jax.random.normal(ks[0], (in_planes,), jnp.float32),
        "beta1": 0.1 * jax.random.normal(ks[1], (in_planes,), jnp.float32),
        "gamma2": 1.0 + 0.1 * jax.random.normal(ks[2], (planes,), jnp.float32),
        "beta2": 0.1 * jax.random.normal(ks[3], (planes,), jnp.float32),
        "gamma3": 1.0 + 0.1 * jax.random.normal(ks[4], (planes,), jnp.float32),
        "beta3": 0.1 * jax.random.normal(ks[5], (planes,), jnp.float32),
        "w1": 0.1 * jax.random.normal(ks[6], (in_planes, planes), jnp.float32),
        "w2": 0.1 * jax.random.normal(ks[7], (3, 3, planes, planes), jnp.float32),
        "w3": 0.1 * jax.random.normal(ks[8], (planes, out_ch), jnp.float32),
        "w_sc": 0.1 * jax.random.normal(ks[9], (in_planes, out_ch), jnp.float32),
    }

    x = jax.random.normal(ks[10], (N, in_planes, H, W), jnp.float32)

    fwd = jax.jit(preact_bottleneck, static_argnames=("stride",))
    out = jax.block_until_ready(fwd(x, params, stride=stride))

    ref = jax.block_until_ready(_ref_forward(x, params, stride=stride))
    np.testing.assert_allclose(np.asarray(out), np.asarray(ref), rtol=2e-4, atol=2e-4)

    assert out.shape == (N, out_ch, H // stride, W // stride)
    print("KERNEL_OK")
</pallas_src>

<mosaic_0001>
module attributes {stable_mosaic.version = 11 : i64} {
  func.func @_bn_relu_mm_stats_kernel(%arg0: i32, %arg1: memref<256x128xf32, #tpu.memory_space<vmem>>, %arg2: memref<1x128xf32, #tpu.memory_space<vmem>>, %arg3: memref<1x128xf32, #tpu.memory_space<vmem>>, %arg4: memref<128x128xf32, #tpu.memory_space<vmem>>, %arg5: memref<256x128xf32, #tpu.memory_space<vmem>>, %arg6: memref<8x128xf32, #tpu.memory_space<vmem>>, %arg7: memref<8x128xf32, #tpu.memory_space<vmem>>) attributes {dimension_semantics = [#tpu.dimension_semantics<parallel>], iteration_bounds = array<i64: 2>, scalar_prefetch = 0 : i64, scratch_operands = 0 : i64, tpu.core_type = #tpu.core_type<tc>, window_params = [{transform_indices = @transform_0, window_bounds = array<i64: 256, 128>}, {pipeline_mode = #tpu.pipeline_mode<synchronous>, transform_indices = @transform_1, window_bounds = array<i64: 1, 128>}, {pipeline_mode = #tpu.pipeline_mode<synchronous>, transform_indices = @transform_2, window_bounds = array<i64: 1, 128>}, {pipeline_mode = #tpu.pipeline_mode<synchronous>, transform_indices = @transform_3, window_bounds = array<i64: 128, 128>}, {transform_indices = @transform_4, window_bounds = array<i64: 256, 128>}, {transform_indices = @transform_5, window_bounds = array<i64: 8, 128>}, {transform_indices = @transform_6, window_bounds = array<i64: 8, 128>}]} {
    %c0 = arith.constant 0 : index
    %c0_0 = arith.constant 0 : index
    %0 = vector.load %arg1[%c0, %c0_0] : memref<256x128xf32, #tpu.memory_space<vmem>>, vector<256x128xf32>
    %c0_1 = arith.constant 0 : index
    %c0_2 = arith.constant 0 : index
    %1 = vector.load %arg2[%c0_1, %c0_2] : memref<1x128xf32, #tpu.memory_space<vmem>>, vector<1x128xf32>
    %2 = vector.broadcast %1 : vector<1x128xf32> to vector<256x128xf32>
    %3 = arith.mulf %0, %2 : vector<256x128xf32>
    %c0_3 = arith.constant 0 : index
    %c0_4 = arith.constant 0 : index
    %4 = vector.load %arg3[%c0_3, %c0_4] : memref<1x128xf32, #tpu.memory_space<vmem>>, vector<1x128xf32>
    %5 = vector.broadcast %4 : vector<1x128xf32> to vector<256x128xf32>
    %6 = arith.addf %3, %5 : vector<256x128xf32>
    %cst = arith.constant 0.000000e+00 : f32
    %7 = vector.broadcast %cst : f32 to vector<256x128xf32>
    %8 = arith.maximumf %6, %7 : vector<256x128xf32>
    %c0_5 = arith.constant 0 : index
    %c0_6 = arith.constant 0 : index
    %9 = vector.load %arg4[%c0_5, %c0_6] : memref<128x128xf32, #tpu.memory_space<vmem>>, vector<128x128xf32>
    %cst_7 = arith.constant dense<0.000000e+00> : vector<256x128xf32>
    %10 = tpu.matmul %8, %9, %cst_7 {dimension_numbers = #tpu.dot_dimension_numbers<[1], [0], [0], [1], [0, 0, 1, 1], [], []>} : vector<256x128xf32>, vector<128x128xf32>, vector<256x128xf32> -> vector<256x128xf32>
    %c0_8 = arith.constant 0 : index
    %c0_9 = arith.constant 0 : index
    %11 = vector.load %arg5[%c0_8, %c0_9] : memref<256x128xf32, #tpu.memory_space<vmem>>, vector<256x128xf32>
    tpu.vector_store %arg5[%c0_8, %c0_9], %10 {strides = array<i32>} : memref<256x128xf32, #tpu.memory_space<vmem>>, vector<256x128xf32>,
    %cst_10 = arith.constant dense<0.000000e+00> : vector<128xf32>
    %12 = vector.multi_reduction <add>, %10, %cst_10 [0] : vector<256x128xf32> to vector<128xf32>
    %13 = vector.shape_cast %12 : vector<128xf32> to vector<1x128xf32>
    %14 = vector.shape_cast %13 : vector<1x128xf32> to vector<1x128xf32>
    %15 = vector.broadcast %14 : vector<1x128xf32> to vector<8x128xf32>
    %c0_11 = arith.constant 0 : index
    %c0_12 = arith.constant 0 : index
    %16 = vector.load %arg6[%c0_11, %c0_12] : memref<8x128xf32, #tpu.memory_space<vmem>>, vector<8x128xf32>
    tpu.vector_store %arg6[%c0_11, %c0_12], %15 {strides = array<i32>} : memref<8x128xf32, #tpu.memory_space<vmem>>, vector<8x128xf32>,
    %17 = arith.mulf %10, %10 : vector<256x128xf32>
    %cst_13 = arith.constant dense<0.000000e+00> : vector<128xf32>
    %18 = vector.multi_reduction <add>, %17, %cst_13 [0] : vector<256x128xf32> to vector<128xf32>
    %19 = vector.shape_cast %18 : vector<128xf32> to vector<1x128xf32>
    %20 = vector.shape_cast %19 : vector<1x128xf32> to vector<1x128xf32>
    %21 = vector.broadcast %20 : vector<1x128xf32> to vector<8x128xf32>
    %c0_14 = arith.constant 0 : index
    %c0_15 = arith.constant 0 : index
    %22 = vector.load %arg7[%c0_14, %c0_15] : memref<8x128xf32, #tpu.memory_space<vmem>>, vector<8x128xf32>
    tpu.vector_store %arg7[%c0_14, %c0_15], %21 {strides = array<i32>} : memref<8x128xf32, #tpu.memory_space<vmem>>, vector<8x128xf32>,
    return
  }
  func.func @transform_0(%arg0: i32) -> (i32, i32) {
    %c0_i32 = arith.constant 0 : i32
    %c0_i32_0 = arith.constant 0 : i32
    return %arg0, %c0_i32 : i32, i32
  }
  func.func @transform_1(%arg0: i32) -> (i32, i32) {
    %c0_i32 = arith.constant 0 : i32
    %c0_i32_0 = arith.constant 0 : i32
    %c0_i32_1 = arith.constant 0 : i32
    return %c0_i32, %c0_i32_0 : i32, i32
  }
  func.func @transform_2(%arg0: i32) -> (i32, i32) {
    %c0_i32 = arith.constant 0 : i32
    %c0_i32_0 = arith.constant 0 : i32
    %c0_i32_1 = arith.constant 0 : i32
    return %c0_i32, %c0_i32_0 : i32, i32
  }
  func.func @transform_3(%arg0: i32) -> (i32, i32) {
    %c0_i32 = arith.constant 0 : i32
    %c0_i32_0 = arith.constant 0 : i32
    %c0_i32_1 = arith.constant 0 : i32
    return %c0_i32, %c0_i32_0 : i32, i32
  }
  func.func @transform_4(%arg0: i32) -> (i32, i32) {
    %c0_i32 = arith.constant 0 : i32
    %c0_i32_0 = arith.constant 0 : i32
    return %arg0, %c0_i32 : i32, i32
  }
  func.func @transform_5(%arg0: i32) -> (i32, i32) {
    %c0_i32 = arith.constant 0 : i32
    %c0_i32_0 = arith.constant 0 : i32
    return %arg0, %c0_i32 : i32, i32
  }
  func.func @transform_6(%arg0: i32) -> (i32, i32) {
    %c0_i32 = arith.constant 0 : i32
    %c0_i32_0 = arith.constant 0 : i32
    return %arg0, %c0_i32 : i32, i32
  }
}

module attributes {stable_mosaic.version = 11 : i64} {
  func.func @_bn_relu_mm_kernel(%arg0: i32, %arg1: memref<256x128xf32, #tpu.memory_space<vmem>>, %arg2: memref<1x128xf32, #tpu.memory_space<vmem>>, %arg3: memref<1x128xf32, #tpu.memory_space<vmem>>, %arg4: memref<128x128xf32, #tpu.memory_space<vmem>>, %arg5: memref<256x128xf32, #tpu.memory_space<vmem>>) attributes {dimension_semantics = [#tpu.dimension_semantics<parallel>], iteration_bounds = array<i64: 2>, scalar_prefetch = 0 : i64, scratch_operands = 0 : i64, tpu.core_type = #tpu.core_type<tc>, window_params = [{transform_indices = @transform_0, window_bounds = array<i64: 256, 128>}, {pipeline_mode = #tpu.pipeline_mode<synchronous>, transform_indices = @transform_1, window_bounds = array<i64: 1, 128>}, {pipeline_mode = #tpu.pipeline_mode<synchronous>, transform_indices = @transform_2, window_bounds = array<i64: 1, 128>}, {pipeline_mode = #tpu.pipeline_mode<synchronous>, transform_indices = @transform_3, window_bounds = array<i64: 128, 128>}, {transform_indices = @transform_4, window_bounds = array<i64: 256, 128>}]} {
    %c0 = arith.constant 0 : index
    %c0_0 = arith.constant 0 : index
    %0 = vector.load %arg1[%c0, %c0_0] : memref<256x128xf32, #tpu.memory_space<vmem>>, vector<256x128xf32>
    %c0_1 = arith.constant 0 : index
    %c0_2 = arith.constant 0 : index
    %1 = vector.load %arg2[%c0_1, %c0_2] : memref<1x128xf32, #tpu.memory_space<vmem>>, vector<1x128xf32>
    %2 = vector.broadcast %1 : vector<1x128xf32> to vector<256x128xf32>
    %3 = arith.mulf %0, %2 : vector<256x128xf32>
    %c0_3 = arith.constant 0 : index
    %c0_4 = arith.constant 0 : index
    %4 = vector.load %arg3[%c0_3, %c0_4] : memref<1x128xf32, #tpu.memory_space<vmem>>, vector<1x128xf32>
    %5 = vector.broadcast %4 : vector<1x128xf32> to vector<256x128xf32>
    %6 = arith.addf %3, %5 : vector<256x128xf32>
    %cst = arith.constant 0.000000e+00 : f32
    %7 = vector.broadcast %cst : f32 to vector<256x128xf32>
    %8 = arith.maximumf %6, %7 : vector<256x128xf32>
    %c0_5 = arith.constant 0 : index
    %c0_6 = arith.constant 0 : index
    %9 = vector.load %arg4[%c0_5, %c0_6] : memref<128x128xf32, #tpu.memory_space<vmem>>, vector<128x128xf32>
    %cst_7 = arith.constant dense<0.000000e+00> : vector<256x128xf32>
    %10 = tpu.matmul %8, %9, %cst_7 {dimension_numbers = #tpu.dot_dimension_numbers<[1], [0], [0], [1], [0, 0, 1, 1], [], []>} : vector<256x128xf32>, vector<128x128xf32>, vector<256x128xf32> -> vector<256x128xf32>
    %c0_8 = arith.constant 0 : index
    %c0_9 = arith.constant 0 : index
    %11 = vector.load %arg5[%c0_8, %c0_9] : memref<256x128xf32, #tpu.memory_space<vmem>>, vector<256x128xf32>
    tpu.vector_store %arg5[%c0_8, %c0_9], %10 {strides = array<i32>} : memref<256x128xf32, #tpu.memory_space<vmem>>, vector<256x128xf32>,
    return
  }
  func.func @transform_0(%arg0: i32) -> (i32, i32) {
    %c0_i32 = arith.constant 0 : i32
    %c0_i32_0 = arith.constant 0 : i32
    return %arg0, %c0_i32 : i32, i32
  }
  func.func @transform_1(%arg0: i32) -> (i32, i32) {
    %c0_i32 = arith.constant 0 : i32
    %c0_i32_0 = arith.constant 0 : i32
    %c0_i32_1 = arith.constant 0 : i32
    return %c0_i32, %c0_i32_0 : i32, i32
  }
  func.func @transform_2(%arg0: i32) -> (i32, i32) {
    %c0_i32 = arith.constant 0 : i32
    %c0_i32_0 = arith.constant 0 : i32
    %c0_i32_1 = arith.constant 0 : i32
    return %c0_i32, %c0_i32_0 : i32, i32
  }
  func.func @transform_3(%arg0: i32) -> (i32, i32) {
    %c0_i32 = arith.constant 0 : i32
    %c0_i32_0 = arith.constant 0 : i32
    %c0_i32_1 = arith.constant 0 : i32
    return %c0_i32, %c0_i32_0 : i32, i32
  }
  func.func @transform_4(%arg0: i32) -> (i32, i32) {
    %c0_i32 = arith.constant 0 : i32
    %c0_i32_0 = arith.constant 0 : i32
    return %arg0, %c0_i32 : i32, i32
  }
}

module attributes {stable_mosaic.version = 11 : i64} {
  func.func @kernel(%arg0: i32, %arg1: memref<1x16x16x128xf32, #tpu.memory_space<vmem>>, %arg2: memref<1x128xf32, #tpu.memory_space<vmem>>, %arg3: memref<1x128xf32, #tpu.memory_space<vmem>>, %arg4: memref<3x3x128x128xf32, #tpu.memory_space<vmem>>, %arg5: memref<1x16x16x128xf32, #tpu.memory_space<vmem>>, %arg6: memref<8x128xf32, #tpu.memory_space<vmem>>, %arg7: memref<8x128xf32, #tpu.memory_space<vmem>>, %arg8: memref<18x18x128xf32, #tpu.memory_space<vmem>>) attributes {dimension_semantics = [#tpu.dimension_semantics<parallel>], iteration_bounds = array<i64: 2>, scalar_prefetch = 0 : i64, scratch_operands = 1 : i64, tpu.core_type = #tpu.core_type<tc>, window_params = [{transform_indices = @transform_0, window_bounds = array<i64: 1, 16, 16, 128>}, {pipeline_mode = #tpu.pipeline_mode<synchronous>, transform_indices = @transform_1, window_bounds = array<i64: 1, 128>}, {pipeline_mode = #tpu.pipeline_mode<synchronous>, transform_indices = @transform_2, window_bounds = array<i64: 1, 128>}, {pipeline_mode = #tpu.pipeline_mode<synchronous>, transform_indices = @transform_3, window_bounds = array<i64: 3, 3, 128, 128>}, {transform_indices = @transform_4, window_bounds = array<i64: 1, 16, 16, 128>}, {transform_indices = @transform_5, window_bounds = array<i64: 8, 128>}, {transform_indices = @transform_6, window_bounds = array<i64: 8, 128>}]} {
    %cst = arith.constant 0.000000e+00 : f32
    %0 = vector.broadcast %cst : f32 to vector<18x18x128xf32>
    %c0 = arith.constant 0 : index
    %c0_0 = arith.constant 0 : index
    %c0_1 = arith.constant 0 : index
    %1 = vector.load %arg8[%c0, %c0_0, %c0_1] : memref<18x18x128xf32, #tpu.memory_space<vmem>>, vector<18x18x128xf32>
    tpu.vector_store %arg8[%c0, %c0_0, %c0_1], %0 {strides = array<i32>} : memref<18x18x128xf32, #tpu.memory_space<vmem>>, vector<18x18x128xf32>,
    %c0_2 = arith.constant 0 : index
    %c0_3 = arith.constant 0 : index
    %c0_4 = arith.constant 0 : index
    %c0_5 = arith.constant 0 : index
    %2 = vector.load %arg1[%c0_2, %c0_3, %c0_4, %c0_5] : memref<1x16x16x128xf32, #tpu.memory_space<vmem>>, vector<1x16x16x128xf32>
    %3 = vector.shape_cast %2 : vector<1x16x16x128xf32> to vector<16x16x128xf32>
    %c0_6 = arith.constant 0 : index
    %c0_7 = arith.constant 0 : index
    %4 = vector.load %arg2[%c0_6, %c0_7] : memref<1x128xf32, #tpu.memory_space<vmem>>, vector<1x128xf32>
    %5 = vector.shape_cast %4 : vector<1x128xf32> to vector<128xf32>
    %6 = vector.shape_cast %5 : vector<128xf32> to vector<1x1x128xf32>
    %7 = vector.broadcast %6 : vector<1x1x128xf32> to vector<16x16x128xf32>
    %8 = arith.mulf %3, %7 : vector<16x16x128xf32>
    %c0_8 = arith.constant 0 : index
    %c0_9 = arith.constant 0 : index
    %9 = vector.load %arg3[%c0_8, %c0_9] : memref<1x128xf32, #tpu.memory_space<vmem>>, vector<1x128xf32>
    %10 = vector.shape_cast %9 : vector<1x128xf32> to vector<128xf32>
    %11 = vector.shape_cast %10 : vector<128xf32> to vector<1x1x128xf32>
    %12 = vector.broadcast %11 : vector<1x1x128xf32> to vector<16x16x128xf32>
    %13 = arith.addf %8, %12 : vector<16x16x128xf32>
    %cst_10 = arith.constant 0.000000e+00 : f32
    %14 = vector.broadcast %cst_10 : f32 to vector<16x16x128xf32>
    %15 = arith.maximumf %13, %14 : vector<16x16x128xf32>
    %c1 = arith.constant 1 : index
    %c1_11 = arith.constant 1 : index
    %c0_12 = arith.constant 0 : index
    %16 = vector.load %arg8[%c1, %c1_11, %c0_12] : memref<18x18x128xf32, #tpu.memory_space<vmem>>, vector<16x16x128xf32>
    tpu.vector_store %arg8[%c1, %c1_11, %c0_12], %15 {strides = array<i32>} : memref<18x18x128xf32, #tpu.memory_space<vmem>>, vector<16x16x128xf32>,
    %c0_13 = arith.constant 0 : index
    %c0_14 = arith.constant 0 : index
    %c0_15 = arith.constant 0 : index
    %17 = vector.load %arg8[%c0_13, %c0_14, %c0_15] : memref<18x18x128xf32, #tpu.memory_space<vmem>>, vector<18x18x128xf32>
    %c0_16 = arith.constant 0 : index
    %c0_17 = arith.constant 0 : index
    %c0_18 = arith.constant 0 : index
    %c0_19 = arith.constant 0 : index
    %18 = vector.load %arg4[%c0_16, %c0_17, %c0_18, %c0_19] : memref<3x3x128x128xf32, #tpu.memory_space<vmem>>, vector<3x3x128x128xf32>
    %cst_20 = arith.constant 0.000000e+00 : f32
    %19 = vector.broadcast %cst_20 : f32 to vector<256x128xf32>
    %20 = vector.extract_strided_slice %17 {offsets = [0, 0, 0], sizes = [16, 16, 128], strides = [1, 1, 1]} : vector<18x18x128xf32> to vector<16x16x128xf32>
    %21 = vector.shape_cast %20 : vector<16x16x128xf32> to vector<256x128xf32>
    %22 = vector.extract_strided_slice %18 {offsets = [0, 0, 0, 0], sizes = [1, 1, 128, 128], strides = [1, 1, 1, 1]} : vector<3x3x128x128xf32> to vector<1x1x128x128xf32>
    %23 = vector.shape_cast %22 : vector<1x1x128x128xf32> to vector<128x128xf32>
    %cst_21 = arith.constant dense<0.000000e+00> : vector<256x128xf32>
    %24 = tpu.matmul %21, %23, %cst_21 {dimension_numbers = #tpu.dot_dimension_numbers<[1], [0], [0], [1], [0, 0, 1, 1], [], []>} : vector<256x128xf32>, vector<128x128xf32>, vector<256x128xf32> -> vector<256x128xf32>
    %25 = arith.addf %19, %24 : vector<256x128xf32>
    %26 = vector.extract_strided_slice %17 {offsets = [0, 1, 0], sizes = [16, 16, 128], strides = [1, 1, 1]} : vector<18x18x128xf32> to vector<16x16x128xf32>
    %27 = vector.shape_cast %26 : vector<16x16x128xf32> to vector<256x128xf32>
    %28 = vector.extract_strided_slice %18 {offsets = [0, 1, 0, 0], sizes = [1, 1, 128, 128], strides = [1, 1, 1, 1]} : vector<3x3x128x128xf32> to vector<1x1x128x128xf32>
    %29 = vector.shape_cast %28 : vector<1x1x128x128xf32> to vector<128x128xf32>
    %cst_22 = arith.constant dense<0.000000e+00> : vector<256x128xf32>
    %30 = tpu.matmul %27, %29, %cst_22 {dimension_numbers = #tpu.dot_dimension_numbers<[1], [0], [0], [1], [0, 0, 1, 1], [], []>} : vector<256x128xf32>, vector<128x128xf32>, vector<256x128xf32> -> vector<256x128xf32>
    %31 = arith.addf %25, %30 : vector<256x128xf32>
    %32 = vector.extract_strided_slice %17 {offsets = [0, 2, 0], sizes = [16, 16, 128], strides = [1, 1, 1]} : vector<18x18x128xf32> to vector<16x16x128xf32>
    %33 = vector.shape_cast %32 : vector<16x16x128xf32> to vector<256x128xf32>
    %34 = vector.extract_strided_slice %18 {offsets = [0, 2, 0, 0], sizes = [1, 1, 128, 128], strides = [1, 1, 1, 1]} : vector<3x3x128x128xf32> to vector<1x1x128x128xf32>
    %35 = vector.shape_cast %34 : vector<1x1x128x128xf32> to vector<128x128xf32>
    %cst_23 = arith.constant dense<0.000000e+00> : vector<256x128xf32>
    %36 = tpu.matmul %33, %35, %cst_23 {dimension_numbers = #tpu.dot_dimension_numbers<[1], [0], [0], [1], [0, 0, 1, 1], [], []>} : vector<256x128xf32>, vector<128x128xf32>, vector<256x128xf32> -> vector<256x128xf32>
    %37 = arith.addf %31, %36 : vector<256x128xf32>
    %38 = vector.extract_strided_slice %17 {offsets = [1, 0, 0], sizes = [16, 16, 128], strides = [1, 1, 1]} : vector<18x18x128xf32> to vector<16x16x128xf32>
    %39 = vector.shape_cast %38 : vector<16x16x128xf32> to vector<256x128xf32>
    %40 = vector.extract_strided_slice %18 {offsets = [1, 0, 0, 0], sizes = [1, 1, 128, 128], strides = [1, 1, 1, 1]} : vector<3x3x128x128xf32> to vector<1x1x128x128xf32>
    %41 = vector.shape_cast %40 : vector<1x1x128x128xf32> to vector<128x128xf32>
    %cst_24 = arith.constant dense<0.000000e+00> : vector<256x128xf32>
    %42 = tpu.matmul %39, %41, %cst_24 {dimension_numbers = #tpu.dot_dimension_numbers<[1], [0], [0], [1], [0, 0, 1, 1], [], []>} : vector<256x128xf32>, vector<128x128xf32>, vector<256x128xf32> -> vector<256x128xf32>
    %43 = arith.addf %37, %42 : vector<256x128xf32>
    %44 = vector.extract_strided_slice %17 {offsets = [1, 1, 0], sizes = [16, 16, 128], strides = [1, 1, 1]} : vector<18x18x128xf32> to vector<16x16x128xf32>
    %45 = vector.shape_cast %44 : vector<16x16x128xf32> to vector<256x128xf32>
    %46 = vector.extract_strided_slice %18 {offsets = [1, 1, 0, 0], sizes = [1, 1, 128, 128], strides = [1, 1, 1, 1]} : vector<3x3x128x128xf32> to vector<1x1x128x128xf32>
    %47 = vector.shape_cast %46 : vector<1x1x128x128xf32> to vector<128x128xf32>
    %cst_25 = arith.constant dense<0.000000e+00> : vector<256x128xf32>
    %48 = tpu.matmul %45, %47, %cst_25 {dimension_numbers = #tpu.dot_dimension_numbers<[1], [0], [0], [1], [0, 0, 1, 1], [], []>} : vector<256x128xf32>, vector<128x128xf32>, vector<256x128xf32> -> vector<256x128xf32>
    %49 = arith.addf %43, %48 : vector<256x128xf32>
    %50 = vector.extract_strided_slice %17 {offsets = [1, 2, 0], sizes = [16, 16, 128], strides = [1, 1, 1]} : vector<18x18x128xf32> to vector<16x16x128xf32>
    %51 = vector.shape_cast %50 : vector<16x16x128xf32> to vector<256x128xf32>
    %52 = vector.extract_strided_slice %18 {offsets = [1, 2, 0, 0], sizes = [1, 1, 128, 128], strides = [1, 1, 1, 1]} : vector<3x3x128x128xf32> to vector<1x1x128x128xf32>
    %53 = vector.shape_cast %52 : vector<1x1x128x128xf32> to vector<128x128xf32>
    %cst_26 = arith.constant dense<0.000000e+00> : vector<256x128xf32>
    %54 = tpu.matmul %51, %53, %cst_26 {dimension_numbers = #tpu.dot_dimension_numbers<[1], [0], [0], [1], [0, 0, 1, 1], [], []>} : vector<256x128xf32>, vector<128x128xf32>, vector<256x128xf32> -> vector<256x128xf32>
    %55 = arith.addf %49, %54 : vector<256x128xf32>
    %56 = vector.extract_strided_slice %17 {offsets = [2, 0, 0], sizes = [16, 16, 128], strides = [1, 1, 1]} : vector<18x18x128xf32> to vector<16x16x128xf32>
    %57 = vector.shape_cast %56 : vector<16x16x128xf32> to vector<256x128xf32>
    %58 = vector.extract_strided_slice %18 {offsets = [2, 0, 0, 0], sizes = [1, 1, 128, 128], strides = [1, 1, 1, 1]} : vector<3x3x128x128xf32> to vector<1x1x128x128xf32>
    %59 = vector.shape_cast %58 : vector<1x1x128x128xf32> to vector<128x128xf32>
    %cst_27 = arith.constant dense<0.000000e+00> : vector<256x128xf32>
    %60 = tpu.matmul %57, %59, %cst_27 {dimension_numbers = #tpu.dot_dimension_numbers<[1], [0], [0], [1], [0, 0, 1, 1], [], []>} : vector<256x128xf32>, vector<128x128xf32>, vector<256x128xf32> -> vector<256x128xf32>
    %61 = arith.addf %55, %60 : vector<256x128xf32>
    %62 = vector.extract_strided_slice %17 {offsets = [2, 1, 0], sizes = [16, 16, 128], strides = [1, 1, 1]} : vector<18x18x128xf32> to vector<16x16x128xf32>
    %63 = vector.shape_cast %62 : vector<16x16x128xf32> to vector<256x128xf32>
    %64 = vector.extract_strided_slice %18 {offsets = [2, 1, 0, 0], sizes = [1, 1, 128, 128], strides = [1, 1, 1, 1]} : vector<3x3x128x128xf32> to vector<1x1x128x128xf32>
    %65 = vector.shape_cast %64 : vector<1x1x128x128xf32> to vector<128x128xf32>
    %cst_28 = arith.constant dense<0.000000e+00> : vector<256x128xf32>
    %66 = tpu.matmul %63, %65, %cst_28 {dimension_numbers = #tpu.dot_dimension_numbers<[1], [0], [0], [1], [0, 0, 1, 1], [], []>} : vector<256x128xf32>, vector<128x128xf32>, vector<256x128xf32> -> vector<256x128xf32>
    %67 = arith.addf %61, %66 : vector<256x128xf32>
    %68 = vector.extract_strided_slice %17 {offsets = [2, 2, 0], sizes = [16, 16, 128], strides = [1, 1, 1]} : vector<18x18x128xf32> to vector<16x16x128xf32>
    %69 = vector.shape_cast %68 : vector<16x16x128xf32> to vector<256x128xf32>
    %70 = vector.extract_strided_slice %18 {offsets = [2, 2, 0, 0], sizes = [1, 1, 128, 128], strides = [1, 1, 1, 1]} : vector<3x3x128x128xf32> to vector<1x1x128x128xf32>
    %71 = vector.shape_cast %70 : vector<1x1x128x128xf32> to vector<128x128xf32>
    %cst_29 = arith.constant dense<0.000000e+00> : vector<256x128xf32>
    %72 = tpu.matmul %69, %71, %cst_29 {dimension_numbers = #tpu.dot_dimension_numbers<[1], [0], [0], [1], [0, 0, 1, 1], [], []>} : vector<256x128xf32>, vector<128x128xf32>, vector<256x128xf32> -> vector<256x128xf32>
    %73 = arith.addf %67, %72 : vector<256x128xf32>
    %74 = vector.shape_cast %73 : vector<256x128xf32> to vector<16x16x128xf32>
    %c0_30 = arith.constant 0 : index
    %c0_31 = arith.constant 0 : index
    %c0_32 = arith.constant 0 : index
    %c0_33 = arith.constant 0 : index
    %75 = vector.load %arg5[%c0_30, %c0_31, %c0_32, %c0_33] : memref<1x16x16x128xf32, #tpu.memory_space<vmem>>, vector<1x16x16x128xf32>
    %76 = vector.shape_cast %75 : vector<1x16x16x128xf32> to vector<16x16x128xf32>
    %77 = vector.shape_cast %74 : vector<16x16x128xf32> to vector<1x16x16x128xf32>
    tpu.vector_store %arg5[%c0_30, %c0_31, %c0_32, %c0_33], %77 {strides = array<i32>} : memref<1x16x16x128xf32, #tpu.memory_space<vmem>>, vector<1x16x16x128xf32>,
    %cst_34 = arith.constant dense<0.000000e+00> : vector<128xf32>
    %78 = vector.multi_reduction <add>, %73, %cst_34 [0] : vector<256x128xf32> to vector<128xf32>
    %79 = vector.shape_cast %78 : vector<128xf32> to vector<1x128xf32>
    %80 = vector.shape_cast %79 : vector<1x128xf32> to vector<1x128xf32>
    %81 = vector.broadcast %80 : vector<1x128xf32> to vector<8x128xf32>
    %c0_35 = arith.constant 0 : index
    %c0_36 = arith.constant 0 : index
    %82 = vector.load %arg6[%c0_35, %c0_36] : memref<8x128xf32, #tpu.memory_space<vmem>>, vector<8x128xf32>
    tpu.vector_store %arg6[%c0_35, %c0_36], %81 {strides = array<i32>} : memref<8x128xf32, #tpu.memory_space<vmem>>, vector<8x128xf32>,
    %83 = arith.mulf %73, %73 : vector<256x128xf32>
    %cst_37 = arith.constant dense<0.000000e+00> : vector<128xf32>
    %84 = vector.multi_reduction <add>, %83, %cst_37 [0] : vector<256x128xf32> to vector<128xf32>
    %85 = vector.shape_cast %84 : vector<128xf32> to vector<1x128xf32>
    %86 = vector.shape_cast %85 : vector<1x128xf32> to vector<1x128xf32>
    %87 = vector.broadcast %86 : vector<1x128xf32> to vector<8x128xf32>
    %c0_38 = arith.constant 0 : index
    %c0_39 = arith.constant 0 : index
    %88 = vector.load %arg7[%c0_38, %c0_39] : memref<8x128xf32, #tpu.memory_space<vmem>>, vector<8x128xf32>
    tpu.vector_store %arg7[%c0_38, %c0_39], %87 {strides = array<i32>} : memref<8x128xf32, #tpu.memory_space<vmem>>, vector<8x128xf32>,
    return
  }
  func.func @transform_0(%arg0: i32) -> (i32, i32, i32, i32) {
    %c0_i32 = arith.constant 0 : i32
    %c0_i32_0 = arith.constant 0 : i32
    %c0_i32_1 = arith.constant 0 : i32
    %c0_i32_2 = arith.constant 0 : i32
    return %arg0, %c0_i32, %c0_i32_0, %c0_i32_1 : i32, i32, i32, i32
  }
  func.func @transform_1(%arg0: i32) -> (i32, i32) {
    %c0_i32 = arith.constant 0 : i32
    %c0_i32_0 = arith.constant 0 : i32
    %c0_i32_1 = arith.constant 0 : i32
    return %c0_i32, %c0_i32_0 : i32, i32
  }
  func.func @transform_2(%arg0: i32) -> (i32, i32) {
    %c0_i32 = arith.constant 0 : i32
    %c0_i32_0 = arith.constant 0 : i32
    %c0_i32_1 = arith.constant 0 : i32
    return %c0_i32, %c0_i32_0 : i32, i32
  }
  func.func @transform_3(%arg0: i32) -> (i32, i32, i32, i32) {
    %c0_i32 = arith.constant 0 : i32
    %c0_i32_0 = arith.constant 0 : i32
    %c0_i32_1 = arith.constant 0 : i32
    %c0_i32_2 = arith.constant 0 : i32
    %c0_i32_3 = arith.constant 0 : i32
    return %c0_i32, %c0_i32_0, %c0_i32_1, %c0_i32_2 : i32, i32, i32, i32
  }
  func.func @transform_4(%arg0: i32) -> (i32, i32, i32, i32) {
    %c0_i32 = arith.constant 0 : i32
    %c0_i32_0 = arith.constant 0 : i32
    %c0_i32_1 = arith.constant 0 : i32
    %c0_i32_2 = arith.constant 0 : i32
    return %arg0, %c0_i32, %c0_i32_0, %c0_i32_1 : i32, i32, i32, i32
  }
  func.func @transform_5(%arg0: i32) -> (i32, i32) {
    %c0_i32 = arith.constant 0 : i32
    %c0_i32_0 = arith.constant 0 : i32
    return %arg0, %c0_i32 : i32, i32
  }
  func.func @transform_6(%arg0: i32) -> (i32, i32) {
    %c0_i32 = arith.constant 0 : i32
    %c0_i32_0 = arith.constant 0 : i32
    return %arg0, %c0_i32 : i32, i32
  }
}

module attributes {stable_mosaic.version = 11 : i64} {
  func.func @_bn_relu_mm_add_kernel(%arg0: i32, %arg1: memref<256x128xf32, #tpu.memory_space<vmem>>, %arg2: memref<1x128xf32, #tpu.memory_space<vmem>>, %arg3: memref<1x128xf32, #tpu.memory_space<vmem>>, %arg4: memref<128x128xf32, #tpu.memory_space<vmem>>, %arg5: memref<256x128xf32, #tpu.memory_space<vmem>>, %arg6: memref<256x128xf32, #tpu.memory_space<vmem>>) attributes {dimension_semantics = [#tpu.dimension_semantics<parallel>], iteration_bounds = array<i64: 2>, scalar_prefetch = 0 : i64, scratch_operands = 0 : i64, tpu.core_type = #tpu.core_type<tc>, window_params = [{transform_indices = @transform_0, window_bounds = array<i64: 256, 128>}, {pipeline_mode = #tpu.pipeline_mode<synchronous>, transform_indices = @transform_1, window_bounds = array<i64: 1, 128>}, {pipeline_mode = #tpu.pipeline_mode<synchronous>, transform_indices = @transform_2, window_bounds = array<i64: 1, 128>}, {pipeline_mode = #tpu.pipeline_mode<synchronous>, transform_indices = @transform_3, window_bounds = array<i64: 128, 128>}, {transform_indices = @transform_4, window_bounds = array<i64: 256, 128>}, {transform_indices = @transform_5, window_bounds = array<i64: 256, 128>}]} {
    %c0 = arith.constant 0 : index
    %c0_0 = arith.constant 0 : index
    %0 = vector.load %arg1[%c0, %c0_0] : memref<256x128xf32, #tpu.memory_space<vmem>>, vector<256x128xf32>
    %c0_1 = arith.constant 0 : index
    %c0_2 = arith.constant 0 : index
    %1 = vector.load %arg2[%c0_1, %c0_2] : memref<1x128xf32, #tpu.memory_space<vmem>>, vector<1x128xf32>
    %2 = vector.broadcast %1 : vector<1x128xf32> to vector<256x128xf32>
    %3 = arith.mulf %0, %2 : vector<256x128xf32>
    %c0_3 = arith.constant 0 : index
    %c0_4 = arith.constant 0 : index
    %4 = vector.load %arg3[%c0_3, %c0_4] : memref<1x128xf32, #tpu.memory_space<vmem>>, vector<1x128xf32>
    %5 = vector.broadcast %4 : vector<1x128xf32> to vector<256x128xf32>
    %6 = arith.addf %3, %5 : vector<256x128xf32>
    %cst = arith.constant 0.000000e+00 : f32
    %7 = vector.broadcast %cst : f32 to vector<256x128xf32>
    %8 = arith.maximumf %6, %7 : vector<256x128xf32>
    %c0_5 = arith.constant 0 : index
    %c0_6 = arith.constant 0 : index
    %9 = vector.load %arg4[%c0_5, %c0_6] : memref<128x128xf32, #tpu.memory_space<vmem>>, vector<128x128xf32>
    %cst_7 = arith.constant dense<0.000000e+00> : vector<256x128xf32>
    %10 = tpu.matmul %8, %9, %cst_7 {dimension_numbers = #tpu.dot_dimension_numbers<[1], [0], [0], [1], [0, 0, 1, 1], [], []>} : vector<256x128xf32>, vector<128x128xf32>, vector<256x128xf32> -> vector<256x128xf32>
    %c0_8 = arith.constant 0 : index
    %c0_9 = arith.constant 0 : index
    %11 = vector.load %arg5[%c0_8, %c0_9] : memref<256x128xf32, #tpu.memory_space<vmem>>, vector<256x128xf32>
    %12 = arith.addf %10, %11 : vector<256x128xf32>
    %c0_10 = arith.constant 0 : index
    %c0_11 = arith.constant 0 : index
    %13 = vector.load %arg6[%c0_10, %c0_11] : memref<256x128xf32, #tpu.memory_space<vmem>>, vector<256x128xf32>
    tpu.vector_store %arg6[%c0_10, %c0_11], %12 {strides = array<i32>} : memref<256x128xf32, #tpu.memory_space<vmem>>, vector<256x128xf32>,
    return
  }
  func.func @transform_0(%arg0: i32) -> (i32, i32) {
    %c0_i32 = arith.constant 0 : i32
    %c0_i32_0 = arith.constant 0 : i32
    return %arg0, %c0_i32 : i32, i32
  }
  func.func @transform_1(%arg0: i32) -> (i32, i32) {
    %c0_i32 = arith.constant 0 : i32
    %c0_i32_0 = arith.constant 0 : i32
    %c0_i32_1 = arith.constant 0 : i32
    return %c0_i32, %c0_i32_0 : i32, i32
  }
  func.func @transform_2(%arg0: i32) -> (i32, i32) {
    %c0_i32 = arith.constant 0 : i32
    %c0_i32_0 = arith.constant 0 : i32
    %c0_i32_1 = arith.constant 0 : i32
    return %c0_i32, %c0_i32_0 : i32, i32
  }
  func.func @transform_3(%arg0: i32) -> (i32, i32) {
    %c0_i32 = arith.constant 0 : i32
    %c0_i32_0 = arith.constant 0 : i32
    %c0_i32_1 = arith.constant 0 : i32
    return %c0_i32, %c0_i32_0 : i32, i32
  }
  func.func @transform_4(%arg0: i32) -> (i32, i32) {
    %c0_i32 = arith.constant 0 : i32
    %c0_i32_0 = arith.constant 0 : i32
    return %arg0, %c0_i32 : i32, i32
  }
  func.func @transform_5(%arg0: i32) -> (i32, i32) {
    %c0_i32 = arith.constant 0 : i32
    %c0_i32_0 = arith.constant 0 : i32
    return %arg0, %c0_i32 : i32, i32
  }
}

</mosaic_0001>

<bundles_post_ra>
// kernel: preact_bottleneck.4
= control target key start
LH: loop header
LB: loop body
LE: loop exit
PB: predicated region body
PF: predicated region fallthrough
CT: control target
= control target key end

     0   :  { %s913_s21 = smov 0   ;;  %s1246_s0 = inlined_call_operand.vmem [shape: f32[512,128], index: 0, kind: input, shape index: {}]   ;;  %s1247_s1 = inlined_call_operand.vmem [shape: f32[1,128], index: 1, kind: input, shape index: {}]   ;;  %s1248_s2 = inlined_call_operand.vmem [shape: f32[1,128], index: 2, kind: input, shape index: {}]   ;;  %s1249_s3 = inlined_call_operand.vmem [shape: f32[128,128], index: 3, kind: input, shape index: {}]   ;;  %s1250_s4 = inlined_call_operand.vmem [shape: f32[512,128], index: 4, kind: output, shape index: {0}]   ;;  %s1251_s5 = inlined_call_operand.vmem [shape: f32[16,128], index: 5, kind: output, shape index: {1}]   ;;  %s1252_s6 = inlined_call_operand.vmem [shape: f32[16,128], index: 6, kind: output, shape index: {2}]  }
   0x1 LB: > { %s919_s22 = sadd.s32 4294967295, %s876_s21   ;;  %p803_p0 = scmp.ge.s32.totalorder %s876_s21, 1  ;;  %s876_s21 = sphi %s913_s21, %s17_s21  }
   0x2   : > { %p218_p1 = scmp.lt.s32.totalorder %s876_s21, 3 }
   0x4   : > { %p219_p2 = pnand %p803_p0, %p218_p1 }
   0x5   : > { %s804_s27 = sshll.u32 (!%p219_p2), %s919_s22, 5  ;;  %p268_p4 = scmp.lt.s32.totalorder (!%p219_p2), %s919_s22, 1 }
   0x6   : > { %222 = sbr.rel (%p219_p2) target bundleno = 290 (0x122), region = 36  ;;  %p257_p3 = scmp.lt.s32.totalorder (!%p219_p2), %s804_s27, 63 }
   0xb   : > { %v427_v0 = vld [vmem:[%s1249_s3 + $0x78] sm:$0xff]  ;;  %v426_v1 = vld [vmem:[%s1249_s3 + $0x70] sm:$0xff]  ;;  %v425_v2 = vld [vmem:[%s1249_s3 + $0x68] sm:$0xff]  ;;  %s1254_s27 = smov (!%p257_p3, %s804_s27), 63  ;;  %s1256_s22 = smov (!%p268_p4, %s919_s22), 1 }
   0xc   : > { %428 = vmatpush.msra.mxu0 %v427_v0  ;;  %812 = vmatpush.msra.mxu1 %v427_v0  ;;  %v424_v3 = vld [vmem:[%s1249_s3 + $0x60] sm:$0xff]  ;;  %v423_v4 = vld [vmem:[%s1249_s3 + $0x58] sm:$0xff]  ;;  %v422_v5 = vld [vmem:[%s1249_s3 + $0x50] sm:$0xff]  ;;  %s805_s14 = sshll.u32 %s1254_s27, 3  ;;  %s808_s27 = sshll.u32 %s1256_s22, 3 }
   0xd   : > { %813 = vmatpush.msra.mxu2 %v427_v0  ;;  %814 = vmatpush.msra.mxu3 %v427_v0  ;;  %v421_v6 = vld [vmem:[%s1249_s3 + $0x48] sm:$0xff]  ;;  %v420_v7 = vld [vmem:[%s1249_s3 + $0x40] sm:$0xff]  ;;  %v419_v8 = vld [vmem:[%s1249_s3 + $0x38] sm:$0xff]  ;;  %s959_s23 = scalar_lea.vmem %s1246_s0, %s805_s14  ;;  %s1093_s24 = scalar_lea.vmem %s1250_s4, %s805_s14 }
   0xe   : > { %429 = vmatpush.msra.mxu0 %v426_v1  ;;  %815 = vmatpush.msra.mxu1 %v426_v1  ;;  %v418_v9 = vld [vmem:[%s1249_s3 + $0x30] sm:$0xff]  ;;  %v967_v10 = vld [vmem:[%s1247_s1] ss:$0 sm:$0xff]  ;;  %v417_v13 = vld [vmem:[%s1249_s3 + $0x28] sm:$0xff]  ;;  %s271_s26 = scalar_lea.vmem %s1251_s5, %s808_s27  ;;  %s275_s30 = scalar_lea.vmem %s1252_s6, %s808_s27 }
   0xf   : > { %816 = vmatpush.msra.mxu2 %v426_v1  ;;  %817 = vmatpush.msra.mxu3 %v426_v1  ;;  %v276_v11 = vld [vmem:[%s959_s23] sm:$0xff]  ;;  %v415_v19 = vld [vmem:[%s1249_s3 + $0x18] sm:$0xff]  ;;  %v414_v21 = vld [vmem:[%s1249_s3 + $0x10] sm:$0xff] }
  0x10   : > { %430 = vmatpush.msra.mxu0 %v425_v2  ;;  %818 = vmatpush.msra.mxu1 %v425_v2  ;;  %v284_v12 = vld [vmem:[%s959_s23 + $0x40] sm:$0xff]  ;;  %v312_v16 = vmul.f32 %v967_v10, %v276_v11  ;;  %v277_v24 = vld [vmem:[%s959_s23 + $0x8] sm:$0xff]  ;;  %v278_v37 = vld [vmem:[%s959_s23 + $0x10] sm:$0xff] }
  0x11   : > { %819 = vmatpush.msra.mxu2 %v425_v2  ;;  %820 = vmatpush.msra.mxu3 %v425_v2  ;;  %v292_v14 = vld [vmem:[%s959_s23 + $0x80] sm:$0xff]  ;;  %v320_v18 = vmul.f32 %v967_v10, %v284_v12  ;;  %v285_v25 = vld [vmem:[%s959_s23 + $0x48] sm:$0xff]  ;;  %v313_v31 = vmul.f32 %v967_v10, %v277_v24  ;;  %v286_v39 = vld [vmem:[%s959_s23 + $0x50] sm:$0xff]  ;;  %v314_v41 = vmul.f32 %v967_v10, %v278_v37 }
  0x12   : > { %431 = vmatpush.msra.mxu0 %v424_v3  ;;  %821 = vmatpush.msra.mxu1 %v424_v3  ;;  %v416_v15 = vld [vmem:[%s1249_s3 + $0x20] sm:$0xff]  ;;  %v328_v20 = vmul.f32 %v967_v10, %v292_v14  ;;  %v413_v26 = vld [vmem:[%s1249_s3 + $0x8] sm:$0xff]  ;;  %v321_v33 = vmul.f32 %v967_v10, %v285_v25  ;;  %v294_v42 = vld [vmem:[%s959_s23 + $0x90] sm:$0xff]  ;;  %v322_v46 = vmul.f32 %v967_v10, %v286_v39 }
  0x13   : > { %822 = vmatpush.msra.mxu2 %v424_v3  ;;  %823 = vmatpush.msra.mxu3 %v424_v3  ;;  %v982_v17 = vld [vmem:[%s1248_s2] ss:$0 sm:$0xff]  ;;  %v293_v28 = vld [vmem:[%s959_s23 + $0x88] sm:$0xff]  ;;  %v330_v49 = vmul.f32 %v967_v10, %v294_v42  ;;  %v279_v52 = vld [vmem:[%s959_s23 + $0x18] sm:$0xff] }
  0x14   : > { %432 = vmatpush.msra.mxu0 %v423_v4  ;;  %824 = vmatpush.msra.mxu1 %v423_v4  ;;  %v348_v22 = vadd.f32 %v982_v17, %v312_v16  ;;  %v356_v23 = vadd.f32 %v982_v17, %v320_v18  ;;  %v364_v27 = vadd.f32 %v982_v17, %v328_v20  ;;  %v412_v29 = vld [vmem:[%s1249_s3] sm:$0xff]  ;;  %v287_v55 = vld [vmem:[%s959_s23 + $0x58] sm:$0xff]  ;;  %v301_v59 = vld [vmem:[%s959_s23 + $0xc8] sm:$0xff] }
  0x15   : > { %825 = vmatpush.msra.mxu2 %v423_v4  ;;  %826 = vmatpush.msra.mxu3 %v423_v4  ;;  %v329_v35 = vmul.f32 %v967_v10, %v293_v28  ;;  %v349_v36 = vadd.f32 %v982_v17, %v313_v31  ;;  %v357_v38 = vadd.f32 %v982_v17, %v321_v33  ;;  %v300_v43 = vld [vmem:[%s959_s23 + $0xc0] sm:$0xff]  ;;  %v295_v58 = vld [vmem:[%s959_s23 + $0x98] sm:$0xff]  ;;  %v302_v12 = vld [vmem:[%s959_s23 + $0xd0] sm:$0xff] }
  0x16   : > { %433 = vmatpush.msra.mxu0 %v422_v5  ;;  %827 = vmatpush.msra.mxu1 %v422_v5  ;;  %v380_v30 = vmax.f32 %v348_v22, 0.0  ;;  %v388_v32 = vmax.f32 %v356_v23, 0.0  ;;  %v396_v34 = vmax.f32 %v364_v27, 0.0  ;;  %v336_v47 = vmul.f32 %v967_v10, %v300_v43  ;;  %v296_v11 = vld [vmem:[%s959_s23 + $0xa0] sm:$0xff]  ;;  %v303_v24 = vld [vmem:[%s959_s23 + $0xd8] sm:$0xff]  ;;  %v281_v25 = vld [vmem:[%s959_s23 + $0x28] sm:$0xff] }
  0x17   : > { %828 = vmatpush.msra.mxu2 %v422_v5  ;;  %829 = vmatpush.msra.mxu3 %v422_v5  ;;  %v365_v40 = vadd.f32 %v982_v17, %v329_v35  ;;  %v381_v44 = vmax.f32 %v349_v36, 0.0  ;;  %v389_v45 = vmax.f32 %v357_v38, 0.0  ;;  %v350_v51 = vadd.f32 %v982_v17, %v314_v41  ;;  %v304_v31 = vld [vmem:[%s959_s23 + $0xe0] sm:$0xff]  ;;  %v307_v36 = vld [vmem:[%s959_s23 + $0xf8] sm:$0xff] }
  0x18   : > { %434 = vmatpush.msra.mxu0 %v421_v6  ;;  %830 = vmatpush.msra.mxu1 %v421_v6  ;;  %v372_v50 = vadd.f32 %v982_v17, %v336_v47  ;;  %v358_v53 = vadd.f32 %v982_v17, %v322_v46  ;;  %v366_v56 = vadd.f32 %v982_v17, %v330_v49  ;;  %v298_v49 = vld [vmem:[%s959_s23 + $0xb0] sm:$0xff] }
  0x19   : > { %831 = vmatpush.msra.mxu2 %v421_v6  ;;  %832 = vmatpush.msra.mxu3 %v421_v6  ;;  %v397_v48 = vmax.f32 %v365_v40, 0.0  ;;  %v315_v57 = vmul.f32 %v967_v10, %v279_v52  ;;  %v382_v60 = vmax.f32 %v350_v51, 0.0  ;;  %v323_v62 = vmul.f32 %v967_v10, %v287_v55  ;;  %v280_v6 = vld [vmem:[%s959_s23 + $0x20] sm:$0xff] }
  0x1a   : > { %435 = vmatpush.msra.mxu0 %v420_v7  ;;  %833 = vmatpush.msra.mxu1 %v420_v7  ;;  %v404_v54 = vmax.f32 %v372_v50, 0.0  ;;  %v390_v61 = vmax.f32 %v358_v53, 0.0  ;;  %v337_v63 = vmul.f32 %v967_v10, %v301_v59  ;;  %v398_v0 = vmax.f32 %v366_v56, 0.0  ;;  %v305_v50 = vld [vmem:[%s959_s23 + $0xe8] sm:$0xff] }
  0x1b   : > { %834 = vmatpush.msra.mxu2 %v420_v7  ;;  %835 = vmatpush.msra.mxu3 %v420_v7  ;;  %v331_v1 = vmul.f32 %v967_v10, %v295_v58  ;;  %v351_v3 = vadd.f32 %v982_v17, %v315_v57  ;;  %v359_v4 = vadd.f32 %v982_v17, %v323_v62  ;;  %v288_v7 = vld [vmem:[%s959_s23 + $0x60] sm:$0xff]  ;;  %v291_v62 = vld [vmem:[%s959_s23 + $0x78] sm:$0xff] }
  0x1c   : > { %436 = vmatpush.msra.mxu0 %v419_v8  ;;  %836 = vmatpush.msra.mxu1 %v419_v8  ;;  %v373_v2 = vadd.f32 %v982_v17, %v337_v63  ;;  %v338_v16 = vmul.f32 %v967_v10, %v302_v12  ;;  %v339_v27 = vmul.f32 %v967_v10, %v303_v24 }
  0x1d   : > { %837 = vmatpush.msra.mxu2 %v419_v8  ;;  %838 = vmatpush.msra.mxu3 %v419_v8  ;;  %v367_v8 = vadd.f32 %v982_v17, %v331_v1  ;;  %v391_v14 = vmax.f32 %v359_v4, 0.0  ;;  %v317_v33 = vmul.f32 %v967_v10, %v281_v25  ;;  %v340_v40 = vmul.f32 %v967_v10, %v304_v31  ;;  %v299_v1 = vld [vmem:[%s959_s23 + $0xb8] sm:$0xff] }
  0x1e   : > { %437 = vmatpush.msra.mxu0 %v418_v9  ;;  %839 = vmatpush.msra.mxu1 %v418_v9  ;;  %v405_v5 = vmax.f32 %v373_v2, 0.0  ;;  %v374_v20 = vadd.f32 %v982_v17, %v338_v16  ;;  %v343_v41 = vmul.f32 %v967_v10, %v307_v36  ;;  %v334_v56 = vmul.f32 %v967_v10, %v298_v49  ;;  %v306_v2 = vld [vmem:[%s959_s23 + $0xf0] sm:$0xff] }
  0x1f   : > { %840 = vmatpush.msra.mxu2 %v418_v9  ;;  %841 = vmatpush.msra.mxu3 %v418_v9  ;;  %v383_v9 = vmax.f32 %v351_v3, 0.0  ;;  %v399_v18 = vmax.f32 %v367_v8, 0.0  ;;  %v353_v42 = vadd.f32 %v982_v17, %v317_v33  ;;  %v341_v58 = vmul.f32 %v967_v10, %v305_v50 }
  0x20   : > { %438 = vmatpush.msra.mxu0 %v417_v13  ;;  %842 = vmatpush.msra.mxu1 %v417_v13  ;;  %v406_v23 = vmax.f32 %v374_v20, 0.0  ;;  %v379_v46 = vadd.f32 %v982_v17, %v343_v41  ;;  %v370_v63 = vadd.f32 %v982_v17, %v334_v56  ;;  %v335_v8 = vmul.f32 %v967_v10, %v299_v1 }
  0x21   : > { %843 = vmatpush.msra.mxu2 %v417_v13  ;;  %844 = vmatpush.msra.mxu3 %v417_v13  ;;  %v316_v13 = vmul.f32 %v967_v10, %v280_v6  ;;  %v385_v51 = vmax.f32 %v353_v42, 0.0  ;;  %v327_v6 = vmul.f32 %v967_v10, %v291_v62 }
  0x22   : > { %439 = vmatpush.msra.mxu0 %v416_v15  ;;  %845 = vmatpush.msra.mxu1 %v416_v15 }
  0x23   : > { %846 = vmatpush.msra.mxu2 %v416_v15  ;;  %847 = vmatpush.msra.mxu3 %v416_v15  ;;  %v324_v15 = vmul.f32 %v967_v10, %v288_v7  ;;  %v402_v7 = vmax.f32 %v370_v63, 0.0 }
  0x24   : > { %440 = vmatpush.msra.mxu0 %v415_v19  ;;  %848 = vmatpush.msra.mxu1 %v415_v19 }
  0x25   : > { %849 = vmatpush.msra.mxu2 %v415_v19  ;;  %850 = vmatpush.msra.mxu3 %v415_v19  ;;  %v332_v19 = vmul.f32 %v967_v10, %v296_v11  ;;  %v360_v22 = vadd.f32 %v982_v17, %v324_v15  ;;  %v342_v11 = vmul.f32 %v967_v10, %v306_v2 }
  0x26   : > { %441 = vmatpush.msra.mxu0 %v414_v21  ;;  %851 = vmatpush.msra.mxu1 %v414_v21 }
  0x27   : > { %852 = vmatpush.msra.mxu2 %v414_v21  ;;  %853 = vmatpush.msra.mxu3 %v414_v21  ;;  %v352_v21 = vadd.f32 %v982_v17, %v316_v13  ;;  %v368_v28 = vadd.f32 %v982_v17, %v332_v19  ;;  %v363_v13 = vadd.f32 %v982_v17, %v327_v6 }
  0x28   : > { %442 = vmatpush.msra.mxu0 %v413_v26  ;;  %854 = vmatpush.msra.mxu1 %v413_v26  ;;  %v378_v15 = vadd.f32 %v982_v17, %v342_v11 }
  0x29   : > { %855 = vmatpush.msra.mxu2 %v413_v26  ;;  %856 = vmatpush.msra.mxu3 %v413_v26  ;;  %v289_v26 = vld [vmem:[%s959_s23 + $0x68] sm:$0xff]  ;;  %v400_v37 = vmax.f32 %v368_v28, 0.0 }
  0x2a   : > { %443 = vmatpush.msra.mxu0 %v412_v29  ;;  %857 = vmatpush.msra.mxu1 %v412_v29  ;;  %v325_v35 = vmul.f32 %v967_v10, %v289_v26  ;;  %v410_v20 = vmax.f32 %v378_v15, 0.0 }
  0x2b   : > { %444 = vmatmul.f32.vlgmr.msra.gmra.mxu0 %v380_v30  ;;  %468 = vmatmul.f32.vlgmr.msra.gmra.mxu1 %v388_v32  ;;  %v375_v30 = vadd.f32 %v982_v17, %v339_v27  ;;  %v384_v32 = vmax.f32 %v352_v21, 0.0 }
  0x2c   : > { %858 = vmatpush.msra.mxu2 %v412_v29  ;;  %859 = vmatpush.msra.mxu3 %v412_v29  ;;  %v297_v29 = vld [vmem:[%s959_s23 + $0xa8] sm:$0xff]  ;;  %v361_v43 = vadd.f32 %v982_v17, %v325_v35 }
  0x2d   : > { %492 = vmatmul.f32.vlgmr.msra.gmra.mxu2 %v396_v34  ;;  %516 = vmatmul.f32.vlgmr.msra.gmra.mxu3 %v404_v54  ;;  %v392_v34 = vmax.f32 %v360_v22, 0.0  ;;  %v333_v38 = vmul.f32 %v967_v10, %v297_v29  ;;  %v407_v39 = vmax.f32 %v375_v30, 0.0 }
  0x2e   : > { %v393_v53 = vmax.f32 %v361_v43, 0.0 }
  0x2f   : > { %v369_v47 = vadd.f32 %v982_v17, %v333_v38 }
  0x31   : > { %v401_v55 = vmax.f32 %v369_v47, 0.0 }
  0x33   : > { %447 = vmatmul.f32.gmra.mxu0 %v381_v44  ;;  %471 = vmatmul.f32.gmra.mxu1 %v389_v45  ;;  %v282_v44 = vld [vmem:[%s959_s23 + $0x30] sm:$0xff] }
  0x34   : > { %v290_v45 = vld [vmem:[%s959_s23 + $0x70] sm:$0xff]  ;;  %v318_v52 = vmul.f32 %v967_v10, %v282_v44 }
  0x35   : > { %495 = vmatmul.f32.gmra.mxu2 %v397_v48  ;;  %519 = vmatmul.f32.gmra.mxu3 %v405_v5  ;;  %v376_v48 = vadd.f32 %v982_v17, %v340_v40  ;;  %v326_v54 = vmul.f32 %v967_v10, %v290_v45 }
  0x36   : > { %v354_v59 = vadd.f32 %v982_v17, %v318_v52 }
  0x37   : > { %v408_v57 = vmax.f32 %v376_v48, 0.0 }
  0x38   : > { %v386_v3 = vmax.f32 %v354_v59, 0.0 }
  0x3b   : > { %450 = vmatmul.f32.gmra.mxu0 %v382_v60  ;;  %474 = vmatmul.f32.gmra.mxu1 %v390_v61  ;;  %v362_v60 = vadd.f32 %v982_v17, %v326_v54  ;;  %v283_v61 = vld [vmem:[%s959_s23 + $0x38] sm:$0xff] }
  0x3c   : > { %v319_v4 = vmul.f32 %v967_v10, %v283_v61  ;;  %v411_v10 = vmax.f32 %v379_v46, 0.0 }
  0x3d   : > { %498 = vmatmul.f32.gmra.mxu2 %v398_v0  ;;  %522 = vmatmul.f32.gmra.mxu3 %v406_v23  ;;  %v377_v0 = vadd.f32 %v982_v17, %v341_v58  ;;  %v394_v5 = vmax.f32 %v362_v60, 0.0 }
  0x3e   : > { %v355_v12 = vadd.f32 %v982_v17, %v319_v4 }
  0x40   : > { %v387_v16 = vmax.f32 %v355_v12, 0.0 }
  0x43   : > { %453 = vmatmul.f32.gmra.mxu0 %v383_v9  ;;  %477 = vmatmul.f32.gmra.mxu1 %v391_v14  ;;  %v409_v9 = vmax.f32 %v377_v0, 0.0  ;;  %v371_v14 = vadd.f32 %v982_v17, %v335_v8 }
  0x45   : > { %501 = vmatmul.f32.gmra.mxu2 %v399_v18  ;;  %525 = vmatmul.f32.gmra.mxu3 %v407_v39  ;;  %v395_v18 = vmax.f32 %v363_v13, 0.0  ;;  %v403_v19 = vmax.f32 %v371_v14, 0.0 }
  0x4b   : > { %456 = vmatmul.f32.gmra.mxu0 %v384_v32  ;;  %480 = vmatmul.f32.gmra.mxu1 %v392_v34 }
  0x4d   : > { %504 = vmatmul.f32.gmra.mxu2 %v400_v37  ;;  %528 = vmatmul.f32.gmra.mxu3 %v408_v57 }
  0x53   : > { %459 = vmatmul.f32.gmra.mxu0 %v385_v51  ;;  %483 = vmatmul.f32.gmra.mxu1 %v393_v53 }
  0x55   : > { %507 = vmatmul.f32.gmra.mxu2 %v401_v55  ;;  %531 = vmatmul.f32.gmra.mxu3 %v409_v9 }
  0x5b   : > { %462 = vmatmul.f32.gmra.mxu0 %v386_v3  ;;  %486 = vmatmul.f32.gmra.mxu1 %v394_v5 }
  0x5d   : > { %510 = vmatmul.f32.gmra.mxu2 %v402_v7  ;;  %534 = vmatmul.f32.gmra.mxu3 %v410_v20 }
  0x63   : > { %465 = vmatmul.f32.gmra.mxu0 %v387_v16  ;;  %489 = vmatmul.f32.gmra.mxu1 %v395_v18 }
  0x65   : > { %513 = vmatmul.f32.gmra.mxu2 %v403_v19  ;;  %537 = vmatmul.f32.gmra.mxu3 %v411_v10 }
  0xa8   : > { %v445_v17 = vpop.f32.mrf.mxu0  ;;  %v1095_v21 = vpop.f32.mrf.mxu1 }
  0xa9   : > { %541 = vst [vmem:[%s1093_s24] sm:$0xff] %v445_v17  ;;  %v611_v42 = vmul.f32 %v445_v17, %v445_v17  ;;  %v619_v6 = vmul.f32 %v1095_v21, %v1095_v21 }
  0xaa   : > { %549 = vst [vmem:[%s1093_s24 + $0x40] sm:$0xff] %v1095_v21 }
  0xb0   : > { %v448_v22 = vpop.f32.mrf.mxu0  ;;  %v1100_v23 = vpop.f32.mrf.mxu1 }
  0xb1   : > { %542 = vst [vmem:[%s1093_s24 + $0x8] sm:$0xff] %v448_v22  ;;  %v1103_v24 = vpop.f32.mrf.mxu2  ;;  %v1114_v28 = vpop.f32.mrf.mxu3  ;;  %v612_v41 = vmul.f32 %v448_v22, %v448_v22  ;;  %v573_v43 = vadd.f32 %v448_v22, %v445_v17  ;;  %v620_v9 = vmul.f32 %v1100_v23, %v1100_v23 }
  0xb2   : > { %550 = vst [vmem:[%s1093_s24 + $0x48] sm:$0xff] %v1100_v23 }
  0xb3   : > { %557 = vst [vmem:[%s1093_s24 + $0x80] sm:$0xff] %v1103_v24  ;;  %v643_v45 = vadd.f32 %v612_v41, %v611_v42 }
  0xb4   : > { %565 = vst [vmem:[%s1093_s24 + $0xc0] sm:$0xff] %v1114_v28 }
  0xb8   : > { %v451_v25 = vpop.f32.mrf.mxu0  ;;  %v1109_v26 = vpop.f32.mrf.mxu1 }
  0xb9   : > { %543 = vst [vmem:[%s1093_s24 + $0x10] sm:$0xff] %v451_v25  ;;  %v1112_v27 = vpop.f32.mrf.mxu2  ;;  %v1127_v32 = vpop.f32.mrf.mxu3  ;;  %v613_v44 = vmul.f32 %v451_v25, %v451_v25  ;;  %v574_v46 = vadd.f32 %v573_v43, %v451_v25  ;;  %v621_v13 = vmul.f32 %v1109_v26, %v1109_v26 }
  0xba   : > { %551 = vst [vmem:[%s1093_s24 + $0x50] sm:$0xff] %v1109_v26 }
  0xbb   : > { %558 = vst [vmem:[%s1093_s24 + $0x88] sm:$0xff] %v1112_v27  ;;  %v644_v50 = vadd.f32 %v643_v45, %v613_v44  ;;  %v627_v44 = vmul.f32 %v1103_v24, %v1103_v24 }
  0xbc   : > { %566 = vst [vmem:[%s1093_s24 + $0xc8] sm:$0xff] %v1127_v32 }
  0xc0   : > { %v454_v29 = vpop.f32.mrf.mxu0  ;;  %v1122_v30 = vpop.f32.mrf.mxu1 }
  0xc1   : > { %544 = vst [vmem:[%s1093_s24 + $0x18] sm:$0xff] %v454_v29  ;;  %v1125_v31 = vpop.f32.mrf.mxu2  ;;  %v1140_v36 = vpop.f32.mrf.mxu3  ;;  %v614_v47 = vmul.f32 %v454_v29, %v454_v29  ;;  %v575_v51 = vadd.f32 %v574_v46, %v454_v29  ;;  %v622_v16 = vmul.f32 %v1122_v30, %v1122_v30  ;;  %v628_v46 = vmul.f32 %v1112_v27, %v1112_v27 }
  0xc2   : > { %552 = vst [vmem:[%s1093_s24 + $0x58] sm:$0xff] %v1122_v30 }
  0xc3   : > { %559 = vst [vmem:[%s1093_s24 + $0x90] sm:$0xff] %v1125_v31  ;;  %v645_v55 = vadd.f32 %v644_v50, %v614_v47 }
  0xc4   : > { %567 = vst [vmem:[%s1093_s24 + $0xd0] sm:$0xff] %v1140_v36 }
  0xc8   : > { %v457_v33 = vpop.f32.mrf.mxu0  ;;  %v1135_v34 = vpop.f32.mrf.mxu1 }
  0xc9   : > { %545 = vst [vmem:[%s1093_s24 + $0x20] sm:$0xff] %v457_v33  ;;  %v1138_v35 = vpop.f32.mrf.mxu2  ;;  %v1153_v40 = vpop.f32.mrf.mxu3  ;;  %v615_v52 = vmul.f32 %v457_v33, %v457_v33  ;;  %v576_v56 = vadd.f32 %v575_v51, %v457_v33  ;;  %v623_v17 = vmul.f32 %v1135_v34, %v1135_v34 }
  0xca   : > { %553 = vst [vmem:[%s1093_s24 + $0x60] sm:$0xff] %v1135_v34  ;;  %v630_v51 = vmul.f32 %v1138_v35, %v1138_v35 }
  0xcb   : > { %560 = vst [vmem:[%s1093_s24 + $0x98] sm:$0xff] %v1138_v35  ;;  %v646_v58 = vadd.f32 %v645_v55, %v615_v52 }
  0xcc   : > { %568 = vst [vmem:[%s1093_s24 + $0xd8] sm:$0xff] %v1153_v40 }
  0xd0   : > { %v460_v37 = vpop.f32.mrf.mxu0  ;;  %v1148_v38 = vpop.f32.mrf.mxu1 }
  0xd1   : > { %546 = vst [vmem:[%s1093_s24 + $0x28] sm:$0xff] %v460_v37  ;;  %v1151_v39 = vpop.f32.mrf.mxu2  ;;  %v1164_v54 = vpop.f32.mrf.mxu3  ;;  %v616_v57 = vmul.f32 %v460_v37, %v460_v37  ;;  %v577_v59 = vadd.f32 %v576_v56, %v460_v37  ;;  %v624_v25 = vmul.f32 %v1148_v38, %v1148_v38 }
  0xd2   : > { %554 = vst [vmem:[%s1093_s24 + $0x68] sm:$0xff] %v1148_v38 }
  0xd3   : > { %561 = vst [vmem:[%s1093_s24 + $0xa0] sm:$0xff] %v1151_v39  ;;  %v647_v61 = vadd.f32 %v646_v58, %v616_v57 }
  0xd4   : > { %569 = vst [vmem:[%s1093_s24 + $0xe0] sm:$0xff] %v1164_v54 }
  0xd8   : > { %v463_v48 = vpop.f32.mrf.mxu0  ;;  %v487_v49 = vpop.f32.mrf.mxu1 }
  0xd9   : > { %547 = vst [vmem:[%s1093_s24 + $0x30] sm:$0xff] %v463_v48  ;;  %v1162_v53 = vpop.f32.mrf.mxu2  ;;  %v617_v60 = vmul.f32 %v463_v48, %v463_v48  ;;  %v578_v62 = vadd.f32 %v577_v59, %v463_v48  ;;  %v1172_v5 = vpop.f32.mrf.mxu3  ;;  %v629_v48 = vmul.f32 %v1125_v31, %v1125_v31 }
  0xda   : > { %555 = vst [vmem:[%s1093_s24 + $0x70] sm:$0xff] %v487_v49  ;;  %v632_v58 = vmul.f32 %v1162_v53, %v1162_v53 }
  0xdb   : > { %562 = vst [vmem:[%s1093_s24 + $0xa8] sm:$0xff] %v1162_v53  ;;  %v648_v1 = vadd.f32 %v647_v61, %v617_v60 }
  0xdc   : > { %570 = vst [vmem:[%s1093_s24 + $0xe8] sm:$0xff] %v1172_v5 }
  0xe0   : > { %v466_v63 = vpop.f32.mrf.mxu0  ;;  %v490_v0 = vpop.f32.mrf.mxu1 }
  0xe1   : > { %548 = vst [vmem:[%s1093_s24 + $0x38] sm:$0xff] %v466_v63  ;;  %v579_v2 = vadd.f32 %v578_v62, %v466_v63  ;;  %v618_v3 = vmul.f32 %v466_v63, %v466_v63  ;;  %v511_v4 = vpop.f32.mrf.mxu2  ;;  %v535_v10 = vpop.f32.mrf.mxu3  ;;  %v626_v37 = vmul.f32 %v490_v0, %v490_v0 }
  0xe2   : > { %556 = vst [vmem:[%s1093_s24 + $0x78] sm:$0xff] %v490_v0  ;;  %v633_v61 = vmul.f32 %v511_v4, %v511_v4 }
  0xe3   : > { %v580_v7 = vadd.f32 %v579_v2, %v1095_v21  ;;  %v649_v8 = vadd.f32 %v648_v1, %v618_v3  ;;  %563 = vst [vmem:[%s1093_s24 + $0xb0] sm:$0xff] %v511_v4 }
  0xe4   : > { %571 = vst [vmem:[%s1093_s24 + $0xf0] sm:$0xff] %v535_v10 }
  0xe5   : > { %v581_v11 = vadd.f32 %v580_v7, %v1100_v23  ;;  %v650_v12 = vadd.f32 %v649_v8, %v619_v6  ;;  %v638_v8 = vmul.f32 %v1153_v40, %v1153_v40 }
  0xe7   : > { %v582_v14 = vadd.f32 %v581_v11, %v1109_v26  ;;  %v651_v15 = vadd.f32 %v650_v12, %v620_v9  ;;  %v639_v11 = vmul.f32 %v1164_v54, %v1164_v54 }
  0xe9   : > { %v652_v18 = vadd.f32 %v651_v15, %v621_v13  ;;  %v583_v19 = vadd.f32 %v582_v14, %v1122_v30  ;;  %v514_v20 = vpop.f32.mrf.mxu2  ;;  %v625_v30 = vmul.f32 %v487_v49, %v487_v49  ;;  %v538_v43 = vpop.f32.mrf.mxu3 }
  0xea   : > { %564 = vst [vmem:[%s1093_s24 + $0xb8] sm:$0xff] %v514_v20  ;;  %v634_v62 = vmul.f32 %v514_v20, %v514_v20 }
  0xeb   : > { %v584_v21 = vadd.f32 %v583_v19, %v1135_v34  ;;  %v653_v22 = vadd.f32 %v652_v18, %v622_v16  ;;  %572 = vst [vmem:[%s1093_s24 + $0xf8] sm:$0xff] %v538_v43  ;;  %v641_v18 = vmul.f32 %v535_v10, %v535_v10  ;;  %v642_v19 = vmul.f32 %v538_v43, %v538_v43 }
  0xed   : > { %v585_v23 = vadd.f32 %v584_v21, %v1148_v38  ;;  %v654_v26 = vadd.f32 %v653_v22, %v623_v17 }
  0xef   : > { %v655_v29 = vadd.f32 %v654_v26, %v624_v25  ;;  %v586_v33 = vadd.f32 %v585_v23, %v487_v49 }
  0xf1   : > { %v656_v41 = vadd.f32 %v655_v29, %v625_v30  ;;  %v587_v42 = vadd.f32 %v586_v33, %v490_v0 }
  0xf3   : > { %v588_v34 = vadd.f32 %v587_v42, %v1103_v24  ;;  %v657_v45 = vadd.f32 %v656_v41, %v626_v37  ;;  %v631_v24 = vmul.f32 %v1151_v39, %v1151_v39 }
  0xf5   : > { %v589_v38 = vadd.f32 %v588_v34, %v1112_v27  ;;  %v658_v47 = vadd.f32 %v657_v45, %v627_v44 }
  0xf7   : > { %v590_v49 = vadd.f32 %v589_v38, %v1125_v31  ;;  %v659_v50 = vadd.f32 %v658_v47, %v628_v46 }
  0xf9   : > { %v660_v52 = vadd.f32 %v659_v50, %v629_v48  ;;  %v591_v55 = vadd.f32 %v590_v49, %v1138_v35  ;;  %v635_v35 = vmul.f32 %v1114_v28, %v1114_v28 }
  0xfb   : > { %v592_v56 = vadd.f32 %v591_v55, %v1151_v39  ;;  %v661_v57 = vadd.f32 %v660_v52, %v630_v51  ;;  %v636_v39 = vmul.f32 %v1127_v32, %v1127_v32 }
  0xfd   : > { %v593_v27 = vadd.f32 %v592_v56, %v1162_v53  ;;  %v662_v59 = vadd.f32 %v661_v57, %v631_v24  ;;  %v637_v53 = vmul.f32 %v1140_v36, %v1140_v36 }
  0xff   : > { %v663_v31 = vadd.f32 %v662_v59, %v632_v58  ;;  %v594_v60 = vadd.f32 %v593_v27, %v511_v4 }
 0x101   : > { %v664_v63 = vadd.f32 %v663_v31, %v633_v61  ;;  %v595_v0 = vadd.f32 %v594_v60, %v514_v20 }
 0x103   : > { %v596_v1 = vadd.f32 %v595_v0, %v1114_v28  ;;  %v665_v2 = vadd.f32 %v664_v63, %v634_v62 }
 0x105   : > { %v597_v3 = vadd.f32 %v596_v1, %v1127_v32  ;;  %v666_v6 = vadd.f32 %v665_v2, %v635_v35 }
 0x107   : > { %v598_v4 = vadd.f32 %v597_v3, %v1140_v36  ;;  %v667_v7 = vadd.f32 %v666_v6, %v636_v39  ;;  %v640_v36 = vmul.f32 %v1172_v5, %v1172_v5 }
 0x109   : > { %v668_v9 = vadd.f32 %v667_v7, %v637_v53  ;;  %v599_v28 = vadd.f32 %v598_v4, %v1153_v40 }
 0x10b   : > { %v600_v32 = vadd.f32 %v599_v28, %v1164_v54  ;;  %v669_v12 = vadd.f32 %v668_v9, %v638_v8 }
 0x10d   : > { %v601_v13 = vadd.f32 %v600_v32, %v1172_v5  ;;  %v670_v14 = vadd.f32 %v669_v12, %v639_v11 }
 0x10f   : > { %v671_v15 = vadd.f32 %v670_v14, %v640_v36  ;;  %v602_v16 = vadd.f32 %v601_v13, %v535_v10 }
 0x111   : > { %v672_v20 = vadd.f32 %v671_v15, %v641_v18  ;;  %v603_v40 = vadd.f32 %v602_v16, %v538_v43 }
 0x113   : > { %v604_v17 = vrot.slane %v603_v40, 4  ;;  %v673_v21 = vadd.f32 %v672_v20, %v642_v19 }
 0x115   : > { %v605_v22 = vadd.f32 %v604_v17, %v603_v40  ;;  %v674_v23 = vrot.slane %v673_v21, 4 }
 0x117   : > { %v606_v54 = vrot.slane %v605_v22, 2  ;;  %v675_v25 = vadd.f32 %v674_v23, %v673_v21 }
 0x119   : > { %v607_v26 = vadd.f32 %v606_v54, %v605_v22  ;;  %v676_v29 = vrot.slane %v675_v25, 2 }
 0x11b   : > { %v608_v33 = vrot.slane %v607_v26, 1  ;;  %v677_v5 = vadd.f32 %v676_v29, %v675_v25 }
 0x11d   : > { %v609_v10 = vadd.f32 %v608_v33, %v607_v26  ;;  %v678_v30 = vrot.slane %v677_v5, 1 }
 0x11f   : > { %610 = vst [vmem:[%s271_s26] sm:$0xff] %v609_v10  ;;  %v679_v37 = vadd.f32 %v678_v30, %v677_v5 }
 0x121   : > { %680 = vst [vmem:[%s275_s30] sm:$0xff] %v679_v37 }
 0x122 PF: > { %s17_s21 = sadd.s32 1, %s876_s21  }
 0x123   : > { %p14_p5 = scmp.ge.s32.totalorder %s17_s21, 4  }
 0x125   :  { %16 = sbr.rel (!%p14_p5) target bundleno = 1 (0x1), region = 90 }

// kernel: preact_bottleneck.5
= control target key start
LH: loop header
LB: loop body
LE: loop exit
PB: predicated region body
PF: predicated region fallthrough
CT: control target
= control target key end

     0   :  { %s656_s15 = smov 0   ;;  %s870_s0 = inlined_call_operand.vmem [shape: f32[512,128], index: 0, kind: input, shape index: {}]   ;;  %s871_s1 = inlined_call_operand.vmem [shape: f32[1,128], index: 1, kind: input, shape index: {}]   ;;  %s872_s2 = inlined_call_operand.vmem [shape: f32[1,128], index: 2, kind: input, shape index: {}]   ;;  %s873_s3 = inlined_call_operand.vmem [shape: f32[128,128], index: 3, kind: input, shape index: {}]   ;;  %s874_s4 = inlined_call_operand.vmem [shape: f32[512,128], index: 4, kind: output, shape index: {}]  }
   0x1 LB: > { %s554_s16 = sadd.s32 4294967295, %s629_s15   ;;  %p558_p0 = scmp.ge.s32.totalorder %s629_s15, 1  ;;  %s629_s15 = sphi %s656_s15, %s14_s15  }
   0x2   : > { %p163_p1 = scmp.lt.s32.totalorder %s629_s15, 3 }
   0x4   : > { %p164_p2 = pnand %p558_p0, %p163_p1 }
   0x5   : > { %s559_s21 = sshll.u32 (!%p164_p2), %s554_s16, 5 }
   0x6   : > { %167 = sbr.rel (%p164_p2) target bundleno = 233 (0xe9), region = 36  ;;  %p190_p3 = scmp.lt.s32.totalorder (!%p164_p2), %s559_s21, 63 }
   0xb   : > { %v352_v0 = vld [vmem:[%s873_s3 + $0x78] sm:$0xff]  ;;  %v351_v1 = vld [vmem:[%s873_s3 + $0x70] sm:$0xff]  ;;  %v350_v2 = vld [vmem:[%s873_s3 + $0x68] sm:$0xff]  ;;  %s876_s21 = smov (!%p190_p3, %s559_s21), 63 }
   0xc   : > { %566 = vmatpush.msra.mxu2 %v352_v0  ;;  %567 = vmatpush.msra.mxu3 %v352_v0  ;;  %v349_v3 = vld [vmem:[%s873_s3 + $0x60] sm:$0xff]  ;;  %v348_v4 = vld [vmem:[%s873_s3 + $0x58] sm:$0xff]  ;;  %v347_v5 = vld [vmem:[%s873_s3 + $0x50] sm:$0xff]  ;;  %s560_s6 = sshll.u32 %s876_s21, 3 }
   0xd   : > { %353 = vmatpush.msra.mxu0 %v352_v0  ;;  %565 = vmatpush.msra.mxu1 %v352_v0  ;;  %v346_v6 = vld [vmem:[%s873_s3 + $0x48] sm:$0xff]  ;;  %v345_v7 = vld [vmem:[%s873_s3 + $0x40] sm:$0xff]  ;;  %v344_v8 = vld [vmem:[%s873_s3 + $0x38] sm:$0xff]  ;;  %s699_s13 = scalar_lea.vmem %s870_s0, %s560_s6  ;;  %s833_s11 = scalar_lea.vmem %s874_s4, %s560_s6 }
   0xe   : > { %569 = vmatpush.msra.mxu2 %v351_v1  ;;  %570 = vmatpush.msra.mxu3 %v351_v1  ;;  %v343_v9 = vld [vmem:[%s873_s3 + $0x30] sm:$0xff]  ;;  %v707_v10 = vld [vmem:[%s871_s1] ss:$0 sm:$0xff]  ;;  %v342_v13 = vld [vmem:[%s873_s3 + $0x28] sm:$0xff] }
   0xf   : > { %354 = vmatpush.msra.mxu0 %v351_v1  ;;  %568 = vmatpush.msra.mxu1 %v351_v1  ;;  %v217_v11 = vld [vmem:[%s699_s13 + $0x80] sm:$0xff]  ;;  %v340_v20 = vld [vmem:[%s873_s3 + $0x18] sm:$0xff]  ;;  %v339_v23 = vld [vmem:[%s873_s3 + $0x10] sm:$0xff] }
  0x10   : > { %572 = vmatpush.msra.mxu2 %v350_v2  ;;  %573 = vmatpush.msra.mxu3 %v350_v2  ;;  %v225_v12 = vld [vmem:[%s699_s13 + $0xc0] sm:$0xff]  ;;  %v253_v17 = vmul.f32 %v707_v10, %v217_v11  ;;  %v218_v26 = vld [vmem:[%s699_s13 + $0x88] sm:$0xff]  ;;  %v219_v44 = vld [vmem:[%s699_s13 + $0x90] sm:$0xff] }
  0x11   : > { %355 = vmatpush.msra.mxu0 %v350_v2  ;;  %571 = vmatpush.msra.mxu1 %v350_v2  ;;  %v201_v14 = vld [vmem:[%s699_s13] sm:$0xff]  ;;  %v261_v19 = vmul.f32 %v707_v10, %v225_v12  ;;  %v226_v27 = vld [vmem:[%s699_s13 + $0xc8] sm:$0xff]  ;;  %v254_v36 = vmul.f32 %v707_v10, %v218_v26  ;;  %v227_v45 = vld [vmem:[%s699_s13 + $0xd0] sm:$0xff]  ;;  %v255_v52 = vmul.f32 %v707_v10, %v219_v44 }
  0x12   : > { %575 = vmatpush.msra.mxu2 %v349_v3  ;;  %576 = vmatpush.msra.mxu3 %v349_v3  ;;  %v209_v15 = vld [vmem:[%s699_s13 + $0x40] sm:$0xff]  ;;  %v237_v21 = vmul.f32 %v707_v10, %v201_v14  ;;  %v338_v28 = vld [vmem:[%s873_s3 + $0x8] sm:$0xff]  ;;  %v262_v37 = vmul.f32 %v707_v10, %v226_v27  ;;  %v203_v48 = vld [vmem:[%s699_s13 + $0x10] sm:$0xff]  ;;  %v263_v53 = vmul.f32 %v707_v10, %v227_v45 }
  0x13   : > { %356 = vmatpush.msra.mxu0 %v349_v3  ;;  %574 = vmatpush.msra.mxu1 %v349_v3  ;;  %v341_v16 = vld [vmem:[%s873_s3 + $0x20] sm:$0xff]  ;;  %v245_v22 = vmul.f32 %v707_v10, %v209_v15  ;;  %v202_v31 = vld [vmem:[%s699_s13 + $0x8] sm:$0xff]  ;;  %v211_v49 = vld [vmem:[%s699_s13 + $0x50] sm:$0xff]  ;;  %v239_v56 = vmul.f32 %v707_v10, %v203_v48 }
  0x14   : > { %578 = vmatpush.msra.mxu2 %v348_v4  ;;  %579 = vmatpush.msra.mxu3 %v348_v4  ;;  %v723_v18 = vld [vmem:[%s872_s2] ss:$0 sm:$0xff]  ;;  %v210_v32 = vld [vmem:[%s699_s13 + $0x48] sm:$0xff]  ;;  %v238_v40 = vmul.f32 %v707_v10, %v202_v31  ;;  %v247_v57 = vmul.f32 %v707_v10, %v211_v49  ;;  %v220_v60 = vld [vmem:[%s699_s13 + $0x98] sm:$0xff] }
  0x15   : > { %357 = vmatpush.msra.mxu0 %v348_v4  ;;  %577 = vmatpush.msra.mxu1 %v348_v4  ;;  %v289_v24 = vadd.f32 %v723_v18, %v253_v17  ;;  %v297_v25 = vadd.f32 %v723_v18, %v261_v19  ;;  %v273_v29 = vadd.f32 %v723_v18, %v237_v21  ;;  %v337_v33 = vld [vmem:[%s873_s3] sm:$0xff]  ;;  %v228_v61 = vld [vmem:[%s699_s13 + $0xd8] sm:$0xff]  ;;  %v230_v31 = vld [vmem:[%s699_s13 + $0xe8] sm:$0xff] }
  0x16   : > { %581 = vmatpush.msra.mxu2 %v347_v5  ;;  %582 = vmatpush.msra.mxu3 %v347_v5  ;;  %v281_v30 = vadd.f32 %v723_v18, %v245_v22  ;;  %v246_v41 = vmul.f32 %v707_v10, %v210_v32  ;;  %v290_v42 = vadd.f32 %v723_v18, %v254_v36  ;;  %v204_v0 = vld [vmem:[%s699_s13 + $0x18] sm:$0xff]  ;;  %v229_v14 = vld [vmem:[%s699_s13 + $0xe0] sm:$0xff] }
  0x17   : > { %358 = vmatpush.msra.mxu0 %v347_v5  ;;  %580 = vmatpush.msra.mxu1 %v347_v5  ;;  %v321_v34 = vmax.f32 %v289_v24, 0.0  ;;  %v329_v35 = vmax.f32 %v297_v25, 0.0  ;;  %v305_v38 = vmax.f32 %v273_v29, 0.0  ;;  %v298_v43 = vadd.f32 %v723_v18, %v262_v37  ;;  %v212_v1 = vld [vmem:[%s699_s13 + $0x58] sm:$0xff]  ;;  %v205_v17 = vld [vmem:[%s699_s13 + $0x20] sm:$0xff] }
  0x18   : > { %584 = vmatpush.msra.mxu2 %v346_v6  ;;  %585 = vmatpush.msra.mxu3 %v346_v6  ;;  %v313_v39 = vmax.f32 %v281_v30, 0.0  ;;  %v274_v46 = vadd.f32 %v723_v18, %v238_v40  ;;  %v282_v47 = vadd.f32 %v723_v18, %v246_v41  ;;  %v322_v50 = vmax.f32 %v290_v42, 0.0  ;;  %v213_v19 = vld [vmem:[%s699_s13 + $0x60] sm:$0xff]  ;;  %v222_v30 = vld [vmem:[%s699_s13 + $0xa8] sm:$0xff] }
  0x19   : > { %359 = vmatpush.msra.mxu0 %v346_v6  ;;  %583 = vmatpush.msra.mxu1 %v346_v6  ;;  %v330_v51 = vmax.f32 %v298_v43, 0.0  ;;  %v291_v58 = vadd.f32 %v723_v18, %v255_v52  ;;  %v299_v59 = vadd.f32 %v723_v18, %v263_v53  ;;  %v275_v62 = vadd.f32 %v723_v18, %v239_v56 }
  0x1a   : > { %587 = vmatpush.msra.mxu2 %v345_v7  ;;  %588 = vmatpush.msra.mxu3 %v345_v7  ;;  %v306_v54 = vmax.f32 %v274_v46, 0.0  ;;  %v314_v55 = vmax.f32 %v282_v47, 0.0  ;;  %v283_v63 = vadd.f32 %v723_v18, %v247_v57  ;;  %v256_v4 = vmul.f32 %v707_v10, %v220_v60  ;;  %v223_v46 = vld [vmem:[%s699_s13 + $0xb0] sm:$0xff] }
  0x1b   : > { %360 = vmatpush.msra.mxu0 %v345_v7  ;;  %586 = vmatpush.msra.mxu1 %v345_v7  ;;  %v323_v2 = vmax.f32 %v291_v58, 0.0  ;;  %v331_v3 = vmax.f32 %v299_v59, 0.0  ;;  %v264_v5 = vmul.f32 %v707_v10, %v228_v61  ;;  %v307_v6 = vmax.f32 %v275_v62, 0.0  ;;  %v231_v47 = vld [vmem:[%s699_s13 + $0xf0] sm:$0xff]  ;;  %v224_v62 = vld [vmem:[%s699_s13 + $0xb8] sm:$0xff] }
  0x1c   : > { %590 = vmatpush.msra.mxu2 %v344_v8  ;;  %591 = vmatpush.msra.mxu3 %v344_v8  ;;  %v315_v7 = vmax.f32 %v283_v63, 0.0  ;;  %v292_v11 = vadd.f32 %v723_v18, %v256_v4  ;;  %v241_v26 = vmul.f32 %v707_v10, %v205_v17  ;;  %v249_v27 = vmul.f32 %v707_v10, %v213_v19  ;;  %v232_v63 = vld [vmem:[%s699_s13 + $0xf8] sm:$0xff] }
  0x1d   : > { %361 = vmatpush.msra.mxu0 %v344_v8  ;;  %589 = vmatpush.msra.mxu1 %v344_v8  ;;  %v240_v8 = vmul.f32 %v707_v10, %v204_v0  ;;  %v300_v12 = vadd.f32 %v723_v18, %v264_v5 }
  0x1e   : > { %593 = vmatpush.msra.mxu2 %v343_v9  ;;  %594 = vmatpush.msra.mxu3 %v343_v9  ;;  %v277_v32 = vadd.f32 %v723_v18, %v241_v26 }
  0x1f   : > { %362 = vmatpush.msra.mxu0 %v343_v9  ;;  %592 = vmatpush.msra.mxu1 %v343_v9  ;;  %v248_v9 = vmul.f32 %v707_v10, %v212_v1  ;;  %v276_v15 = vadd.f32 %v723_v18, %v240_v8  ;;  %v332_v21 = vmax.f32 %v300_v12, 0.0 }
  0x20   : > { %596 = vmatpush.msra.mxu2 %v342_v13  ;;  %597 = vmatpush.msra.mxu3 %v342_v13  ;;  %v309_v40 = vmax.f32 %v277_v32, 0.0 }
  0x21   : > { %363 = vmatpush.msra.mxu0 %v342_v13  ;;  %595 = vmatpush.msra.mxu1 %v342_v13  ;;  %v221_v13 = vld [vmem:[%s699_s13 + $0xa0] sm:$0xff]  ;;  %v308_v24 = vmax.f32 %v276_v15, 0.0 }
  0x22   : > { %599 = vmatpush.msra.mxu2 %v341_v16  ;;  %600 = vmatpush.msra.mxu3 %v341_v16  ;;  %v257_v22 = vmul.f32 %v707_v10, %v221_v13 }
  0x23   : > { %364 = vmatpush.msra.mxu0 %v341_v16  ;;  %598 = vmatpush.msra.mxu1 %v341_v16  ;;  %v284_v16 = vadd.f32 %v723_v18, %v248_v9 }
  0x24   : > { %602 = vmatpush.msra.mxu2 %v340_v20  ;;  %603 = vmatpush.msra.mxu3 %v340_v20 }
  0x25   : > { %365 = vmatpush.msra.mxu0 %v340_v20  ;;  %601 = vmatpush.msra.mxu1 %v340_v20  ;;  %v324_v20 = vmax.f32 %v292_v11, 0.0  ;;  %v316_v25 = vmax.f32 %v284_v16, 0.0 }
  0x26   : > { %605 = vmatpush.msra.mxu2 %v339_v23  ;;  %606 = vmatpush.msra.mxu3 %v339_v23 }
  0x27   : > { %366 = vmatpush.msra.mxu0 %v339_v23  ;;  %604 = vmatpush.msra.mxu1 %v339_v23  ;;  %v265_v23 = vmul.f32 %v707_v10, %v229_v14 }
  0x28   : > { %608 = vmatpush.msra.mxu2 %v338_v28  ;;  %609 = vmatpush.msra.mxu3 %v338_v28 }
  0x29   : > { %367 = vmatpush.msra.mxu0 %v338_v28  ;;  %607 = vmatpush.msra.mxu1 %v338_v28  ;;  %v293_v28 = vadd.f32 %v723_v18, %v257_v22  ;;  %v301_v29 = vadd.f32 %v723_v18, %v265_v23 }
  0x2a   : > { %611 = vmatpush.msra.mxu2 %v337_v33  ;;  %612 = vmatpush.msra.mxu3 %v337_v33 }
  0x2b   : > { %417 = vmatmul.f32.vlgmr.msra.gmra.mxu2 %v321_v34  ;;  %441 = vmatmul.f32.vlgmr.msra.gmra.mxu3 %v329_v35  ;;  %v206_v34 = vld [vmem:[%s699_s13 + $0x28] sm:$0xff]  ;;  %v325_v36 = vmax.f32 %v293_v28, 0.0  ;;  %v333_v37 = vmax.f32 %v301_v29, 0.0 }
  0x2c   : > { %368 = vmatpush.msra.mxu0 %v337_v33  ;;  %610 = vmatpush.msra.mxu1 %v337_v33  ;;  %v285_v33 = vadd.f32 %v723_v18, %v249_v27  ;;  %v214_v35 = vld [vmem:[%s699_s13 + $0x68] sm:$0xff]  ;;  %v242_v42 = vmul.f32 %v707_v10, %v206_v34 }
  0x2d   : > { %369 = vmatmul.f32.vlgmr.msra.gmra.mxu0 %v305_v38  ;;  %393 = vmatmul.f32.vlgmr.msra.gmra.mxu1 %v313_v39  ;;  %v258_v38 = vmul.f32 %v707_v10, %v222_v30  ;;  %v266_v39 = vmul.f32 %v707_v10, %v230_v31  ;;  %v250_v43 = vmul.f32 %v707_v10, %v214_v35 }
  0x2e   : > { %v317_v41 = vmax.f32 %v285_v33, 0.0  ;;  %v278_v48 = vadd.f32 %v723_v18, %v242_v42 }
  0x2f   : > { %v294_v44 = vadd.f32 %v723_v18, %v258_v38  ;;  %v302_v45 = vadd.f32 %v723_v18, %v266_v39  ;;  %v286_v49 = vadd.f32 %v723_v18, %v250_v43 }
  0x30   : > { %v310_v56 = vmax.f32 %v278_v48, 0.0 }
  0x31   : > { %v326_v52 = vmax.f32 %v294_v44, 0.0  ;;  %v334_v53 = vmax.f32 %v302_v45, 0.0  ;;  %v318_v57 = vmax.f32 %v286_v49, 0.0 }
  0x33   : > { %420 = vmatmul.f32.gmra.mxu2 %v322_v50  ;;  %444 = vmatmul.f32.gmra.mxu3 %v330_v51  ;;  %v207_v50 = vld [vmem:[%s699_s13 + $0x30] sm:$0xff] }
  0x34   : > { %v215_v51 = vld [vmem:[%s699_s13 + $0x70] sm:$0xff]  ;;  %v243_v58 = vmul.f32 %v707_v10, %v207_v50 }
  0x35   : > { %372 = vmatmul.f32.gmra.mxu0 %v306_v54  ;;  %396 = vmatmul.f32.gmra.mxu1 %v314_v55  ;;  %v259_v54 = vmul.f32 %v707_v10, %v223_v46  ;;  %v267_v55 = vmul.f32 %v707_v10, %v231_v47  ;;  %v251_v59 = vmul.f32 %v707_v10, %v215_v51 }
  0x36   : > { %v279_v0 = vadd.f32 %v723_v18, %v243_v58 }
  0x37   : > { %v295_v60 = vadd.f32 %v723_v18, %v259_v54  ;;  %v303_v61 = vadd.f32 %v723_v18, %v267_v55  ;;  %v287_v1 = vadd.f32 %v723_v18, %v251_v59 }
  0x38   : > { %v311_v8 = vmax.f32 %v279_v0, 0.0 }
  0x39   : > { %v327_v4 = vmax.f32 %v295_v60, 0.0  ;;  %v335_v5 = vmax.f32 %v303_v61, 0.0  ;;  %v319_v9 = vmax.f32 %v287_v1, 0.0 }
  0x3b   : > { %423 = vmatmul.f32.gmra.mxu2 %v323_v2  ;;  %447 = vmatmul.f32.gmra.mxu3 %v331_v3  ;;  %v208_v2 = vld [vmem:[%s699_s13 + $0x38] sm:$0xff] }
  0x3c   : > { %v216_v3 = vld [vmem:[%s699_s13 + $0x78] sm:$0xff]  ;;  %v244_v11 = vmul.f32 %v707_v10, %v208_v2 }
  0x3d   : > { %375 = vmatmul.f32.gmra.mxu0 %v307_v6  ;;  %399 = vmatmul.f32.gmra.mxu1 %v315_v7  ;;  %v260_v6 = vmul.f32 %v707_v10, %v224_v62  ;;  %v268_v7 = vmul.f32 %v707_v10, %v232_v63  ;;  %v252_v12 = vmul.f32 %v707_v10, %v216_v3 }
  0x3e   : > { %v280_v15 = vadd.f32 %v723_v18, %v244_v11 }
  0x3f   : > { %v296_v13 = vadd.f32 %v723_v18, %v260_v6  ;;  %v304_v14 = vadd.f32 %v723_v18, %v268_v7  ;;  %v288_v16 = vadd.f32 %v723_v18, %v252_v12 }
  0x41   : > { %v328_v17 = vmax.f32 %v296_v13, 0.0  ;;  %v336_v19 = vmax.f32 %v304_v14, 0.0 }
  0x43   : > { %426 = vmatmul.f32.gmra.mxu2 %v324_v20  ;;  %450 = vmatmul.f32.gmra.mxu3 %v332_v21  ;;  %v312_v20 = vmax.f32 %v280_v15, 0.0  ;;  %v320_v21 = vmax.f32 %v288_v16, 0.0 }
  0x45   : > { %378 = vmatmul.f32.gmra.mxu0 %v308_v24  ;;  %402 = vmatmul.f32.gmra.mxu1 %v316_v25 }
  0x4b   : > { %429 = vmatmul.f32.gmra.mxu2 %v325_v36  ;;  %453 = vmatmul.f32.gmra.mxu3 %v333_v37 }
  0x4d   : > { %381 = vmatmul.f32.gmra.mxu0 %v309_v40  ;;  %405 = vmatmul.f32.gmra.mxu1 %v317_v41 }
  0x53   : > { %432 = vmatmul.f32.gmra.mxu2 %v326_v52  ;;  %456 = vmatmul.f32.gmra.mxu3 %v334_v53 }
  0x55   : > { %384 = vmatmul.f32.gmra.mxu0 %v310_v56  ;;  %408 = vmatmul.f32.gmra.mxu1 %v318_v57 }
  0x5b   : > { %435 = vmatmul.f32.gmra.mxu2 %v327_v4  ;;  %459 = vmatmul.f32.gmra.mxu3 %v335_v5 }
  0x5d   : > { %387 = vmatmul.f32.gmra.mxu0 %v311_v8  ;;  %411 = vmatmul.f32.gmra.mxu1 %v319_v9 }
  0x63   : > { %438 = vmatmul.f32.gmra.mxu2 %v328_v17  ;;  %462 = vmatmul.f32.gmra.mxu3 %v336_v19 }
  0x65   : > { %390 = vmatmul.f32.gmra.mxu0 %v312_v20  ;;  %414 = vmatmul.f32.gmra.mxu1 %v320_v21 }
  0xaa   : > { %v370_v10 = vpop.f32.mrf.mxu0  ;;  %v394_v18 = vpop.f32.mrf.mxu1 }
  0xab   : > { %466 = vst [vmem:[%s833_s11] sm:$0xff] %v370_v10 }
  0xac   : > { %474 = vst [vmem:[%s833_s11 + $0x40] sm:$0xff] %v394_v18 }
  0xae   : > { %v418_v22 = vpop.f32.mrf.mxu2  ;;  %v442_v23 = vpop.f32.mrf.mxu3 }
  0xaf   : > { %482 = vst [vmem:[%s833_s11 + $0x80] sm:$0xff] %v418_v22 }
  0xb0   : > { %490 = vst [vmem:[%s833_s11 + $0xc0] sm:$0xff] %v442_v23 }
  0xb2   : > { %v373_v24 = vpop.f32.mrf.mxu0  ;;  %v397_v25 = vpop.f32.mrf.mxu1 }
  0xb3   : > { %467 = vst [vmem:[%s833_s11 + $0x8] sm:$0xff] %v373_v24 }
  0xb4   : > { %475 = vst [vmem:[%s833_s11 + $0x48] sm:$0xff] %v397_v25 }
  0xb6   : > { %v421_v26 = vpop.f32.mrf.mxu2  ;;  %v445_v27 = vpop.f32.mrf.mxu3 }
  0xb7   : > { %483 = vst [vmem:[%s833_s11 + $0x88] sm:$0xff] %v421_v26 }
  0xb8   : > { %491 = vst [vmem:[%s833_s11 + $0xc8] sm:$0xff] %v445_v27 }
  0xba   : > { %v376_v28 = vpop.f32.mrf.mxu0  ;;  %v400_v29 = vpop.f32.mrf.mxu1 }
  0xbb   : > { %468 = vst [vmem:[%s833_s11 + $0x10] sm:$0xff] %v376_v28 }
  0xbc   : > { %476 = vst [vmem:[%s833_s11 + $0x50] sm:$0xff] %v400_v29 }
  0xbe   : > { %v424_v30 = vpop.f32.mrf.mxu2  ;;  %v448_v31 = vpop.f32.mrf.mxu3 }
  0xbf   : > { %484 = vst [vmem:[%s833_s11 + $0x90] sm:$0xff] %v424_v30 }
  0xc0   : > { %492 = vst [vmem:[%s833_s11 + $0xd0] sm:$0xff] %v448_v31 }
  0xc2   : > { %v379_v32 = vpop.f32.mrf.mxu0  ;;  %v403_v33 = vpop.f32.mrf.mxu1 }
  0xc3   : > { %469 = vst [vmem:[%s833_s11 + $0x18] sm:$0xff] %v379_v32 }
  0xc4   : > { %477 = vst [vmem:[%s833_s11 + $0x58] sm:$0xff] %v403_v33 }
  0xc6   : > { %v427_v34 = vpop.f32.mrf.mxu2  ;;  %v451_v35 = vpop.f32.mrf.mxu3 }
  0xc7   : > { %485 = vst [vmem:[%s833_s11 + $0x98] sm:$0xff] %v427_v34 }
  0xc8   : > { %493 = vst [vmem:[%s833_s11 + $0xd8] sm:$0xff] %v451_v35 }
  0xca   : > { %v382_v36 = vpop.f32.mrf.mxu0  ;;  %v406_v37 = vpop.f32.mrf.mxu1 }
  0xcb   : > { %470 = vst [vmem:[%s833_s11 + $0x20] sm:$0xff] %v382_v36 }
  0xcc   : > { %478 = vst [vmem:[%s833_s11 + $0x60] sm:$0xff] %v406_v37 }
  0xce   : > { %v430_v38 = vpop.f32.mrf.mxu2  ;;  %v454_v39 = vpop.f32.mrf.mxu3 }
  0xcf   : > { %486 = vst [vmem:[%s833_s11 + $0xa0] sm:$0xff] %v430_v38 }
  0xd0   : > { %494 = vst [vmem:[%s833_s11 + $0xe0] sm:$0xff] %v454_v39 }
  0xd2   : > { %v385_v40 = vpop.f32.mrf.mxu0  ;;  %v409_v41 = vpop.f32.mrf.mxu1 }
  0xd3   : > { %471 = vst [vmem:[%s833_s11 + $0x28] sm:$0xff] %v385_v40 }
  0xd4   : > { %479 = vst [vmem:[%s833_s11 + $0x68] sm:$0xff] %v409_v41 }
  0xd6   : > { %v433_v42 = vpop.f32.mrf.mxu2  ;;  %v457_v43 = vpop.f32.mrf.mxu3 }
  0xd7   : > { %487 = vst [vmem:[%s833_s11 + $0xa8] sm:$0xff] %v433_v42 }
  0xd8   : > { %495 = vst [vmem:[%s833_s11 + $0xe8] sm:$0xff] %v457_v43 }
  0xda   : > { %v388_v44 = vpop.f32.mrf.mxu0  ;;  %v412_v45 = vpop.f32.mrf.mxu1 }
  0xdb   : > { %472 = vst [vmem:[%s833_s11 + $0x30] sm:$0xff] %v388_v44 }
  0xdc   : > { %480 = vst [vmem:[%s833_s11 + $0x70] sm:$0xff] %v412_v45 }
  0xde   : > { %v436_v46 = vpop.f32.mrf.mxu2  ;;  %v460_v47 = vpop.f32.mrf.mxu3 }
  0xdf   : > { %488 = vst [vmem:[%s833_s11 + $0xb0] sm:$0xff] %v436_v46 }
  0xe0   : > { %496 = vst [vmem:[%s833_s11 + $0xf0] sm:$0xff] %v460_v47 }
  0xe2   : > { %v391_v48 = vpop.f32.mrf.mxu0  ;;  %v415_v49 = vpop.f32.mrf.mxu1 }
  0xe3   : > { %473 = vst [vmem:[%s833_s11 + $0x38] sm:$0xff] %v391_v48 }
  0xe4   : > { %481 = vst [vmem:[%s833_s11 + $0x78] sm:$0xff] %v415_v49 }
  0xe6   : > { %v439_v50 = vpop.f32.mrf.mxu2  ;;  %v463_v51 = vpop.f32.mrf.mxu3 }
  0xe7   : > { %489 = vst [vmem:[%s833_s11 + $0xb8] sm:$0xff] %v439_v50 }
  0xe8   : > { %497 = vst [vmem:[%s833_s11 + $0xf8] sm:$0xff] %v463_v51 }
  0xe9 PF: > { %s14_s15 = sadd.s32 1, %s629_s15  }
  0xea   : > { %p11_p4 = scmp.ge.s32.totalorder %s14_s15, 4  }
  0xec   :  { %13 = sbr.rel (!%p11_p4) target bundleno = 1 (0x1), region = 66 }

// kernel: preact_bottleneck.7
= control target key start
LH: loop header
LB: loop body
LE: loop exit
PB: predicated region body
PF: predicated region fallthrough
CT: control target
= control target key end

     0   :  { %s756_s18 = smov 0   ;;  %s1059_s0 = inlined_call_operand.vmem [shape: f32[512,128], index: 0, kind: input, shape index: {}]   ;;  %s1060_s1 = inlined_call_operand.vmem [shape: f32[1,128], index: 1, kind: input, shape index: {}]   ;;  %s1061_s2 = inlined_call_operand.vmem [shape: f32[1,128], index: 2, kind: input, shape index: {}]   ;;  %s1062_s3 = inlined_call_operand.vmem [shape: f32[128,128], index: 3, kind: input, shape index: {}]   ;;  %s1063_s4 = inlined_call_operand.vmem [shape: f32[512,128], index: 4, kind: input, shape index: {}, may-alias: {4,5}]   ;;  %s1064_s5 = inlined_call_operand.vmem [shape: f32[512,128], index: 5, kind: output, shape index: {}, may-alias: {4,5}]  }
   0x1 LB: > { %s647_s19 = sadd.s32 4294967295, %s724_s18   ;;  %p651_p0 = scmp.ge.s32.totalorder %s724_s18, 1  ;;  %s724_s18 = sphi %s756_s18, %s15_s18  }
   0x2   : > { %p199_p1 = scmp.lt.s32.totalorder %s724_s18, 3 }
   0x4   : > { %p200_p2 = pnand %p651_p0, %p199_p1 }
   0x5   : > { %s652_s24 = sshll.u32 (!%p200_p2), %s647_s19, 5 }
   0x6   : > { %203 = sbr.rel (%p200_p2) target bundleno = 235 (0xeb), region = 40  ;;  %p233_p3 = scmp.lt.s32.totalorder (!%p200_p2), %s652_s24, 63 }
   0xb   : > { %v401_v0 = vld [vmem:[%s1062_s3 + $0x78] sm:$0xff]  ;;  %v400_v1 = vld [vmem:[%s1062_s3 + $0x70] sm:$0xff]  ;;  %v399_v2 = vld [vmem:[%s1062_s3 + $0x68] sm:$0xff]  ;;  %s1066_s24 = smov (!%p233_p3, %s652_s24), 63 }
   0xc   : > { %661 = vmatpush.msra.mxu2 %v401_v0  ;;  %662 = vmatpush.msra.mxu3 %v401_v0  ;;  %v398_v3 = vld [vmem:[%s1062_s3 + $0x60] sm:$0xff]  ;;  %v397_v4 = vld [vmem:[%s1062_s3 + $0x58] sm:$0xff]  ;;  %v396_v5 = vld [vmem:[%s1062_s3 + $0x50] sm:$0xff]  ;;  %s785_s10 = sshll.u32 %s1066_s24, 3 }
   0xd   : > { %434 = vmatpush.msra.mxu0 %v401_v0  ;;  %660 = vmatpush.msra.mxu1 %v401_v0  ;;  %v395_v6 = vld [vmem:[%s1062_s3 + $0x48] sm:$0xff]  ;;  %v394_v7 = vld [vmem:[%s1062_s3 + $0x40] sm:$0xff]  ;;  %v393_v8 = vld [vmem:[%s1062_s3 + $0x38] sm:$0xff]  ;;  %s797_s17 = scalar_lea.vmem %s1059_s0, %s785_s10  ;;  %s930_s15 = scalar_lea.vmem %s1063_s4, %s785_s10 }
   0xe   : > { %664 = vmatpush.msra.mxu2 %v400_v1  ;;  %665 = vmatpush.msra.mxu3 %v400_v1  ;;  %v392_v9 = vld [vmem:[%s1062_s3 + $0x30] sm:$0xff]  ;;  %v805_v10 = vld [vmem:[%s1060_s1] ss:$0 sm:$0xff]  ;;  %v391_v13 = vld [vmem:[%s1062_s3 + $0x28] sm:$0xff]  ;;  %s993_s19 = scalar_lea.vmem %s1064_s5, %s785_s10 }
   0xf   : > { %435 = vmatpush.msra.mxu0 %v400_v1  ;;  %663 = vmatpush.msra.mxu1 %v400_v1  ;;  %v266_v11 = vld [vmem:[%s797_s17 + $0x80] sm:$0xff]  ;;  %v389_v20 = vld [vmem:[%s1062_s3 + $0x18] sm:$0xff]  ;;  %v388_v23 = vld [vmem:[%s1062_s3 + $0x10] sm:$0xff] }
  0x10   : > { %667 = vmatpush.msra.mxu2 %v399_v2  ;;  %668 = vmatpush.msra.mxu3 %v399_v2  ;;  %v274_v12 = vld [vmem:[%s797_s17 + $0xc0] sm:$0xff]  ;;  %v302_v17 = vmul.f32 %v805_v10, %v266_v11  ;;  %v267_v26 = vld [vmem:[%s797_s17 + $0x88] sm:$0xff]  ;;  %v268_v44 = vld [vmem:[%s797_s17 + $0x90] sm:$0xff] }
  0x11   : > { %436 = vmatpush.msra.mxu0 %v399_v2  ;;  %666 = vmatpush.msra.mxu1 %v399_v2  ;;  %v250_v14 = vld [vmem:[%s797_s17] sm:$0xff]  ;;  %v310_v19 = vmul.f32 %v805_v10, %v274_v12  ;;  %v275_v27 = vld [vmem:[%s797_s17 + $0xc8] sm:$0xff]  ;;  %v303_v36 = vmul.f32 %v805_v10, %v267_v26  ;;  %v276_v45 = vld [vmem:[%s797_s17 + $0xd0] sm:$0xff]  ;;  %v304_v52 = vmul.f32 %v805_v10, %v268_v44 }
  0x12   : > { %670 = vmatpush.msra.mxu2 %v398_v3  ;;  %671 = vmatpush.msra.mxu3 %v398_v3  ;;  %v258_v15 = vld [vmem:[%s797_s17 + $0x40] sm:$0xff]  ;;  %v286_v21 = vmul.f32 %v805_v10, %v250_v14  ;;  %v387_v28 = vld [vmem:[%s1062_s3 + $0x8] sm:$0xff]  ;;  %v311_v37 = vmul.f32 %v805_v10, %v275_v27  ;;  %v252_v48 = vld [vmem:[%s797_s17 + $0x10] sm:$0xff]  ;;  %v312_v53 = vmul.f32 %v805_v10, %v276_v45 }
  0x13   : > { %437 = vmatpush.msra.mxu0 %v398_v3  ;;  %669 = vmatpush.msra.mxu1 %v398_v3  ;;  %v390_v16 = vld [vmem:[%s1062_s3 + $0x20] sm:$0xff]  ;;  %v294_v22 = vmul.f32 %v805_v10, %v258_v15  ;;  %v251_v31 = vld [vmem:[%s797_s17 + $0x8] sm:$0xff]  ;;  %v260_v49 = vld [vmem:[%s797_s17 + $0x50] sm:$0xff]  ;;  %v288_v56 = vmul.f32 %v805_v10, %v252_v48 }
  0x14   : > { %673 = vmatpush.msra.mxu2 %v397_v4  ;;  %674 = vmatpush.msra.mxu3 %v397_v4  ;;  %v821_v18 = vld [vmem:[%s1061_s2] ss:$0 sm:$0xff]  ;;  %v259_v32 = vld [vmem:[%s797_s17 + $0x48] sm:$0xff]  ;;  %v287_v40 = vmul.f32 %v805_v10, %v251_v31  ;;  %v296_v57 = vmul.f32 %v805_v10, %v260_v49  ;;  %v269_v60 = vld [vmem:[%s797_s17 + $0x98] sm:$0xff] }
  0x15   : > { %438 = vmatpush.msra.mxu0 %v397_v4  ;;  %672 = vmatpush.msra.mxu1 %v397_v4  ;;  %v338_v24 = vadd.f32 %v821_v18, %v302_v17  ;;  %v346_v25 = vadd.f32 %v821_v18, %v310_v19  ;;  %v322_v29 = vadd.f32 %v821_v18, %v286_v21  ;;  %v386_v33 = vld [vmem:[%s1062_s3] sm:$0xff]  ;;  %v277_v61 = vld [vmem:[%s797_s17 + $0xd8] sm:$0xff]  ;;  %v279_v31 = vld [vmem:[%s797_s17 + $0xe8] sm:$0xff] }
  0x16   : > { %676 = vmatpush.msra.mxu2 %v396_v5  ;;  %677 = vmatpush.msra.mxu3 %v396_v5  ;;  %v330_v30 = vadd.f32 %v821_v18, %v294_v22  ;;  %v295_v41 = vmul.f32 %v805_v10, %v259_v32  ;;  %v339_v42 = vadd.f32 %v821_v18, %v303_v36  ;;  %v253_v0 = vld [vmem:[%s797_s17 + $0x18] sm:$0xff]  ;;  %v278_v14 = vld [vmem:[%s797_s17 + $0xe0] sm:$0xff] }
  0x17   : > { %439 = vmatpush.msra.mxu0 %v396_v5  ;;  %675 = vmatpush.msra.mxu1 %v396_v5  ;;  %v370_v34 = vmax.f32 %v338_v24, 0.0  ;;  %v378_v35 = vmax.f32 %v346_v25, 0.0  ;;  %v354_v38 = vmax.f32 %v322_v29, 0.0  ;;  %v347_v43 = vadd.f32 %v821_v18, %v311_v37  ;;  %v261_v1 = vld [vmem:[%s797_s17 + $0x58] sm:$0xff]  ;;  %v254_v17 = vld [vmem:[%s797_s17 + $0x20] sm:$0xff] }
  0x18   : > { %679 = vmatpush.msra.mxu2 %v395_v6  ;;  %680 = vmatpush.msra.mxu3 %v395_v6  ;;  %v362_v39 = vmax.f32 %v330_v30, 0.0  ;;  %v323_v46 = vadd.f32 %v821_v18, %v287_v40  ;;  %v331_v47 = vadd.f32 %v821_v18, %v295_v41  ;;  %v371_v50 = vmax.f32 %v339_v42, 0.0  ;;  %v262_v19 = vld [vmem:[%s797_s17 + $0x60] sm:$0xff]  ;;  %v271_v30 = vld [vmem:[%s797_s17 + $0xa8] sm:$0xff] }
  0x19   : > { %440 = vmatpush.msra.mxu0 %v395_v6  ;;  %678 = vmatpush.msra.mxu1 %v395_v6  ;;  %v379_v51 = vmax.f32 %v347_v43, 0.0  ;;  %v340_v58 = vadd.f32 %v821_v18, %v304_v52  ;;  %v348_v59 = vadd.f32 %v821_v18, %v312_v53  ;;  %v324_v62 = vadd.f32 %v821_v18, %v288_v56 }
  0x1a   : > { %682 = vmatpush.msra.mxu2 %v394_v7  ;;  %683 = vmatpush.msra.mxu3 %v394_v7  ;;  %v355_v54 = vmax.f32 %v323_v46, 0.0  ;;  %v363_v55 = vmax.f32 %v331_v47, 0.0  ;;  %v332_v63 = vadd.f32 %v821_v18, %v296_v57  ;;  %v305_v4 = vmul.f32 %v805_v10, %v269_v60  ;;  %v272_v46 = vld [vmem:[%s797_s17 + $0xb0] sm:$0xff] }
  0x1b   : > { %441 = vmatpush.msra.mxu0 %v394_v7  ;;  %681 = vmatpush.msra.mxu1 %v394_v7  ;;  %v372_v2 = vmax.f32 %v340_v58, 0.0  ;;  %v380_v3 = vmax.f32 %v348_v59, 0.0  ;;  %v313_v5 = vmul.f32 %v805_v10, %v277_v61  ;;  %v356_v6 = vmax.f32 %v324_v62, 0.0  ;;  %v280_v47 = vld [vmem:[%s797_s17 + $0xf0] sm:$0xff]  ;;  %v273_v62 = vld [vmem:[%s797_s17 + $0xb8] sm:$0xff] }
  0x1c   : > { %685 = vmatpush.msra.mxu2 %v393_v8  ;;  %686 = vmatpush.msra.mxu3 %v393_v8  ;;  %v364_v7 = vmax.f32 %v332_v63, 0.0  ;;  %v341_v11 = vadd.f32 %v821_v18, %v305_v4  ;;  %v290_v26 = vmul.f32 %v805_v10, %v254_v17  ;;  %v298_v27 = vmul.f32 %v805_v10, %v262_v19  ;;  %v281_v63 = vld [vmem:[%s797_s17 + $0xf8] sm:$0xff] }
  0x1d   : > { %442 = vmatpush.msra.mxu0 %v393_v8  ;;  %684 = vmatpush.msra.mxu1 %v393_v8  ;;  %v289_v8 = vmul.f32 %v805_v10, %v253_v0  ;;  %v349_v12 = vadd.f32 %v821_v18, %v313_v5 }
  0x1e   : > { %688 = vmatpush.msra.mxu2 %v392_v9  ;;  %689 = vmatpush.msra.mxu3 %v392_v9  ;;  %v326_v32 = vadd.f32 %v821_v18, %v290_v26  ;;  %v404_v26 = vld [vmem:[%s930_s15 + $0x10] sm:$0xff] }
  0x1f   : > { %443 = vmatpush.msra.mxu0 %v392_v9  ;;  %687 = vmatpush.msra.mxu1 %v392_v9  ;;  %v297_v9 = vmul.f32 %v805_v10, %v261_v1  ;;  %v325_v15 = vadd.f32 %v821_v18, %v289_v8  ;;  %v381_v21 = vmax.f32 %v349_v12, 0.0 }
  0x20   : > { %691 = vmatpush.msra.mxu2 %v391_v13  ;;  %692 = vmatpush.msra.mxu3 %v391_v13  ;;  %v358_v40 = vmax.f32 %v326_v32, 0.0  ;;  %v945_v32 = vld [vmem:[%s930_s15 + $0x98] sm:$0xff] }
  0x21   : > { %444 = vmatpush.msra.mxu0 %v391_v13  ;;  %690 = vmatpush.msra.mxu1 %v391_v13  ;;  %v270_v13 = vld [vmem:[%s797_s17 + $0xa0] sm:$0xff]  ;;  %v357_v24 = vmax.f32 %v325_v15, 0.0 }
  0x22   : > { %694 = vmatpush.msra.mxu2 %v390_v16  ;;  %695 = vmatpush.msra.mxu3 %v390_v16  ;;  %v306_v22 = vmul.f32 %v805_v10, %v270_v13 }
  0x23   : > { %445 = vmatpush.msra.mxu0 %v390_v16  ;;  %693 = vmatpush.msra.mxu1 %v390_v16  ;;  %v333_v16 = vadd.f32 %v821_v18, %v297_v9 }
  0x24   : > { %697 = vmatpush.msra.mxu2 %v389_v20  ;;  %698 = vmatpush.msra.mxu3 %v389_v20 }
  0x25   : > { %446 = vmatpush.msra.mxu0 %v389_v20  ;;  %696 = vmatpush.msra.mxu1 %v389_v20  ;;  %v373_v20 = vmax.f32 %v341_v11, 0.0  ;;  %v365_v25 = vmax.f32 %v333_v16, 0.0 }
  0x26   : > { %700 = vmatpush.msra.mxu2 %v388_v23  ;;  %701 = vmatpush.msra.mxu3 %v388_v23 }
  0x27   : > { %447 = vmatpush.msra.mxu0 %v388_v23  ;;  %699 = vmatpush.msra.mxu1 %v388_v23  ;;  %v314_v23 = vmul.f32 %v805_v10, %v278_v14 }
  0x28   : > { %703 = vmatpush.msra.mxu2 %v387_v28  ;;  %704 = vmatpush.msra.mxu3 %v387_v28 }
  0x29   : > { %448 = vmatpush.msra.mxu0 %v387_v28  ;;  %702 = vmatpush.msra.mxu1 %v387_v28  ;;  %v342_v28 = vadd.f32 %v821_v18, %v306_v22  ;;  %v350_v29 = vadd.f32 %v821_v18, %v314_v23  ;;  %v403_v22 = vld [vmem:[%s930_s15 + $0x8] sm:$0xff] }
  0x2a   : > { %706 = vmatpush.msra.mxu2 %v386_v33  ;;  %707 = vmatpush.msra.mxu3 %v386_v33  ;;  %v411_v23 = vld [vmem:[%s930_s15 + $0x48] sm:$0xff] }
  0x2b   : > { %498 = vmatmul.f32.vlgmr.msra.gmra.mxu2 %v370_v34  ;;  %522 = vmatmul.f32.vlgmr.msra.gmra.mxu3 %v378_v35  ;;  %v255_v34 = vld [vmem:[%s797_s17 + $0x28] sm:$0xff]  ;;  %v374_v36 = vmax.f32 %v342_v28, 0.0  ;;  %v382_v37 = vmax.f32 %v350_v29, 0.0  ;;  %v420_v28 = vld [vmem:[%s930_s15 + $0x90] sm:$0xff] }
  0x2c   : > { %449 = vmatpush.msra.mxu0 %v386_v33  ;;  %705 = vmatpush.msra.mxu1 %v386_v33  ;;  %v334_v33 = vadd.f32 %v821_v18, %v298_v27  ;;  %v263_v35 = vld [vmem:[%s797_s17 + $0x68] sm:$0xff]  ;;  %v291_v42 = vmul.f32 %v805_v10, %v255_v34  ;;  %v412_v27 = vld [vmem:[%s930_s15 + $0x50] sm:$0xff]  ;;  %v951_v34 = vld [vmem:[%s930_s15 + $0x20] sm:$0xff] }
  0x2d   : > { %450 = vmatmul.f32.vlgmr.msra.gmra.mxu0 %v354_v38  ;;  %474 = vmatmul.f32.vlgmr.msra.gmra.mxu1 %v362_v39  ;;  %v307_v38 = vmul.f32 %v805_v10, %v271_v30  ;;  %v315_v39 = vmul.f32 %v805_v10, %v279_v31  ;;  %v299_v43 = vmul.f32 %v805_v10, %v263_v35  ;;  %v428_v29 = vld [vmem:[%s930_s15 + $0xd0] sm:$0xff]  ;;  %v405_v30 = vld [vmem:[%s930_s15 + $0x18] sm:$0xff]  ;;  %v954_v35 = vld [vmem:[%s930_s15 + $0x60] sm:$0xff] }
  0x2e   : > { %v366_v41 = vmax.f32 %v334_v33, 0.0  ;;  %v327_v48 = vadd.f32 %v821_v18, %v291_v42  ;;  %v413_v31 = vld [vmem:[%s930_s15 + $0x58] sm:$0xff]  ;;  %v975_v42 = vld [vmem:[%s930_s15 + $0x30] sm:$0xff] }
  0x2f   : > { %v343_v44 = vadd.f32 %v821_v18, %v307_v38  ;;  %v351_v45 = vadd.f32 %v821_v18, %v315_v39  ;;  %v335_v49 = vadd.f32 %v821_v18, %v299_v43  ;;  %v948_v33 = vld [vmem:[%s930_s15 + $0xd8] sm:$0xff]  ;;  %v963_v38 = vld [vmem:[%s930_s15 + $0x28] sm:$0xff]  ;;  %v978_v43 = vld [vmem:[%s930_s15 + $0x70] sm:$0xff] }
  0x30   : > { %v359_v56 = vmax.f32 %v327_v48, 0.0  ;;  %v966_v39 = vld [vmem:[%s930_s15 + $0x68] sm:$0xff] }
  0x31   : > { %v375_v52 = vmax.f32 %v343_v44, 0.0  ;;  %v383_v53 = vmax.f32 %v351_v45, 0.0  ;;  %v367_v57 = vmax.f32 %v335_v49, 0.0  ;;  %v981_v44 = vld [vmem:[%s930_s15 + $0xb0] sm:$0xff]  ;;  %v996_v49 = vld [vmem:[%s930_s15 + $0x78] sm:$0xff] }
  0x32   : > { %v984_v45 = vld [vmem:[%s930_s15 + $0xf0] sm:$0xff] }
  0x33   : > { %501 = vmatmul.f32.gmra.mxu2 %v371_v50  ;;  %525 = vmatmul.f32.gmra.mxu3 %v379_v51  ;;  %v256_v50 = vld [vmem:[%s797_s17 + $0x30] sm:$0xff] }
  0x34   : > { %v264_v51 = vld [vmem:[%s797_s17 + $0x70] sm:$0xff]  ;;  %v292_v58 = vmul.f32 %v805_v10, %v256_v50  ;;  %v999_v50 = vld [vmem:[%s930_s15 + $0xb8] sm:$0xff] }
  0x35   : > { %453 = vmatmul.f32.gmra.mxu0 %v355_v54  ;;  %477 = vmatmul.f32.gmra.mxu1 %v363_v55  ;;  %v308_v54 = vmul.f32 %v805_v10, %v272_v46  ;;  %v316_v55 = vmul.f32 %v805_v10, %v280_v47  ;;  %v300_v59 = vmul.f32 %v805_v10, %v264_v51  ;;  %v987_v46 = vld [vmem:[%s930_s15 + $0x38] sm:$0xff] }
  0x36   : > { %v328_v0 = vadd.f32 %v821_v18, %v292_v58  ;;  %v1002_v51 = vld [vmem:[%s930_s15 + $0xf8] sm:$0xff] }
  0x37   : > { %v344_v60 = vadd.f32 %v821_v18, %v308_v54  ;;  %v352_v61 = vadd.f32 %v821_v18, %v316_v55  ;;  %v336_v1 = vadd.f32 %v821_v18, %v300_v59  ;;  %v418_v54 = vld [vmem:[%s930_s15 + $0x80] sm:$0xff] }
  0x38   : > { %v360_v8 = vmax.f32 %v328_v0, 0.0  ;;  %v426_v55 = vld [vmem:[%s930_s15 + $0xc0] sm:$0xff] }
  0x39   : > { %v376_v4 = vmax.f32 %v344_v60, 0.0  ;;  %v384_v5 = vmax.f32 %v352_v61, 0.0  ;;  %v368_v9 = vmax.f32 %v336_v1, 0.0 }
  0x3b   : > { %504 = vmatmul.f32.gmra.mxu2 %v372_v2  ;;  %528 = vmatmul.f32.gmra.mxu3 %v380_v3  ;;  %v257_v2 = vld [vmem:[%s797_s17 + $0x38] sm:$0xff] }
  0x3c   : > { %v265_v3 = vld [vmem:[%s797_s17 + $0x78] sm:$0xff]  ;;  %v293_v11 = vmul.f32 %v805_v10, %v257_v2 }
  0x3d   : > { %456 = vmatmul.f32.gmra.mxu0 %v356_v6  ;;  %480 = vmatmul.f32.gmra.mxu1 %v364_v7  ;;  %v309_v6 = vmul.f32 %v805_v10, %v273_v62  ;;  %v317_v7 = vmul.f32 %v805_v10, %v281_v63  ;;  %v301_v12 = vmul.f32 %v805_v10, %v265_v3  ;;  %v402_v10 = vld [vmem:[%s930_s15] sm:$0xff] }
  0x3e   : > { %v329_v15 = vadd.f32 %v821_v18, %v293_v11 }
  0x3f   : > { %v345_v13 = vadd.f32 %v821_v18, %v309_v6  ;;  %v353_v14 = vadd.f32 %v821_v18, %v317_v7  ;;  %v337_v16 = vadd.f32 %v821_v18, %v301_v12  ;;  %v410_v18 = vld [vmem:[%s930_s15 + $0x40] sm:$0xff] }
  0x41   : > { %v377_v17 = vmax.f32 %v345_v13, 0.0  ;;  %v385_v19 = vmax.f32 %v353_v14, 0.0 }
  0x43   : > { %507 = vmatmul.f32.gmra.mxu2 %v373_v20  ;;  %531 = vmatmul.f32.gmra.mxu3 %v381_v21  ;;  %v361_v20 = vmax.f32 %v329_v15, 0.0  ;;  %v369_v21 = vmax.f32 %v337_v16, 0.0 }
  0x45   : > { %459 = vmatmul.f32.gmra.mxu0 %v357_v24  ;;  %483 = vmatmul.f32.gmra.mxu1 %v365_v25  ;;  %v419_v24 = vld [vmem:[%s930_s15 + $0x88] sm:$0xff] }
  0x46   : > { %v427_v25 = vld [vmem:[%s930_s15 + $0xc8] sm:$0xff] }
  0x4b   : > { %510 = vmatmul.f32.gmra.mxu2 %v374_v36  ;;  %534 = vmatmul.f32.gmra.mxu3 %v382_v37  ;;  %v957_v36 = vld [vmem:[%s930_s15 + $0xa0] sm:$0xff] }
  0x4c   : > { %v960_v37 = vld [vmem:[%s930_s15 + $0xe0] sm:$0xff] }
  0x4d   : > { %462 = vmatmul.f32.gmra.mxu0 %v358_v40  ;;  %486 = vmatmul.f32.gmra.mxu1 %v366_v41  ;;  %v969_v40 = vld [vmem:[%s930_s15 + $0xa8] sm:$0xff] }
  0x4e   : > { %v972_v41 = vld [vmem:[%s930_s15 + $0xe8] sm:$0xff] }
  0x53   : > { %513 = vmatmul.f32.gmra.mxu2 %v375_v52  ;;  %537 = vmatmul.f32.gmra.mxu3 %v383_v53 }
  0x55   : > { %465 = vmatmul.f32.gmra.mxu0 %v359_v56  ;;  %489 = vmatmul.f32.gmra.mxu1 %v367_v57 }
  0x5b   : > { %516 = vmatmul.f32.gmra.mxu2 %v376_v4  ;;  %540 = vmatmul.f32.gmra.mxu3 %v384_v5 }
  0x5d   : > { %468 = vmatmul.f32.gmra.mxu0 %v360_v8  ;;  %492 = vmatmul.f32.gmra.mxu1 %v368_v9 }
  0x63   : > { %519 = vmatmul.f32.gmra.mxu2 %v377_v17  ;;  %543 = vmatmul.f32.gmra.mxu3 %v385_v19 }
  0x65   : > { %471 = vmatmul.f32.gmra.mxu0 %v361_v20  ;;  %495 = vmatmul.f32.gmra.mxu1 %v369_v21 }
  0xaa   : > { %v451_v47 = vpop.f32.mrf.mxu0  ;;  %v475_v48 = vpop.f32.mrf.mxu1 }
  0xab   : > { %v452_v52 = vadd.f32 %v451_v47, %v402_v10  ;;  %v476_v53 = vadd.f32 %v475_v48, %v410_v18 }
  0xad   : > { %547 = vst [vmem:[%s993_s19] sm:$0xff] %v452_v52 }
  0xae   : > { %v499_v56 = vpop.f32.mrf.mxu2  ;;  %v523_v57 = vpop.f32.mrf.mxu3  ;;  %555 = vst [vmem:[%s993_s19 + $0x40] sm:$0xff] %v476_v53 }
  0xaf   : > { %v500_v58 = vadd.f32 %v499_v56, %v418_v54  ;;  %v524_v59 = vadd.f32 %v523_v57, %v426_v55 }
  0xb1   : > { %563 = vst [vmem:[%s993_s19 + $0x80] sm:$0xff] %v500_v58 }
  0xb2   : > { %v454_v60 = vpop.f32.mrf.mxu0  ;;  %v478_v61 = vpop.f32.mrf.mxu1  ;;  %571 = vst [vmem:[%s993_s19 + $0xc0] sm:$0xff] %v524_v59 }
  0xb3   : > { %v455_v62 = vadd.f32 %v454_v60, %v403_v22  ;;  %v479_v63 = vadd.f32 %v478_v61, %v411_v23 }
  0xb5   : > { %548 = vst [vmem:[%s993_s19 + $0x8] sm:$0xff] %v455_v62 }
  0xb6   : > { %v502_v0 = vpop.f32.mrf.mxu2  ;;  %v526_v1 = vpop.f32.mrf.mxu3  ;;  %556 = vst [vmem:[%s993_s19 + $0x48] sm:$0xff] %v479_v63 }
  0xb7   : > { %v503_v2 = vadd.f32 %v502_v0, %v419_v24  ;;  %v527_v3 = vadd.f32 %v526_v1, %v427_v25 }
  0xb9   : > { %564 = vst [vmem:[%s993_s19 + $0x88] sm:$0xff] %v503_v2 }
  0xba   : > { %v457_v4 = vpop.f32.mrf.mxu0  ;;  %v481_v5 = vpop.f32.mrf.mxu1  ;;  %572 = vst [vmem:[%s993_s19 + $0xc8] sm:$0xff] %v527_v3 }
  0xbb   : > { %v458_v6 = vadd.f32 %v457_v4, %v404_v26  ;;  %v482_v7 = vadd.f32 %v481_v5, %v412_v27 }
  0xbd   : > { %549 = vst [vmem:[%s993_s19 + $0x10] sm:$0xff] %v458_v6 }
  0xbe   : > { %v505_v8 = vpop.f32.mrf.mxu2  ;;  %v529_v9 = vpop.f32.mrf.mxu3  ;;  %557 = vst [vmem:[%s993_s19 + $0x50] sm:$0xff] %v482_v7 }
  0xbf   : > { %v506_v11 = vadd.f32 %v505_v8, %v420_v28  ;;  %v530_v12 = vadd.f32 %v529_v9, %v428_v29 }
  0xc1   : > { %565 = vst [vmem:[%s993_s19 + $0x90] sm:$0xff] %v506_v11 }
  0xc2   : > { %v460_v13 = vpop.f32.mrf.mxu0  ;;  %v484_v14 = vpop.f32.mrf.mxu1  ;;  %573 = vst [vmem:[%s993_s19 + $0xd0] sm:$0xff] %v530_v12 }
  0xc3   : > { %v461_v15 = vadd.f32 %v460_v13, %v405_v30  ;;  %v485_v16 = vadd.f32 %v484_v14, %v413_v31 }
  0xc5   : > { %550 = vst [vmem:[%s993_s19 + $0x18] sm:$0xff] %v461_v15 }
  0xc6   : > { %v508_v17 = vpop.f32.mrf.mxu2  ;;  %v532_v19 = vpop.f32.mrf.mxu3  ;;  %558 = vst [vmem:[%s993_s19 + $0x58] sm:$0xff] %v485_v16 }
  0xc7   : > { %v509_v20 = vadd.f32 %v508_v17, %v945_v32  ;;  %v533_v21 = vadd.f32 %v532_v19, %v948_v33 }
  0xc9   : > { %566 = vst [vmem:[%s993_s19 + $0x98] sm:$0xff] %v509_v20 }
  0xca   : > { %v463_v10 = vpop.f32.mrf.mxu0  ;;  %v487_v18 = vpop.f32.mrf.mxu1  ;;  %574 = vst [vmem:[%s993_s19 + $0xd8] sm:$0xff] %v533_v21 }
  0xcb   : > { %v464_v22 = vadd.f32 %v463_v10, %v951_v34  ;;  %v488_v23 = vadd.f32 %v487_v18, %v954_v35 }
  0xcd   : > { %551 = vst [vmem:[%s993_s19 + $0x20] sm:$0xff] %v464_v22 }
  0xce   : > { %v511_v24 = vpop.f32.mrf.mxu2  ;;  %v535_v25 = vpop.f32.mrf.mxu3  ;;  %559 = vst [vmem:[%s993_s19 + $0x60] sm:$0xff] %v488_v23 }
  0xcf   : > { %v512_v26 = vadd.f32 %v511_v24, %v957_v36  ;;  %v536_v27 = vadd.f32 %v535_v25, %v960_v37 }
  0xd1   : > { %567 = vst [vmem:[%s993_s19 + $0xa0] sm:$0xff] %v512_v26 }
  0xd2   : > { %v466_v28 = vpop.f32.mrf.mxu0  ;;  %v490_v29 = vpop.f32.mrf.mxu1  ;;  %575 = vst [vmem:[%s993_s19 + $0xe0] sm:$0xff] %v536_v27 }
  0xd3   : > { %v467_v30 = vadd.f32 %v466_v28, %v963_v38  ;;  %v491_v31 = vadd.f32 %v490_v29, %v966_v39 }
  0xd5   : > { %552 = vst [vmem:[%s993_s19 + $0x28] sm:$0xff] %v467_v30 }
  0xd6   : > { %v514_v32 = vpop.f32.mrf.mxu2  ;;  %v538_v33 = vpop.f32.mrf.mxu3  ;;  %560 = vst [vmem:[%s993_s19 + $0x68] sm:$0xff] %v491_v31 }
  0xd7   : > { %v515_v34 = vadd.f32 %v514_v32, %v969_v40  ;;  %v539_v35 = vadd.f32 %v538_v33, %v972_v41 }
  0xd9   : > { %568 = vst [vmem:[%s993_s19 + $0xa8] sm:$0xff] %v515_v34 }
  0xda   : > { %v469_v36 = vpop.f32.mrf.mxu0  ;;  %v493_v37 = vpop.f32.mrf.mxu1  ;;  %576 = vst [vmem:[%s993_s19 + $0xe8] sm:$0xff] %v539_v35 }
  0xdb   : > { %v470_v38 = vadd.f32 %v469_v36, %v975_v42  ;;  %v494_v39 = vadd.f32 %v493_v37, %v978_v43 }
  0xdd   : > { %553 = vst [vmem:[%s993_s19 + $0x30] sm:$0xff] %v470_v38 }
  0xde   : > { %v517_v47 = vpop.f32.mrf.mxu2  ;;  %v541_v48 = vpop.f32.mrf.mxu3  ;;  %561 = vst [vmem:[%s993_s19 + $0x70] sm:$0xff] %v494_v39 }
  0xdf   : > { %v518_v40 = vadd.f32 %v517_v47, %v981_v44  ;;  %v542_v41 = vadd.f32 %v541_v48, %v984_v45 }
  0xe1   : > { %569 = vst [vmem:[%s993_s19 + $0xb0] sm:$0xff] %v518_v40 }
  0xe2   : > { %v472_v52 = vpop.f32.mrf.mxu0  ;;  %v496_v53 = vpop.f32.mrf.mxu1  ;;  %577 = vst [vmem:[%s993_s19 + $0xf0] sm:$0xff] %v542_v41 }
  0xe3   : > { %v473_v54 = vadd.f32 %v472_v52, %v987_v46  ;;  %v497_v42 = vadd.f32 %v496_v53, %v996_v49 }
  0xe5   : > { %554 = vst [vmem:[%s993_s19 + $0x38] sm:$0xff] %v473_v54 }
  0xe6   : > { %v520_v43 = vpop.f32.mrf.mxu2  ;;  %v544_v55 = vpop.f32.mrf.mxu3  ;;  %562 = vst [vmem:[%s993_s19 + $0x78] sm:$0xff] %v497_v42 }
  0xe7   : > { %v521_v56 = vadd.f32 %v520_v43, %v999_v50  ;;  %v545_v57 = vadd.f32 %v544_v55, %v1002_v51 }
  0xe9   : > { %570 = vst [vmem:[%s993_s19 + $0xb8] sm:$0xff] %v521_v56 }
  0xea   : > { %578 = vst [vmem:[%s993_s19 + $0xf8] sm:$0xff] %v545_v57 }
  0xeb PF: > { %s15_s18 = sadd.s32 1, %s724_s18  }
  0xec   : > { %p12_p4 = scmp.ge.s32.totalorder %s15_s18, 4  }
  0xee   :  { %14 = sbr.rel (!%p12_p4) target bundleno = 1 (0x1), region = 73 }

// kernel: preact_bottleneck.6
= control target key start
LH: loop header
LB: loop body
LE: loop exit
PB: predicated region body
PF: predicated region fallthrough
CT: control target
= control target key end

     0   :  { %s2654_s21 = smov 0   ;;  %s4151_s0 = inlined_call_operand.vmem [shape: f32[2,16,16,128], index: 0, kind: input, shape index: {}]   ;;  %s4152_s1 = inlined_call_operand.vmem [shape: f32[1,128], index: 1, kind: input, shape index: {}]   ;;  %s4153_s2 = inlined_call_operand.vmem [shape: f32[1,128], index: 2, kind: input, shape index: {}]   ;;  %s4154_s3 = inlined_call_operand.vmem [shape: f32[3,3,128,128], index: 3, kind: input, shape index: {}]   ;;  %s4155_s4 = inlined_call_operand.vmem [shape: f32[2,16,16,128], index: 4, kind: output, shape index: {0}]   ;;  %s4156_s5 = inlined_call_operand.vmem [shape: f32[16,128], index: 5, kind: output, shape index: {1}]   ;;  %s4157_s6 = inlined_call_operand.vmem [shape: f32[16,128], index: 6, kind: output, shape index: {2}]  }
   0x1 LB: > { %s2500_s22 = sadd.s32 4294967295, %s2616_s21   ;;  %p2504_p0 = scmp.ge.s32.totalorder %s2616_s21, 1  ;;  %s2616_s21 = sphi %s2654_s21, %s17_s21  }
   0x2   : > { %p217_p1 = scmp.lt.s32.totalorder %s2616_s21, 3 }
   0x4   : > { %p218_p2 = pnand %p2504_p0, %p217_p1 }
   0x6   : > { %221 = sbr.rel (%p218_p2) target bundleno = 802 (0x322), region = 36 }
   0xb   : > { %v581_v0 = vld [vmem:[%s4154_s3 + $0xf8] sm:$0xff]  ;;  %v580_v1 = vld [vmem:[%s4154_s3 + $0xf0] sm:$0xff]  ;;  %p255_p3 = scmp.lt.s32.totalorder %s2500_s22, 1  ;;  %v2618_v2 = vmov 0.0   ;;  %v579_v3 = vld [vmem:[%s4154_s3 + $0xe8] sm:$0xff]  ;;  %vm742_vm0 = vcmask 1046528  }
   0xc   : > { %2515 = vmatpush.msra.mxu1 %v581_v0  ;;  %2516 = vmatpush.msra.mxu2 %v581_v0  ;;  %285 = vst [vmem:[#allocation2 + $0x60] sm:$0xff] %v2618_v2  ;;  %v578_v4 = vld [vmem:[%s4154_s3 + $0xe0] sm:$0xff]  ;;  %v577_v5 = vld [vmem:[%s4154_s3 + $0xd8] sm:$0xff]  ;;  %v576_v12 = vld [vmem:[%s4154_s3 + $0xd0] sm:$0xff]  ;;  %v743_v44 = vrot.slane %v2618_v2, 1  ;;  %vm1081_vm1 = vcmask 1045504  }
   0xd   : > { %2517 = vmatpush.msra.mxu3 %v581_v0  ;;  %855 = vmatpush.msra.mxu0 %v581_v0  ;;  %s4338_s22 = smov (!%p255_p3, %s2500_s22), 1  ;;  %286 = vst [vmem:[#allocation2 + $0x68] sm:$0xff] %v2618_v2  ;;  %v2694_v6 = vld [vmem:[%s4152_s1] ss:$0 sm:$0xff]  ;;  %v575_v15 = vld [vmem:[%s4154_s3 + $0xc8] sm:$0xff]  ;;  %v573_v19 = vld [vmem:[%s4154_s3 + $0xb8] sm:$0xff] }
   0xe   : > { %2518 = vmatpush.msra.mxu1 %v580_v1  ;;  %2519 = vmatpush.msra.mxu2 %v580_v1  ;;  %287 = vst [vmem:[#allocation2 + $0x70] sm:$0x3] %v2618_v2  ;;  %s2513_s7 = sshll.u32 %s4338_s22, 8  ;;  %v2704_v11 = vld [vmem:[%s4153_s2] ss:$0 sm:$0xff]  ;;  %v572_v20 = vld [vmem:[%s4154_s3 + $0xb0] sm:$0xff] }
   0xf   : > { %2520 = vmatpush.msra.mxu3 %v580_v1  ;;  %856 = vmatpush.msra.mxu0 %v580_v1  ;;  %273 = vst [vmem:[#allocation2] sm:$0xff] %v2618_v2  ;;  %s2689_s12 = scalar_lea.vmem %s4151_s0, %s2513_s7  ;;  %v574_v18 = vld [vmem:[%s4154_s3 + $0xc0] sm:$0xff]  ;;  %v571_v21 = vld [vmem:[%s4154_s3 + $0xa8] sm:$0xff]  ;;  %v569_v23 = vld [vmem:[%s4154_s3 + $0x98] sm:$0xff]  ;;  %s4027_s20 = scalar_lea.vmem %s4155_s4, %s2513_s7 }
  0x10   : > { %2521 = vmatpush.msra.mxu1 %v579_v3  ;;  %2522 = vmatpush.msra.mxu2 %v579_v3  ;;  %v333_v7 = vld [vmem:[%s2689_s12 + $0x30] sm:$0xff]  ;;  %v334_v8 = vld [vmem:[%s2689_s12 + $0x38] sm:$0xff]  ;;  %275 = vst [vmem:[#allocation2 + $0x10] sm:$0x3] %v2618_v2  ;;  %v570_v22 = vld [vmem:[%s4154_s3 + $0xa0] sm:$0xff]  ;;  %s2509_s7 = sshll.u32 %s4338_s22, 3 }
  0x11   : > { %2523 = vmatpush.msra.mxu3 %v579_v3  ;;  %857 = vmatpush.msra.mxu0 %v579_v3  ;;  %v369_v9 = vmul.f32 %v2694_v6, %v333_v7  ;;  %v370_v10 = vmul.f32 %v2694_v6, %v334_v8  ;;  %276 = vst [vmem:[#allocation2 + $0x18] sm:$0xff] %v2618_v2  ;;  %v568_v26 = vld [vmem:[%s4154_s3 + $0x90] sm:$0xff]  ;;  %v567_v29 = vld [vmem:[%s4154_s3 + $0x88] sm:$0xff]  ;;  %v566_v30 = vld [vmem:[%s4154_s3 + $0x80] sm:$0xff]  ;;  %s268_s25 = scalar_lea.vmem %s4156_s5, %s2509_s7  ;;  %s272_s28 = scalar_lea.vmem %s4157_s6, %s2509_s7 }
  0x12   : > { %2524 = vmatpush.msra.mxu1 %v578_v4  ;;  %2525 = vmatpush.msra.mxu2 %v578_v4  ;;  %277 = vst [vmem:[#allocation2 + $0x20] sm:$0xff] %v2618_v2  ;;  %v597_v32 = vld [vmem:[%s4154_s3 + $0x178] sm:$0xff]  ;;  %v596_v35 = vld [vmem:[%s4154_s3 + $0x170] sm:$0xff]  ;;  %v595_v47 = vld [vmem:[%s4154_s3 + $0x168] sm:$0xff] }
  0x13   : > { %2526 = vmatpush.msra.mxu3 %v578_v4  ;;  %858 = vmatpush.msra.mxu0 %v578_v4  ;;  %v405_v13 = vadd.f32 %v2704_v11, %v369_v9  ;;  %v406_v14 = vadd.f32 %v2704_v11, %v370_v10  ;;  %278 = vst [vmem:[#allocation2 + $0x28] sm:$0x3] %v2618_v2  ;;  %v613_v33 = vld [vmem:[%s4154_s3 + $0x1f8] sm:$0xff]  ;;  %v612_v36 = vld [vmem:[%s4154_s3 + $0x1f0] sm:$0xff]  ;;  %v335_v48 = vld [vmem:[%s2689_s12 + $0x40] sm:$0xff] }
  0x14   : > { %2527 = vmatpush.msra.mxu1 %v577_v5  ;;  %2528 = vmatpush.msra.mxu2 %v577_v5  ;;  %279 = vst [vmem:[#allocation2 + $0x30] sm:$0xff] %v2618_v2  ;;  %v565_v34 = vld [vmem:[%s4154_s3 + $0x78] sm:$0xff]  ;;  %v341_v39 = vld [vmem:[%s2689_s12 + $0x70] sm:$0xff]  ;;  %v336_v50 = vld [vmem:[%s2689_s12 + $0x48] sm:$0xff]  ;;  %v371_v60 = vmul.f32 %v2694_v6, %v335_v48 }
  0x15   : > { %2529 = vmatpush.msra.mxu3 %v577_v5  ;;  %859 = vmatpush.msra.mxu0 %v577_v5  ;;  %v437_v16 = vmax.f32 %v405_v13, 0.0  ;;  %v438_v17 = vmax.f32 %v406_v14, 0.0  ;;  %280 = vst [vmem:[#allocation2 + $0x38] sm:$0xff] %v2618_v2  ;;  %v342_v40 = vld [vmem:[%s2689_s12 + $0x78] sm:$0xff]  ;;  %v349_v42 = vld [vmem:[%s2689_s12 + $0xb0] sm:$0xff]  ;;  %v377_v45 = vmul.f32 %v2694_v6, %v341_v39  ;;  %v343_v51 = vld [vmem:[%s2689_s12 + $0x80] sm:$0xff]  ;;  %v372_v0 = vmul.f32 %v2694_v6, %v336_v50 }
  0x16   : > { %2530 = vmatpush.msra.mxu1 %v576_v12  ;;  %2531 = vmatpush.msra.mxu2 %v576_v12  ;;  %281 = vst [vmem:[#allocation2 + $0x40] sm:$0x3] %v2618_v2  ;;  %v350_v43 = vld [vmem:[%s2689_s12 + $0xb8] sm:$0xff]  ;;  %v564_v46 = vld [vmem:[%s4154_s3 + $0x70] sm:$0xff]  ;;  %v378_v49 = vmul.f32 %v2694_v6, %v342_v40  ;;  %v385_v52 = vmul.f32 %v2694_v6, %v349_v42  ;;  %v611_v54 = vld [vmem:[%s4154_s3 + $0x1e8] sm:$0xff] }
  0x17   : > { %2532 = vmatpush.msra.mxu3 %v576_v12  ;;  %860 = vmatpush.msra.mxu0 %v576_v12  ;;  %470 = vst [vmem:[#allocation2 + $0x61] sm:$0xff] %v437_v16  ;;  %v386_v53 = vmul.f32 %v2694_v6, %v350_v43  ;;  %v629_v55 = vld [vmem:[%s4154_s3 + $0x278] sm:$0xff]  ;;  %v563_v56 = vld [vmem:[%s4154_s3 + $0x68] sm:$0xff]  ;;  %v594_v57 = vld [vmem:[%s4154_s3 + $0x160] sm:$0xff]  ;;  %v413_v61 = vadd.f32 %v2704_v11, %v377_v45 }
  0x18   : > { %2533 = vmatpush.msra.mxu1 %v575_v15  ;;  %2534 = vmatpush.msra.mxu2 %v575_v15  ;;  %471 = vst [vmem:[#allocation2 + $0x69] sm:$0xff] %v438_v17  ;;  %v610_v58 = vld [vmem:[%s4154_s3 + $0x1e0] sm:$0xff]  ;;  %v628_v59 = vld [vmem:[%s4154_s3 + $0x270] sm:$0xff]  ;;  %v344_v62 = vld [vmem:[%s2689_s12 + $0x88] sm:$0xff]  ;;  %v414_v63 = vadd.f32 %v2704_v11, %v378_v49  ;;  %v421_v4 = vadd.f32 %v2704_v11, %v385_v52 }
  0x19   : > { %2535 = vmatpush.msra.mxu3 %v575_v15  ;;  %861 = vmatpush.msra.mxu0 %v575_v15  ;;  %282 = vst [vmem:[#allocation2 + $0x48] sm:$0xff] %v2618_v2  ;;  %v351_v1 = vld [vmem:[%s2689_s12 + $0xc0] sm:$0xff]  ;;  %v352_v3 = vld [vmem:[%s2689_s12 + $0xc8] sm:$0xff]  ;;  %v422_v5 = vadd.f32 %v2704_v11, %v386_v53  ;;  %v379_v7 = vmul.f32 %v2694_v6, %v343_v51  ;;  %v2856_v8 = vld [vmem:[#allocation2 + $0x10] sm:$0x3]  ;;  %v445_v15 = vmax.f32 %v413_v61, 0.0 }
  0x1a   : > { %2536 = vmatpush.msra.mxu1 %v574_v18  ;;  %2537 = vmatpush.msra.mxu2 %v574_v18  ;;  %283 = vst [vmem:[#allocation2 + $0x50] sm:$0xff] %v2618_v2  ;;  %v407_v9 = vadd.f32 %v2704_v11, %v371_v60  ;;  %v380_v10 = vmul.f32 %v2694_v6, %v344_v62  ;;  %v746_v12 = vrot.slane %v2856_v8, 1  ;;  %v327_v13 = vld [vmem:[%s2689_s12] sm:$0xff]  ;;  %v328_v14 = vld [vmem:[%s2689_s12 + $0x8] sm:$0xff]  ;;  %v593_v17 = vld [vmem:[%s4154_s3 + $0x158] sm:$0xff] }
  0x1b   : > { %2538 = vmatpush.msra.mxu3 %v574_v18  ;;  %862 = vmatpush.msra.mxu0 %v574_v18  ;;  %284 = vst [vmem:[#allocation2 + $0x58] sm:$0x3] %v2618_v2  ;;  %v562_v16 = vld [vmem:[%s4154_s3 + $0x60] sm:$0xff]  ;;  %v387_v18 = vmul.f32 %v2694_v6, %v351_v1  ;;  %v364_v40 = vmul.f32 %v2694_v6, %v328_v14  ;;  %v354_v51 = vld [vmem:[%s2689_s12 + $0xd8] sm:$0xff]  ;;  %v329_v60 = vld [vmem:[%s2689_s12 + $0x10] sm:$0xff] }
  0x1c   : > { %2539 = vmatpush.msra.mxu1 %v573_v19  ;;  %2540 = vmatpush.msra.mxu2 %v573_v19  ;;  %288 = vst [vmem:[#allocation2 + $0x78] sm:$0xff] %v2618_v2  ;;  %v626_v39 = vld [vmem:[%s4154_s3 + $0x260] sm:$0xff] }
  0x1d   : > { %2541 = vmatpush.msra.mxu3 %v573_v19  ;;  %863 = vmatpush.msra.mxu0 %v573_v19  ;;  %289 = vst [vmem:[#allocation2 + $0x80] sm:$0xff] %v2618_v2  ;;  %v388_v19 = vmul.f32 %v2694_v6, %v352_v3  ;;  %v400_v53 = vadd.f32 %v2704_v11, %v364_v40  ;;  %v607_v3 = vld [vmem:[%s4154_s3 + $0x1c8] sm:$0xff]  ;;  %v606_v14 = vld [vmem:[%s4154_s3 + $0x1c0] sm:$0xff] }
  0x1e   : > { %2542 = vmatpush.msra.mxu1 %v572_v20  ;;  %2543 = vmatpush.msra.mxu2 %v572_v20  ;;  %290 = vst [vmem:[#allocation2 + $0x88] sm:$0x3] %v2618_v2  ;;  %v508_v24 = vld [vmem:[#allocation2 + $0x60] sm:$0xff] }
  0x1f   : > { %2544 = vmatpush.msra.mxu3 %v572_v20  ;;  %864 = vmatpush.msra.mxu0 %v572_v20  ;;  %291 = vst [vmem:[#allocation2 + $0x90] sm:$0xff] %v2618_v2  ;;  %v2745_v25 = vld [vmem:[#allocation2 + $0x68] sm:$0xff]  ;;  %v763_v27 = vrot.slane %v508_v24, 1  ;;  %v510_v37 = vld [vmem:[#allocation2 + $0x70] sm:$0x3]  ;;  %v338_v24 = vld [vmem:[%s2689_s12 + $0x58] sm:$0xff]  ;;  %v424_v42 = vadd.f32 %v2704_v11, %v388_v19 }
  0x20   : > { %2545 = vmatpush.msra.mxu1 %v571_v21  ;;  %2546 = vmatpush.msra.mxu2 %v571_v21  ;;  %292 = vst [vmem:[#allocation2 + $0x98] sm:$0xff] %v2618_v2  ;;  %v764_v28 = vrot.slane %v2745_v25, 1  ;;  %v766_v38 = vrot.slane %v510_v37, 1  ;;  %v337_v20 = vld [vmem:[%s2689_s12 + $0x50] sm:$0xff] }
  0x21   : > { %2547 = vmatpush.msra.mxu3 %v571_v21  ;;  %865 = vmatpush.msra.mxu0 %v571_v21  ;;  %293 = vst [vmem:[#allocation2 + $0xa0] sm:$0x3] %v2618_v2  ;;  %v446_v21 = vmax.f32 %v414_v63, 0.0  ;;  %v345_v25 = vld [vmem:[%s2689_s12 + $0x90] sm:$0xff]  ;;  %v373_v43 = vmul.f32 %v2694_v6, %v337_v20  ;;  %v390_v63 = vmul.f32 %v2694_v6, %v354_v51 }
  0x22   : > { %2548 = vmatpush.msra.mxu1 %v570_v22  ;;  %2549 = vmatpush.msra.mxu2 %v570_v22  ;;  %294 = vst [vmem:[#allocation2 + $0xa8] sm:$0xff] %v2618_v2  ;;  %v2765_v31 = vsel %vm742_vm0, %v763_v27, %v764_v28  ;;  %v2801_v41 = vsel %vm742_vm0, %v764_v28, %v766_v38  ;;  %v453_v27 = vmax.f32 %v421_v4, 0.0  ;;  %v454_v28 = vmax.f32 %v422_v5, 0.0  ;;  %v592_v37 = vld [vmem:[%s4154_s3 + $0x150] sm:$0xff]  ;;  %v625_v4 = vld [vmem:[%s4154_s3 + $0x258] sm:$0xff]  ;;  %v559_v5 = vld [vmem:[%s4154_s3 + $0x48] sm:$0xff] }
  0x23   : > { %2550 = vmatpush.msra.mxu3 %v570_v22  ;;  %866 = vmatpush.msra.mxu0 %v570_v22  ;;  %295 = vst [vmem:[#allocation2 + $0xb0] sm:$0xff] %v2618_v2  ;;  %v408_v22 = vadd.f32 %v2704_v11, %v372_v0  ;;  %v608_v38 = vld [vmem:[%s4154_s3 + $0x1d0] sm:$0xff]  ;;  %v330_v0 = vld [vmem:[%s2689_s12 + $0x18] sm:$0xff] }
  0x24   : > { %2551 = vmatpush.msra.mxu1 %v569_v23  ;;  %2552 = vmatpush.msra.mxu2 %v569_v23  ;;  %296 = vst [vmem:[#allocation2 + $0xb8] sm:$0x3] %v2618_v2  ;;  %v624_v19 = vld [vmem:[%s4154_s3 + $0x250] sm:$0xff] }
  0x25   : > { %2553 = vmatpush.msra.mxu3 %v569_v23  ;;  %867 = vmatpush.msra.mxu0 %v569_v23  ;;  %297 = vst [vmem:[#allocation2 + $0xc0] sm:$0xff] %v2618_v2  ;;  %v747_v23 = vsel %vm742_vm0, %v743_v44, %v746_v12  ;;  %v440_v45 = vmax.f32 %v408_v22, 0.0  ;;  %v432_v12 = vmax.f32 %v400_v53, 0.0 }
  0x26   : > { %2554 = vmatpush.msra.mxu1 %v568_v26  ;;  %2555 = vmatpush.msra.mxu2 %v568_v26  ;;  %298 = vst [vmem:[#allocation2 + $0xc8] sm:$0xff] %v2618_v2 }
  0x27   : > { %2556 = vmatpush.msra.mxu3 %v568_v26  ;;  %868 = vmatpush.msra.mxu0 %v568_v26  ;;  %4215 = vst [vmem:[#allocation3_spill] sm:$0xff] %v2765_v31  ;;  %v346_v26 = vld [vmem:[%s2689_s12 + $0x98] sm:$0xff] }
  0x28   : > { %2557 = vmatpush.msra.mxu1 %v567_v29  ;;  %2558 = vmatpush.msra.mxu2 %v567_v29  ;;  %299 = vst [vmem:[#allocation2 + $0xd0] sm:$0x3] %v2618_v2  ;;  %v382_v50 = vmul.f32 %v2694_v6, %v346_v26 }
  0x29   : > { %2559 = vmatpush.msra.mxu3 %v567_v29  ;;  %300 = vst [vmem:[#allocation2 + $0xd8] sm:$0xff] %v2618_v2  ;;  %869 = vmatpush.msra.mxu0 %v567_v29  ;;  %v415_v29 = vadd.f32 %v2704_v11, %v379_v7 }
  0x2a   : > { %2560 = vmatpush.msra.mxu1 %v566_v30  ;;  %2561 = vmatpush.msra.mxu2 %v566_v30  ;;  %301 = vst [vmem:[#allocation2 + $0xe0] sm:$0xff] %v2618_v2  ;;  %v2937_v7 = vadd.f32 %v2704_v11, %v382_v50  ;;  %v347_v50 = vld [vmem:[%s2689_s12 + $0xa0] sm:$0xff] }
  0x2b   : > { %895 = vmatmul.f32.vlgmr.msra.gmra.mxu1 %v2765_v31  ;;  %302 = vst [vmem:[#allocation2 + $0xe8] sm:$0x3] %v2618_v2  ;;  %2562 = vmatpush.msra.mxu3 %v566_v30  ;;  %v447_v48 = vmax.f32 %v415_v29, 0.0 }
  0x2c   : > { %303 = vst [vmem:[#allocation2 + $0xf0] sm:$0xff] %v2618_v2  ;;  %870 = vmatpush.msra.mxu0 %v566_v30  ;;  %1194 = vmatpush.msrb.mxu2 %v597_v32  ;;  %v609_v30 = vld [vmem:[%s4154_s3 + $0x1d8] sm:$0xff]  ;;  %v627_v32 = vld [vmem:[%s4154_s3 + $0x268] sm:$0xff]  ;;  %v450_v29 = vmax.f32 %v2937_v7, 0.0 }
  0x2d   : > { %304 = vst [vmem:[#allocation2 + $0xf8] sm:$0xff] %v2618_v2  ;;  %1339 = vmatpush.msrb.mxu3 %v613_v33  ;;  %968 = vmatpush.msrb.mxu1 %v565_v34  ;;  %v561_v33 = vld [vmem:[%s4154_s3 + $0x58] sm:$0xff]  ;;  %v363_v34 = vmul.f32 %v2694_v6, %v327_v13  ;;  %v590_v13 = vld [vmem:[%s4154_s3 + $0x140] sm:$0xff] }
  0x2e   : > { %305 = vst [vmem:[#allocation2 + $0x100] sm:$0x3] %v2618_v2  ;;  %1195 = vmatpush.msrb.mxu2 %v596_v35  ;;  %871 = vmatmul.f32.vlgmr.msra.gmra.mxu0 %v743_v44  ;;  %v439_v35 = vmax.f32 %v407_v9, 0.0  ;;  %v353_v44 = vld [vmem:[%s2689_s12 + $0xd0] sm:$0xff]  ;;  %v365_v9 = vmul.f32 %v2694_v6, %v329_v60 }
  0x2f   : > { %306 = vst [vmem:[#allocation2 + $0x108] sm:$0xff] %v2618_v2  ;;  %1340 = vmatpush.msrb.mxu3 %v612_v36  ;;  %969 = vmatpush.msrb.mxu1 %v564_v46  ;;  %v416_v36 = vadd.f32 %v2704_v11, %v380_v10  ;;  %v374_v46 = vmul.f32 %v2694_v6, %v338_v24  ;;  %v588_v60 = vld [vmem:[%s4154_s3 + $0x130] sm:$0xff] }
  0x30   : > { %307 = vst [vmem:[#allocation2 + $0x110] sm:$0xff] %v2618_v2  ;;  %1196 = vmatpush.msrb.mxu2 %v595_v47  ;;  %1494 = vmatpush.msrb.mxu0 %v629_v55  ;;  %v381_v47 = vmul.f32 %v2694_v6, %v345_v25  ;;  %v399_v49 = vadd.f32 %v2704_v11, %v363_v34 }
  0x31   : > { %308 = vst [vmem:[#allocation2 + $0x118] sm:$0x3] %v2618_v2  ;;  %1341 = vmatpush.msrb.mxu3 %v611_v54  ;;  %970 = vmatpush.msrb.mxu1 %v563_v56  ;;  %v448_v52 = vmax.f32 %v416_v36, 0.0  ;;  %v389_v54 = vmul.f32 %v2694_v6, %v353_v44  ;;  %v456_v56 = vmax.f32 %v424_v42, 0.0  ;;  %v410_v61 = vadd.f32 %v2704_v11, %v374_v46  ;;  %v558_v42 = vld [vmem:[%s4154_s3 + $0x40] sm:$0xff] }
  0x32   : > { %309 = vst [vmem:[#allocation2 + $0x120] sm:$0xff] %v2618_v2  ;;  %1197 = vmatpush.msrb.mxu2 %v594_v57  ;;  %1495 = vmatpush.msrb.mxu0 %v628_v59  ;;  %v560_v57 = vld [vmem:[%s4154_s3 + $0x50] sm:$0xff]  ;;  %v409_v59 = vadd.f32 %v2704_v11, %v373_v43  ;;  %v2923_v62 = vadd.f32 %v2704_v11, %v381_v47  ;;  %v431_v1 = vmax.f32 %v399_v49, 0.0 }
  0x33   : > { %310 = vst [vmem:[#allocation2 + $0x128] sm:$0xff] %v2618_v2  ;;  %898 = vmatmul.f32.gmra.mxu1 %v2801_v41  ;;  %1342 = vmatpush.msrb.mxu3 %v610_v58  ;;  %v591_v58 = vld [vmem:[%s4154_s3 + $0x148] sm:$0xff]  ;;  %v426_v25 = vadd.f32 %v2704_v11, %v390_v63 }
  0x34   : > { %311 = vst [vmem:[#allocation2 + $0x130] sm:$0x3] %v2618_v2  ;;  %971 = vmatpush.msrb.mxu1 %v562_v16  ;;  %1198 = vmatpush.msrb.mxu2 %v593_v17  ;;  %v366_v16 = vmul.f32 %v2694_v6, %v330_v0  ;;  %v441_v20 = vmax.f32 %v409_v59, 0.0  ;;  %v449_v24 = vmax.f32 %v2923_v62, 0.0  ;;  %v383_v62 = vmul.f32 %v2694_v6, %v347_v50 }
  0x35   : > { %312 = vst [vmem:[#allocation2 + $0x138] sm:$0xff] %v2618_v2  ;;  %1343 = vmatpush.msrb.mxu3 %v609_v30  ;;  %1496 = vmatpush.msrb.mxu0 %v627_v32  ;;  %v401_v30 = vadd.f32 %v2704_v11, %v365_v9  ;;  %v458_v49 = vmax.f32 %v426_v25, 0.0 }
  0x36   : > { %313 = vst [vmem:[#allocation2 + $0x140] sm:$0xff] %v2618_v2  ;;  %874 = vmatmul.f32.gmra.mxu0 %v747_v23  ;;  %972 = vmatpush.msrb.mxu1 %v561_v33  ;;  %v442_v23 = vmax.f32 %v410_v61, 0.0  ;;  %v402_v36 = vadd.f32 %v2704_v11, %v366_v16  ;;  %v419_v25 = vadd.f32 %v2704_v11, %v383_v62 }
  0x37   : > { %4216 = vst [vmem:[#allocation4_spill] sm:$0xff] %v2801_v41  ;;  %1199 = vmatpush.msrb.mxu2 %v592_v37  ;;  %1344 = vmatpush.msrb.mxu3 %v608_v38  ;;  %v339_v37 = vld [vmem:[%s2689_s12 + $0x60] sm:$0xff]  ;;  %v340_v38 = vld [vmem:[%s2689_s12 + $0x68] sm:$0xff]  ;;  %v433_v53 = vmax.f32 %v401_v30, 0.0 }
  0x38   : > { %314 = vst [vmem:[#allocation2 + $0x148] sm:$0x3] %v2618_v2  ;;  %1497 = vmatpush.msrb.mxu0 %v626_v39  ;;  %973 = vmatpush.msrb.mxu1 %v560_v57  ;;  %v375_v43 = vmul.f32 %v2694_v6, %v339_v37  ;;  %v376_v44 = vmul.f32 %v2694_v6, %v340_v38  ;;  %v623_v57 = vld [vmem:[%s4154_s3 + $0x248] sm:$0xff]  ;;  %v434_v59 = vmax.f32 %v402_v36, 0.0  ;;  %v451_v50 = vmax.f32 %v419_v25, 0.0 }
  0x39   : > { %315 = vst [vmem:[#allocation2 + $0x150] sm:$0xff] %v2618_v2  ;;  %1200 = vmatpush.msrb.mxu2 %v591_v58  ;;  %1345 = vmatpush.msrb.mxu3 %v607_v3  ;;  %v557_v58 = vld [vmem:[%s4154_s3 + $0x38] sm:$0xff]  ;;  %v604_v3 = vld [vmem:[%s4154_s3 + $0x1b0] sm:$0xff]  ;;  %v356_v36 = vld [vmem:[%s2689_s12 + $0xe8] sm:$0xff] }
  0x3a   : > { %316 = vst [vmem:[#allocation2 + $0x158] sm:$0xff] %v2618_v2  ;;  %1498 = vmatpush.msrb.mxu0 %v625_v4  ;;  %974 = vmatpush.msrb.mxu1 %v559_v5  ;;  %v412_v61 = vadd.f32 %v2704_v11, %v376_v44  ;;  %v622_v4 = vld [vmem:[%s4154_s3 + $0x240] sm:$0xff] }
  0x3b   : > { %317 = vst [vmem:[#allocation2 + $0x160] sm:$0x3] %v2618_v2  ;;  %1201 = vmatpush.msrb.mxu2 %v590_v13  ;;  %1346 = vmatpush.msrb.mxu3 %v606_v14 }
  0x3c   : > { %318 = vst [vmem:[#allocation2 + $0x168] sm:$0xff] %v2618_v2  ;;  %1499 = vmatpush.msrb.mxu0 %v624_v19  ;;  %975 = vmatpush.msrb.mxu1 %v558_v42  ;;  %v355_v19 = vld [vmem:[%s2689_s12 + $0xe0] sm:$0xff]  ;;  %v392_v42 = vmul.f32 %v2694_v6, %v356_v36  ;;  %v619_v36 = vld [vmem:[%s4154_s3 + $0x228] sm:$0xff] }
  0x3d   : > { %319 = vst [vmem:[#allocation2 + $0x170] sm:$0xff] %v2618_v2 }
  0x3e   : > { %320 = vst [vmem:[#allocation2 + $0x178] sm:$0x3] %v2618_v2  ;;  %1500 = vmatpush.msrb.mxu0 %v623_v57  ;;  %976 = vmatpush.msrb.mxu1 %v557_v58  ;;  %v602_v58 = vld [vmem:[%s4154_s3 + $0x1a0] sm:$0xff] }
  0x3f   : > { %321 = vst [vmem:[#allocation2 + $0x180] sm:$0xff] %v2618_v2 }
  0x40   : > { %322 = vst [vmem:[#allocation2 + $0x188] sm:$0xff] %v2618_v2  ;;  %1501 = vmatpush.msrb.mxu0 %v622_v4 }
  0x41   : > { %323 = vst [vmem:[#allocation2 + $0x190] sm:$0x3] %v2618_v2 }
  0x42   : > { %326 = vst [vmem:[#allocation2 + $0x1a8] sm:$0x3] %v2618_v2  ;;  %v423_v2 = vadd.f32 %v2704_v11, %v387_v18 }
  0x43   : > { %478 = vst [vmem:[#allocation2 + $0xc1] sm:$0xff] %v445_v15  ;;  %v425_v15 = vadd.f32 %v2704_v11, %v389_v54  ;;  %v411_v54 = vadd.f32 %v2704_v11, %v375_v43 }
  0x44   : > { %479 = vst [vmem:[#allocation2 + $0xc9] sm:$0xff] %v446_v21  ;;  %v455_v55 = vmax.f32 %v423_v2, 0.0 }
  0x45   : > { %486 = vst [vmem:[#allocation2 + $0x121] sm:$0xff] %v453_v27  ;;  %v443_v13 = vmax.f32 %v411_v54, 0.0 }
  0x46   : > { %487 = vst [vmem:[#allocation2 + $0x129] sm:$0xff] %v454_v28 }
  0x47   : > { %472 = vst [vmem:[#allocation2 + $0x79] sm:$0xff] %v439_v35  ;;  %v457_v35 = vmax.f32 %v425_v15, 0.0 }
  0x48   : > { %473 = vst [vmem:[#allocation2 + $0x81] sm:$0xff] %v440_v45 }
  0x49   : > { %480 = vst [vmem:[#allocation2 + $0xd9] sm:$0xff] %v447_v48  ;;  %v589_v48 = vld [vmem:[%s4154_s3 + $0x138] sm:$0xff] }
  0x4a   : > { %v2940_v10 = vld [vmem:[#allocation2 + $0xc0] sm:$0xff]  ;;  %481 = vst [vmem:[#allocation2 + $0xe1] sm:$0xff] %v448_v52  ;;  %1202 = vmatpush.msrb.mxu2 %v589_v48  ;;  %v605_v52 = vld [vmem:[%s4154_s3 + $0x1b8] sm:$0xff]  ;;  %v555_v48 = vld [vmem:[%s4154_s3 + $0x28] sm:$0xff] }
  0x4b   : > { %v2950_v17 = vld [vmem:[#allocation2 + $0xc8] sm:$0xff]  ;;  %v783_v18 = vrot.slane %v2940_v10, 1  ;;  %488 = vst [vmem:[#allocation2 + $0x139] sm:$0xff] %v455_v55  ;;  %v2961_v28 = vld [vmem:[#allocation2 + $0xd0] sm:$0x3]  ;;  %1347 = vmatpush.msrb.mxu3 %v605_v52 }
  0x4c   : > { %v784_v21 = vrot.slane %v2950_v17, 1  ;;  %v532_v22 = vld [vmem:[#allocation2 + $0x120] sm:$0xff]  ;;  %489 = vst [vmem:[#allocation2 + $0x141] sm:$0xff] %v456_v56  ;;  %v786_v46 = vrot.slane %v2961_v28, 1  ;;  %1203 = vmatpush.msrb.mxu2 %v588_v60 }
  0x4d   : > { %v2959_v26 = vld [vmem:[#allocation2 + $0x128] sm:$0xff]  ;;  %v803_v27 = vrot.slane %v532_v22, 1  ;;  %464 = vst [vmem:[#allocation2 + $0x19] sm:$0xff] %v431_v1  ;;  %v534_v39 = vld [vmem:[#allocation2 + $0x130] sm:$0x3]  ;;  %1348 = vmatpush.msrb.mxu3 %v604_v3 }
  0x4e   : > { %v2966_v32 = vsel %vm742_vm0, %v783_v18, %v784_v21  ;;  %v804_v33 = vrot.slane %v2959_v26, 1  ;;  %v2969_v34 = vld [vmem:[#allocation2 + $0x78] sm:$0xff]  ;;  %465 = vst [vmem:[#allocation2 + $0x21] sm:$0xff] %v432_v12  ;;  %v806_v55 = vrot.slane %v534_v39, 1  ;;  %v3015_v63 = vsel %vm742_vm0, %v784_v21, %v786_v46  ;;  %v348_v18 = vld [vmem:[%s2689_s12 + $0xa8] sm:$0xff]  ;;  %v556_v22 = vld [vmem:[%s4154_s3 + $0x30] sm:$0xff] }
  0x4f   : > { %4217 = vst [vmem:[#allocation5_spill] sm:$0xff] %v2966_v32  ;;  %919 = vmatmul.f32.vlgmr.msra.gmra.mxu2 %v2966_v32  ;;  %v2975_v40 = vld [vmem:[#allocation2 + $0x80] sm:$0xff]  ;;  %v768_v2 = vrot.slane %v2969_v34, 1  ;;  %v2993_v51 = vld [vmem:[#allocation2 + $0x88] sm:$0x3]  ;;  %v391_v26 = vmul.f32 %v2694_v6, %v355_v19  ;;  %977 = vmatpush.msrb.mxu1 %v556_v22  ;;  %v585_v19 = vld [vmem:[%s4154_s3 + $0x118] sm:$0xff] }
  0x50   : > { %474 = vst [vmem:[#allocation2 + $0x91] sm:$0xff] %v441_v20  ;;  %v2984_v45 = vsel %vm742_vm0, %v803_v27, %v804_v33  ;;  %v769_v47 = vrot.slane %v2975_v40, 1  ;;  %v771_v0 = vrot.slane %v2993_v51, 1  ;;  %v3026_v5 = vld [vmem:[#allocation2 + $0xd8] sm:$0xff]  ;;  %v3034_v14 = vsel %vm742_vm0, %v804_v33, %v806_v55  ;;  %v603_v39 = vld [vmem:[%s4154_s3 + $0x1a8] sm:$0xff] }
  0x51   : > { %4218 = vst [vmem:[#allocation6_spill] sm:$0xff] %v2984_v45  ;;  %943 = vmatmul.f32.vlgmr.msra.gmra.mxu3 %v2984_v45  ;;  %v3028_v7 = vld [vmem:[#allocation2 + $0xe0] sm:$0xff]  ;;  %v788_v27 = vrot.slane %v3026_v5, 1  ;;  %v427_v52 = vadd.f32 %v2704_v11, %v391_v26  ;;  %978 = vmatpush.msrb.mxu1 %v555_v48  ;;  %v3100_v60 = vld [vmem:[#allocation2 + $0xe8] sm:$0x3]  ;;  %v600_v48 = vld [vmem:[%s4154_s3 + $0x190] sm:$0xff] }
  0x52   : > { %475 = vst [vmem:[#allocation2 + $0x99] sm:$0xff] %v442_v23  ;;  %v3000_v56 = vsel %vm742_vm0, %v768_v2, %v769_v47  ;;  %v535_v15 = vld [vmem:[#allocation2 + $0x138] sm:$0xff]  ;;  %v444_v23 = vmax.f32 %v412_v61, 0.0  ;;  %v3053_v30 = vsel %vm742_vm0, %v769_v47, %v771_v0  ;;  %1349 = vmatpush.msrb.mxu3 %v603_v39  ;;  %v791_v25 = vrot.slane %v3100_v60, 1 }
  0x53   : > { %482 = vst [vmem:[#allocation2 + $0xf1] sm:$0xff] %v449_v24  ;;  %901 = vmatmul.f32.gmra.mxu1 %v3000_v56  ;;  %v3040_v20 = vld [vmem:[#allocation2 + $0x140] sm:$0xff]  ;;  %v384_v24 = vmul.f32 %v2694_v6, %v348_v18  ;;  %v808_v43 = vrot.slane %v535_v15, 1  ;;  %v621_v47 = vld [vmem:[%s4154_s3 + $0x238] sm:$0xff]  ;;  %v537_v61 = vld [vmem:[#allocation2 + $0x148] sm:$0x3] }
  0x54   : > { %4219 = vst [vmem:[#allocation7_spill] sm:$0xff] %v3000_v56  ;;  %v3018_v1 = vld [vmem:[#allocation2 + $0x18] sm:$0xff]  ;;  %v809_v44 = vrot.slane %v3040_v20, 1  ;;  %1502 = vmatpush.msrb.mxu0 %v621_v47  ;;  %1350 = vmatpush.msrb.mxu3 %v602_v58  ;;  %v554_v18 = vld [vmem:[%s4154_s3 + $0x20] sm:$0xff]  ;;  %v459_v22 = vmax.f32 %v427_v52, 0.0  ;;  %v584_v47 = vld [vmem:[%s4154_s3 + $0x110] sm:$0xff] }
  0x55   : > { %483 = vst [vmem:[#allocation2 + $0xf9] sm:$0xff] %v450_v29  ;;  %v3030_v9 = vld [vmem:[#allocation2 + $0x20] sm:$0xff]  ;;  %v748_v12 = vrot.slane %v3018_v1, 1  ;;  %v3042_v21 = vld [vmem:[#allocation2 + $0x28] sm:$0x3]  ;;  %v789_v29 = vrot.slane %v3028_v7, 1  ;;  %v420_v2 = vadd.f32 %v2704_v11, %v384_v24  ;;  %979 = vmatpush.msrb.mxu1 %v554_v18 }
  0x56   : > { %490 = vst [vmem:[#allocation2 + $0x151] sm:$0xff] %v457_v35  ;;  %v749_v16 = vrot.slane %v3030_v9, 1  ;;  %v587_v35 = vld [vmem:[%s4154_s3 + $0x128] sm:$0xff]  ;;  %v751_v46 = vrot.slane %v3042_v21, 1  ;;  %v3105_v0 = vsel %vm742_vm0, %v808_v43, %v809_v44  ;;  %v553_v39 = vld [vmem:[%s4154_s3 + $0x18] sm:$0xff] }
  0x57   : > { %4220 = vst [vmem:[#allocation8_spill] sm:$0xff] %v3015_v63  ;;  %922 = vmatmul.f32.gmra.mxu2 %v3015_v63  ;;  %v3064_v37 = vld [vmem:[#allocation2 + $0x90] sm:$0xff]  ;;  %v3090_v54 = vsel %vm742_vm0, %v788_v27, %v789_v29  ;;  %v452_v62 = vmax.f32 %v420_v2, 0.0  ;;  %v3161_v52 = vsel %vm742_vm0, %v789_v29, %v791_v25  ;;  %980 = vmatpush.msrb.mxu1 %v553_v39  ;;  %v583_v20 = vld [vmem:[%s4154_s3 + $0x108] sm:$0xff]  ;;  %v598_v39 = vld [vmem:[%s4154_s3 + $0x180] sm:$0xff] }
  0x58   : > { %491 = vst [vmem:[#allocation2 + $0x159] sm:$0xff] %v458_v49  ;;  %v3056_v33 = vsel %vm742_vm0, %v748_v12, %v749_v16  ;;  %1204 = vmatpush.msrb.mxu2 %v587_v35  ;;  %v586_v49 = vld [vmem:[%s4154_s3 + $0x120] sm:$0xff]  ;;  %v773_v55 = vrot.slane %v3064_v37, 1  ;;  %v3108_v3 = vsel %vm742_vm0, %v749_v16, %v751_v46  ;;  %v811_v35 = vrot.slane %v537_v61, 1 }
  0x59   : > { %466 = vst [vmem:[#allocation2 + $0x31] sm:$0xff] %v433_v53  ;;  %946 = vmatmul.f32.gmra.mxu3 %v3034_v14  ;;  %877 = vmatmul.f32.gmra.mxu0 %v3056_v33  ;;  %v3066_v38 = vld [vmem:[#allocation2 + $0x98] sm:$0xff]  ;;  %v428_v53 = vadd.f32 %v2704_v11, %v392_v42  ;;  %v331_v12 = vld [vmem:[%s2689_s12 + $0x20] sm:$0xff] }
  0x5a   : > { %4221 = vst [vmem:[#allocation9_spill] sm:$0xff] %v3034_v14  ;;  %v774_v57 = vrot.slane %v3066_v38, 1  ;;  %1205 = vmatpush.msrb.mxu2 %v586_v49  ;;  %v3131_v27 = vld [vmem:[#allocation2 + $0xa0] sm:$0x3] }
  0x5b   : > { %467 = vst [vmem:[#allocation2 + $0x39] sm:$0xff] %v434_v59  ;;  %904 = vmatmul.f32.gmra.mxu1 %v3053_v30  ;;  %v620_v59 = vld [vmem:[%s4154_s3 + $0x230] sm:$0xff]  ;;  %v460_v16 = vmax.f32 %v428_v53, 0.0  ;;  %v618_v49 = vld [vmem:[%s4154_s3 + $0x220] sm:$0xff]  ;;  %v776_v53 = vrot.slane %v3131_v27, 1 }
  0x5c   : > { %4222 = vst [vmem:[#allocation10_spill] sm:$0xff] %v3053_v30  ;;  %1503 = vmatpush.msrb.mxu0 %v620_v59  ;;  %v3129_v26 = vsel %vm742_vm0, %v773_v55, %v774_v57  ;;  %1206 = vmatpush.msrb.mxu2 %v585_v19  ;;  %v3164_v55 = vld [vmem:[#allocation2 + $0xf0] sm:$0xff]  ;;  %v3166_v58 = vld [vmem:[#allocation2 + $0xf8] sm:$0xff]  ;;  %v3171_v59 = vsel %vm742_vm0, %v809_v44, %v811_v35 }
  0x5d   : > { %476 = vst [vmem:[#allocation2 + $0xa9] sm:$0xff] %v443_v13  ;;  %v332_v13 = vld [vmem:[%s2689_s12 + $0x28] sm:$0xff]  ;;  %v538_v61 = vld [vmem:[#allocation2 + $0x150] sm:$0xff]  ;;  %v793_v44 = vrot.slane %v3164_v55, 1  ;;  %v794_v18 = vrot.slane %v3166_v58, 1  ;;  %v3192_v19 = vsel %vm742_vm0, %v774_v57, %v776_v53  ;;  %v617_v35 = vld [vmem:[%s4154_s3 + $0x218] sm:$0xff] }
  0x5e   : > { %477 = vst [vmem:[#allocation2 + $0xb1] sm:$0xff] %v444_v23  ;;  %v367_v23 = vmul.f32 %v2694_v6, %v331_v12  ;;  %v368_v24 = vmul.f32 %v2694_v6, %v332_v13  ;;  %v601_v6 = vld [vmem:[%s4154_s3 + $0x198] sm:$0xff]  ;;  %1504 = vmatpush.msrb.mxu0 %v619_v36  ;;  %1207 = vmatpush.msrb.mxu2 %v584_v47  ;;  %v552_v13 = vld [vmem:[%s4154_s3 + $0x10] sm:$0xff]  ;;  %v582_v36 = vld [vmem:[%s4154_s3 + $0x100] sm:$0xff] }
  0x5f   : > { %4223 = vst [vmem:[#allocation11_spill] sm:$0xff] %v3090_v54  ;;  %925 = vmatmul.f32.gmra.mxu2 %v3090_v54  ;;  %1351 = vmatpush.msrb.mxu3 %v601_v6  ;;  %v551_v6 = vld [vmem:[%s4154_s3 + $0x8] sm:$0xff] }
  0x60   : > { %484 = vst [vmem:[#allocation2 + $0x109] sm:$0xff] %v451_v50  ;;  %v3110_v4 = vld [vmem:[#allocation2 + $0x30] sm:$0xff]  ;;  %v403_v2 = vadd.f32 %v2704_v11, %v367_v23  ;;  %v404_v42 = vadd.f32 %v2704_v11, %v368_v24  ;;  %1505 = vmatpush.msrb.mxu0 %v618_v49  ;;  %981 = vmatpush.msrb.mxu1 %v552_v13  ;;  %v599_v23 = vld [vmem:[%s4154_s3 + $0x188] sm:$0xff]  ;;  %v813_v24 = vrot.slane %v538_v61, 1  ;;  %v3229_v49 = vld [vmem:[#allocation2 + $0x100] sm:$0x3] }
  0x61   : > { %4224 = vst [vmem:[#allocation12_spill] sm:$0xff] %v3105_v0  ;;  %949 = vmatmul.f32.gmra.mxu3 %v3105_v0  ;;  %880 = vmatmul.f32.gmra.mxu0 %v3108_v3  ;;  %v753_v43 = vrot.slane %v3110_v4, 1  ;;  %v661_v13 = vld [vmem:[%s4154_s3 + $0x378] sm:$0xff] }
  0x62   : > { %v3115_v15 = vld [vmem:[#allocation2 + $0x38] sm:$0xff]  ;;  %485 = vst [vmem:[#allocation2 + $0x111] sm:$0xff] %v452_v62  ;;  %v435_v11 = vmax.f32 %v403_v2, 0.0  ;;  %v436_v50 = vmax.f32 %v404_v42, 0.0  ;;  %1352 = vmatpush.msrb.mxu3 %v600_v48  ;;  %v3179_v12 = vld [vmem:[#allocation2 + $0x40] sm:$0x3]  ;;  %1208 = vmatpush.msrb.mxu2 %v583_v20 }
  0x63   : > { %4225 = vst [vmem:[#allocation13_spill] sm:$0xff] %v3129_v26  ;;  %v754_v46 = vrot.slane %v3115_v15, 1  ;;  %907 = vmatmul.f32.gmra.mxu1 %v3129_v26  ;;  %v3173_v62 = vld [vmem:[#allocation2 + $0x158] sm:$0xff]  ;;  %v756_v57 = vrot.slane %v3179_v12, 1  ;;  %1506 = vmatpush.msrb.mxu0 %v617_v35  ;;  %v616_v2 = vld [vmem:[%s4154_s3 + $0x210] sm:$0xff]  ;;  %v550_v42 = vld [vmem:[%s4154_s3] sm:$0xff] }
  0x64   : > { %492 = vst [vmem:[#allocation2 + $0x169] sm:$0xff] %v459_v22  ;;  %v3196_v22 = vld [vmem:[#allocation2 + $0xa8] sm:$0xff]  ;;  %v814_v25 = vrot.slane %v3173_v62, 1  ;;  %1353 = vmatpush.msrb.mxu3 %v599_v23  ;;  %982 = vmatpush.msrb.mxu1 %v551_v6  ;;  %v796_v20 = vrot.slane %v3229_v49, 1 }
  0x65   : > { %493 = vst [vmem:[#allocation2 + $0x171] sm:$0xff] %v460_v16  ;;  %v3176_v29 = vsel %vm742_vm0, %v753_v43, %v754_v46  ;;  %v3198_v16 = vld [vmem:[#allocation2 + $0xb0] sm:$0xff]  ;;  %v3225_v43 = vsel %vm742_vm0, %v793_v44, %v794_v18  ;;  %v778_v47 = vrot.slane %v3196_v22, 1  ;;  %1209 = vmatpush.msrb.mxu2 %v582_v36  ;;  %1507 = vmatpush.msrb.mxu0 %v616_v2  ;;  %v3249_v23 = vld [vmem:[#allocation2 + $0xb8] sm:$0x3] }
  0x66   : > { %4226 = vst [vmem:[#allocation14_spill] sm:$0xff] %v3161_v52  ;;  %v779_v48 = vrot.slane %v3198_v16, 1  ;;  %1354 = vmatpush.msrb.mxu3 %v598_v39  ;;  %v3235_v53 = vsel %vm742_vm0, %v754_v46, %v756_v57  ;;  %983 = vmatpush.msrb.mxu1 %v550_v42  ;;  %v615_v46 = vld [vmem:[%s4154_s3 + $0x208] sm:$0xff]  ;;  %v645_v57 = vld [vmem:[%s4154_s3 + $0x2f8] sm:$0xff]  ;;  %v614_v39 = vld [vmem:[%s4154_s3 + $0x200] sm:$0xff]  ;;  %v3269_v2 = vsel %vm742_vm0, %v794_v18, %v796_v20  ;;  %v781_v42 = vrot.slane %v3249_v23, 1 }
  0x67   : > { %468 = vst [vmem:[#allocation2 + $0x49] sm:$0xff] %v435_v11  ;;  %928 = vmatmul.f32.gmra.mxu2 %v3161_v52  ;;  %v3232_v11 = vsel %vm742_vm0, %v813_v24, %v814_v25  ;;  %v677_v24 = vld [vmem:[%s4154_s3 + $0x3f8] sm:$0xff]  ;;  %1508 = vmatpush.msrb.mxu0 %v615_v46 }
  0x68   : > { %4227 = vst [vmem:[#allocation15_spill] sm:$0xff] %v3171_v59  ;;  %v3247_v44 = vsel %vm742_vm0, %v778_v47, %v779_v48  ;;  %1791 = vmatpush.msra.mxu2 %v661_v13  ;;  %1946 = vmatpush.msra.mxu3 %v677_v24  ;;  %v3272_v47 = vld [vmem:[#allocation2 + $0x108] sm:$0xff] }
  0x69   : > { %469 = vst [vmem:[#allocation2 + $0x51] sm:$0xff] %v436_v50  ;;  %952 = vmatmul.f32.gmra.mxu3 %v3171_v59  ;;  %883 = vmatmul.f32.gmra.mxu0 %v3176_v29  ;;  %v540_v50 = vld [vmem:[#allocation2 + $0x160] sm:$0x3] }
  0x6a   : > { %4228 = vst [vmem:[#allocation16_spill] sm:$0xff] %v3192_v19  ;;  %v816_v35 = vrot.slane %v540_v50, 1  ;;  %1646 = vmatpush.msra.mxu1 %v645_v57  ;;  %1509 = vmatpush.msrb.mxu0 %v614_v39  ;;  %v3274_v50 = vld [vmem:[#allocation2 + $0x110] sm:$0xff]  ;;  %v798_v57 = vrot.slane %v3272_v47, 1 }
  0x6b   : > { %910 = vmatmul.f32.gmra.mxu1 %v3192_v19  ;;  %4229 = vst [vmem:[#allocation17_spill] sm:$0xff] %v3232_v11  ;;  %v3283_v24 = vld [vmem:[#allocation2 + $0x168] sm:$0xff]  ;;  %v799_v39 = vrot.slane %v3274_v50, 1 }
  0x6c   : > { %4230 = vst [vmem:[#allocation18_spill] sm:$0xff] %v3247_v44  ;;  %v3277_v13 = vsel %vm742_vm0, %v814_v25, %v816_v35  ;;  %v3285_v18 = vld [vmem:[#allocation2 + $0x170] sm:$0xff]  ;;  %v693_v25 = vld [vmem:[%s4154_s3 + $0x478] sm:$0xff]  ;;  %v818_v35 = vrot.slane %v3283_v24, 1 }
  0x6d   : > { %4231 = vst [vmem:[#allocation19_spill] sm:$0xff] %v3277_v13  ;;  %2098 = vmatpush.msra.mxu0 %v693_v25  ;;  %v660_v25 = vld [vmem:[%s4154_s3 + $0x370] sm:$0xff] }
  0x6e   : > { %v3238_v61 = vld [vmem:[#allocation2 + $0x48] sm:$0xff]  ;;  %4232 = vst [vmem:[#allocation20_spill] sm:$0xff] %v3283_v24  ;;  %v3315_v24 = vld [vmem:[#allocation2 + $0x178] sm:$0x3]  ;;  %1792 = vmatpush.msra.mxu2 %v660_v25 }
  0x6f   : > { %931 = vmatmul.f32.gmra.mxu2 %v3225_v43  ;;  %v758_v6 = vrot.slane %v3238_v61, 1  ;;  %4233 = vst [vmem:[#allocation21_spill] sm:$0xff] %v3285_v18 }
  0x70   : > { %v3240_v62 = vld [vmem:[#allocation2 + $0x50] sm:$0xff]  ;;  %v3287_v20 = vld [vmem:[#allocation2 + $0x58] sm:$0x3] }
  0x71   : > { %955 = vmatmul.f32.gmra.mxu3 %v3232_v11  ;;  %886 = vmatmul.f32.gmra.mxu0 %v3235_v53  ;;  %v759_v36 = vrot.slane %v3240_v62, 1  ;;  %v3292_v11 = vsel %vm742_vm0, %v779_v48, %v781_v42  ;;  %v761_v59 = vrot.slane %v3287_v20, 1  ;;  %v3304_v48 = vsel %vm742_vm0, %v798_v57, %v799_v39  ;;  %v3306_v42 = vld [vmem:[#allocation2 + $0x118] sm:$0x3] }
  0x72   : > { %4234 = vst [vmem:[#allocation22_spill] sm:$0xff] %v3292_v11  ;;  %v821_v57 = vrot.slane %v3315_v24, 1 }
  0x73   : > { %913 = vmatmul.f32.gmra.mxu1 %v3247_v44  ;;  %v3280_v46 = vsel %vm742_vm0, %v758_v6, %v759_v36  ;;  %v819_v6 = vrot.slane %v3285_v18, 1  ;;  %v3312_v0 = vsel %vm742_vm0, %v759_v36, %v761_v59  ;;  %v801_v18 = vrot.slane %v3306_v42, 1  ;;  %v676_v59 = vld [vmem:[%s4154_s3 + $0x3f0] sm:$0xff] }
  0x74   : > { %v644_v36 = vld [vmem:[%s4154_s3 + $0x2f0] sm:$0xff]  ;;  %1947 = vmatpush.msra.mxu3 %v676_v59 }
  0x75   : > { %1647 = vmatpush.msra.mxu1 %v644_v36  ;;  %v3331_v25 = vsel %vm742_vm0, %v799_v39, %v801_v18  ;;  %v692_v59 = vld [vmem:[%s4154_s3 + $0x470] sm:$0xff]  ;;  %v659_v18 = vld [vmem:[%s4154_s3 + $0x368] sm:$0xff]  ;;  %v1085_v39 = vrot.slane %v2856_v8, 2  ;;  %v1087_v8 = vrot.slane %v3018_v1, 2 }
  0x76   : > { %2099 = vmatpush.msra.mxu0 %v692_v59  ;;  %1793 = vmatpush.msra.mxu2 %v659_v18  ;;  %v642_v59 = vld [vmem:[%s4154_s3 + $0x2e0] sm:$0xff] }
  0x77   : > { %934 = vmatmul.f32.gmra.mxu2 %v3269_v2 }
  0x79   : > { %958 = vmatmul.f32.gmra.mxu3 %v3277_v13  ;;  %889 = vmatmul.f32.gmra.mxu0 %v3280_v46  ;;  %v3309_v13 = vsel %vm742_vm0, %v818_v35, %v819_v6  ;;  %v2574_v35 = vld [vmem:[#allocation2] sm:$0xff] }
  0x7a   : > { %4235 = vst [vmem:[#allocation23_spill] sm:$0xff] %v3309_v13  ;;  %v1082_v14 = vrot.slane %v2574_v35, 2 }
  0x7b   : > { %916 = vmatmul.f32.gmra.mxu1 %v3292_v11 }
  0x7c   : > { %v1086_v36 = vsel %vm1081_vm1, %v1082_v14, %v1085_v39  ;;  %v1093_v39 = vrot.slane %v3115_v15, 2 }
  0x7f   : > { %937 = vmatmul.f32.gmra.mxu2 %v3304_v48 }
  0x81   : > { %961 = vmatmul.f32.gmra.mxu3 %v3309_v13  ;;  %892 = vmatmul.f32.gmra.mxu0 %v3312_v0  ;;  %v3334_v13 = vsel %vm742_vm0, %v819_v6, %v821_v57  ;;  %v643_v6 = vld [vmem:[%s4154_s3 + $0x2e8] sm:$0xff]  ;;  %v1088_v57 = vrot.slane %v3030_v9, 2 }
  0x82   : > { %4236 = vst [vmem:[#allocation24_spill] sm:$0xff] %v3334_v13  ;;  %1648 = vmatpush.msra.mxu1 %v643_v6 }
  0x83   : > { %984 = vmatmul.f32.vlgmr.msrb.gmra.mxu1 %v2574_v35 }
  0x84   : > { %1649 = vmatpush.msra.mxu1 %v642_v59  ;;  %v1100_v59 = vrot.slane %v3287_v20, 2 }
  0x87   : > { %940 = vmatmul.f32.gmra.mxu2 %v3331_v25 }
  0x89   : > { %964 = vmatmul.f32.gmra.mxu3 %v3334_v13  ;;  %1510 = vmatmul.f32.vlgmr.msrb.gmra.mxu0 %v3056_v33  ;;  %v675_v33 = vld [vmem:[%s4154_s3 + $0x3e8] sm:$0xff] }
  0x8a   : > { %1948 = vmatpush.msra.mxu3 %v675_v33  ;;  %v690_v33 = vld [vmem:[%s4154_s3 + $0x460] sm:$0xff] }
  0x8b   : > { %987 = vmatmul.f32.gmra.mxu1 %v2574_v35  ;;  %v3365_v35 = vsel %vm1081_vm1, %v1087_v8, %v1088_v57  ;;  %v641_v8 = vld [vmem:[%s4154_s3 + $0x2d8] sm:$0xff] }
  0x8c   : > { %1650 = vmatpush.msra.mxu1 %v641_v8 }
  0x8f   : > { %1210 = vmatmul.f32.vlgmr.msrb.gmra.mxu2 %v1082_v14  ;;  %v1090_v14 = vrot.slane %v3042_v21, 2  ;;  %v1092_v21 = vrot.slane %v3110_v4, 2 }
  0x91   : > { %1355 = vmatmul.f32.vlgmr.msrb.gmra.mxu3 %v3018_v1  ;;  %1513 = vmatmul.f32.gmra.mxu0 %v3108_v3  ;;  %v691_v3 = vld [vmem:[%s4154_s3 + $0x468] sm:$0xff]  ;;  %v3382_v18 = vsel %vm1081_vm1, %v1088_v57, %v1090_v14  ;;  %v3394_v6 = vsel %vm1081_vm1, %v1092_v21, %v1093_v39  ;;  %v3432_v21 = vld [vmem:[#allocation2 + $0x60] sm:$0xff] }
  0x92   : > { %2100 = vmatpush.msra.mxu0 %v691_v3  ;;  %v1098_v3 = vrot.slane %v3240_v62, 2  ;;  %4237 = vst [vmem:[#allocation25_spill] sm:$0xff] %v3432_v21 }
  0x93   : > { %990 = vmatmul.f32.gmra.mxu1 %v3018_v1  ;;  %v658_v1 = vld [vmem:[%s4154_s3 + $0x360] sm:$0xff] }
  0x94   : > { %1794 = vmatpush.msra.mxu2 %v658_v1  ;;  %2101 = vmatpush.msra.mxu0 %v690_v33  ;;  %v689_v1 = vld [vmem:[%s4154_s3 + $0x458] sm:$0xff]  ;;  %v640_v33 = vld [vmem:[%s4154_s3 + $0x2d0] sm:$0xff]  ;;  %v3446_v20 = vsel %vm1081_vm1, %v1098_v3, %v1100_v59 }
  0x95   : > { %1651 = vmatpush.msra.mxu1 %v640_v33  ;;  %v2577_v59 = vld [vmem:[#allocation2 + $0x70] sm:$0x3] }
  0x96   : > { %2102 = vmatpush.msra.mxu0 %v689_v1 }
  0x97   : > { %1213 = vmatmul.f32.gmra.mxu2 %v1086_v36  ;;  %v1095_v36 = vrot.slane %v3179_v12, 2  ;;  %v1097_v12 = vrot.slane %v3238_v61, 2 }
  0x99   : > { %1358 = vmatmul.f32.gmra.mxu3 %v3030_v9  ;;  %1516 = vmatmul.f32.gmra.mxu0 %v3176_v29  ;;  %v3411_v57 = vsel %vm1081_vm1, %v1093_v39, %v1095_v36  ;;  %v3423_v14 = vsel %vm1081_vm1, %v1097_v12, %v1098_v3  ;;  %v1102_v36 = vrot.slane %v3432_v21, 2  ;;  %v688_v12 = vld [vmem:[%s4154_s3 + $0x450] sm:$0xff] }
  0x9a   : > { %2103 = vmatpush.msra.mxu0 %v688_v12 }
  0x9b   : > { %993 = vmatmul.f32.gmra.mxu1 %v3030_v9  ;;  %v674_v9 = vld [vmem:[%s4154_s3 + $0x3e0] sm:$0xff] }
  0x9c   : > { %1949 = vmatpush.msra.mxu3 %v674_v9 }
  0x9f   : > { %1216 = vmatmul.f32.gmra.mxu2 %v3365_v35 }
  0xa1   : > { %1361 = vmatmul.f32.gmra.mxu3 %v3110_v4  ;;  %1519 = vmatmul.f32.gmra.mxu0 %v3235_v53 }
  0xa3   : > { %996 = vmatmul.f32.gmra.mxu1 %v3110_v4  ;;  %v657_v4 = vld [vmem:[%s4154_s3 + $0x358] sm:$0xff] }
  0xa4   : > { %1795 = vmatpush.msra.mxu2 %v657_v4 }
  0xa7   : > { %1219 = vmatmul.f32.gmra.mxu2 %v3382_v18 }
  0xa8   : > { %v3425_v9 = vpop.f32.mrf.mxu1 }
  0xa9   : > { %1364 = vmatmul.f32.gmra.mxu3 %v3115_v15  ;;  %1522 = vmatmul.f32.gmra.mxu0 %v3280_v46 }
  0xab   : > { %999 = vmatmul.f32.gmra.mxu1 %v3115_v15  ;;  %v673_v15 = vld [vmem:[%s4154_s3 + $0x3d8] sm:$0xff]  ;;  %v3439_v39 = vpop.f32.mrf.mxu0 }
  0xac   : > { %1950 = vmatpush.msra.mxu3 %v673_v15  ;;  %v3452_v15 = vld [vmem:[#allocation2 + $0x68] sm:$0xff] }
  0xad   : > { %4238 = vst [vmem:[#allocation26_spill] sm:$0xff] %v3452_v15  ;;  %v1103_v8 = vrot.slane %v3452_v15, 2 }
  0xaf   : > { %1222 = vmatmul.f32.gmra.mxu2 %v3394_v6  ;;  %v3462_v3 = vsel %vm1081_vm1, %v1102_v36, %v1103_v8  ;;  %v671_v36 = vld [vmem:[%s4154_s3 + $0x3c8] sm:$0xff] }
  0xb0   : > { %v3448_v4 = vpop.f32.mrf.mxu1 }
  0xb1   : > { %1367 = vmatmul.f32.gmra.mxu3 %v3238_v61  ;;  %1525 = vmatmul.f32.gmra.mxu0 %v3312_v0 }
  0xb3   : > { %1002 = vmatmul.f32.gmra.mxu1 %v3238_v61  ;;  %v656_v61 = vld [vmem:[%s4154_s3 + $0x350] sm:$0xff]  ;;  %v3464_v1 = vpop.f32.mrf.mxu0 }
  0xb4   : > { %1796 = vmatpush.msra.mxu2 %v656_v61  ;;  %v655_v61 = vld [vmem:[%s4154_s3 + $0x348] sm:$0xff] }
  0xb6   : > { %1797 = vmatpush.msra.mxu2 %v655_v61 }
  0xb7   : > { %1225 = vmatmul.f32.gmra.mxu2 %v3411_v57 }
  0xb9   : > { %1370 = vmatmul.f32.gmra.mxu3 %v3240_v62  ;;  %1528 = vmatmul.f32.gmra.mxu0 %v2765_v31 }
  0xbb   : > { %1005 = vmatmul.f32.gmra.mxu1 %v3240_v62  ;;  %v672_v62 = vld [vmem:[%s4154_s3 + $0x3d0] sm:$0xff] }
  0xbc   : > { %1951 = vmatpush.msra.mxu3 %v672_v62  ;;  %v1105_v62 = vrot.slane %v2577_v59, 2 }
  0xbe   : > { %1952 = vmatpush.msra.mxu3 %v671_v36  ;;  %v3486_v61 = vsel %vm1081_vm1, %v1103_v8, %v1105_v62  ;;  %v1108_v36 = vrot.slane %v2975_v40, 2  ;;  %v687_v8 = vld [vmem:[%s4154_s3 + $0x448] sm:$0xff] }
  0xbf   : > { %1228 = vmatmul.f32.gmra.mxu2 %v3423_v14  ;;  %4240 = vst [vmem:[#allocation28_spill] sm:$0xff] %v3486_v61  ;;  %2104 = vmatpush.msra.mxu0 %v687_v8  ;;  %v638_v8 = vld [vmem:[%s4154_s3 + $0x2c0] sm:$0xff] }
  0xc1   : > { %1373 = vmatmul.f32.gmra.mxu3 %v3432_v21  ;;  %1531 = vmatmul.f32.gmra.mxu0 %v2801_v41  ;;  %v1107_v41 = vrot.slane %v2969_v34, 2 }
  0xc3   : > { %1008 = vmatmul.f32.gmra.mxu1 %v3432_v21 }
  0xc7   : > { %1231 = vmatmul.f32.gmra.mxu2 %v3446_v20 }
  0xc9   : > { %1376 = vmatmul.f32.gmra.mxu3 %v3452_v15  ;;  %1534 = vmatmul.f32.gmra.mxu0 %v3000_v56  ;;  %v639_v56 = vld [vmem:[%s4154_s3 + $0x2c8] sm:$0xff] }
  0xca   : > { %1652 = vmatpush.msra.mxu1 %v639_v56 }
  0xcb   : > { %1011 = vmatmul.f32.gmra.mxu1 %v3452_v15 }
  0xcc   : > { %1653 = vmatpush.msra.mxu1 %v638_v8 }
  0xcf   : > { %1234 = vmatmul.f32.gmra.mxu2 %v3462_v3 }
  0xd0   : > { %v3470_v33 = vpop.f32.mrf.mxu1 }
  0xd1   : > { %1379 = vmatmul.f32.gmra.mxu3 %v2969_v34  ;;  %1537 = vmatmul.f32.gmra.mxu0 %v3053_v30 }
  0xd2   : > { %v3477_v12 = vpop.f32.mrf.mxu2 }
  0xd3   : > { %1014 = vmatmul.f32.gmra.mxu1 %v2969_v34  ;;  %v3506_v34 = vsel %vm1081_vm1, %v1107_v41, %v1108_v36  ;;  %v670_v41 = vld [vmem:[%s4154_s3 + $0x3c0] sm:$0xff] }
  0xd4   : > { %v3483_v59 = vpop.f32.mrf.mxu3  ;;  %4242 = vst [vmem:[#allocation30_spill] sm:$0xff] %v3506_v34  ;;  %1953 = vmatpush.msra.mxu3 %v670_v41  ;;  %v1113_v41 = vrot.slane %v3066_v38, 2 }
  0xd5   : > { %4239 = vst [vmem:[#allocation27_spill] sm:$0xff] %v3483_v59 }
  0xd6   : > { %v3488_v30 = vpop.f32.mrf.mxu0 }
  0xd7   : > { %1237 = vmatmul.f32.gmra.mxu2 %v3486_v61  ;;  %v1110_v61 = vrot.slane %v2993_v51, 2 }
  0xd8   : > { %v3493_v15 = vpop.f32.mrf.mxu1 }
  0xd9   : > { %1382 = vmatmul.f32.gmra.mxu3 %v2975_v40  ;;  %1540 = vmatmul.f32.gmra.mxu0 %v3129_v26  ;;  %v654_v26 = vld [vmem:[%s4154_s3 + $0x340] sm:$0xff] }
  0xda   : > { %v3500_v62 = vpop.f32.mrf.mxu2  ;;  %1798 = vmatpush.msra.mxu2 %v654_v26  ;;  %v3531_v26 = vsel %vm1081_vm1, %v1108_v36, %v1110_v61  ;;  %v686_v61 = vld [vmem:[%s4154_s3 + $0x440] sm:$0xff] }
  0xdb   : > { %1017 = vmatmul.f32.gmra.mxu1 %v2975_v40  ;;  %4244 = vst [vmem:[#allocation32_spill] sm:$0xff] %v3531_v26  ;;  %2105 = vmatpush.msra.mxu0 %v686_v61 }
  0xdc   : > { %v3503_v56 = vpop.f32.mrf.mxu3 }
  0xdd   : > { %4241 = vst [vmem:[#allocation29_spill] sm:$0xff] %v3503_v56  ;;  %v1112_v56 = vrot.slane %v3064_v37, 2 }
  0xde   : > { %v3508_v59 = vpop.f32.mrf.mxu0 }
  0xdf   : > { %1240 = vmatmul.f32.gmra.mxu2 %v3506_v34 }
  0xe0   : > { %v3515_v31 = vpop.f32.mrf.mxu1 }
  0xe1   : > { %1385 = vmatmul.f32.gmra.mxu3 %v3064_v37  ;;  %1543 = vmatmul.f32.gmra.mxu0 %v3192_v19 }
  0xe2   : > { %v3522_v40 = vpop.f32.mrf.mxu2 }
  0xe3   : > { %1020 = vmatmul.f32.gmra.mxu1 %v3064_v37  ;;  %v3551_v37 = vsel %vm1081_vm1, %v1112_v56, %v1113_v41 }
  0xe4   : > { %v3528_v51 = vpop.f32.mrf.mxu3  ;;  %4246 = vst [vmem:[#allocation34_spill] sm:$0xff] %v3551_v37 }
  0xe5   : > { %4243 = vst [vmem:[#allocation31_spill] sm:$0xff] %v3528_v51 }
  0xe6   : > { %v3533_v19 = vpop.f32.mrf.mxu0 }
  0xe7   : > { %1243 = vmatmul.f32.gmra.mxu2 %v3531_v26  ;;  %v1115_v26 = vrot.slane %v3131_v27, 2  ;;  %v637_v27 = vld [vmem:[%s4154_s3 + $0x2b8] sm:$0xff] }
  0xe8   : > { %v3538_v34 = vpop.f32.mrf.mxu1  ;;  %1654 = vmatpush.msra.mxu1 %v637_v27 }
  0xe9   : > { %1388 = vmatmul.f32.gmra.mxu3 %v3066_v38  ;;  %1546 = vmatmul.f32.gmra.mxu0 %v3247_v44  ;;  %v653_v44 = vld [vmem:[%s4154_s3 + $0x338] sm:$0xff] }
  0xea   : > { %v3545_v36 = vpop.f32.mrf.mxu2  ;;  %1799 = vmatpush.msra.mxu2 %v653_v44  ;;  %v3576_v44 = vsel %vm1081_vm1, %v1113_v41, %v1115_v26  ;;  %v685_v26 = vld [vmem:[%s4154_s3 + $0x438] sm:$0xff] }
  0xeb   : > { %1023 = vmatmul.f32.gmra.mxu1 %v3066_v38  ;;  %v669_v38 = vld [vmem:[%s4154_s3 + $0x3b8] sm:$0xff]  ;;  %4249 = vst [vmem:[#allocation37_spill] sm:$0xff] %v3576_v44  ;;  %2106 = vmatpush.msra.mxu0 %v685_v26  ;;  %v636_v26 = vld [vmem:[%s4154_s3 + $0x2b0] sm:$0xff] }
  0xec   : > { %v3548_v8 = vpop.f32.mrf.mxu3  ;;  %1954 = vmatpush.msra.mxu3 %v669_v38  ;;  %v1118_v38 = vrot.slane %v3198_v16, 2  ;;  %1655 = vmatpush.msra.mxu1 %v636_v26  ;;  %v651_v26 = vld [vmem:[%s4154_s3 + $0x328] sm:$0xff] }
  0xed   : > { %4245 = vst [vmem:[#allocation33_spill] sm:$0xff] %v3548_v8  ;;  %v1117_v8 = vrot.slane %v3196_v22, 2 }
  0xee   : > { %v3553_v51 = vpop.f32.mrf.mxu0 }
  0xef   : > { %1246 = vmatmul.f32.gmra.mxu2 %v3551_v37 }
  0xf0   : > { %v3560_v21 = vpop.f32.mrf.mxu1 }
  0xf1   : > { %1391 = vmatmul.f32.gmra.mxu3 %v3196_v22  ;;  %1549 = vmatmul.f32.gmra.mxu0 %v3292_v11 }
  0xf2   : > { %v3567_v56 = vpop.f32.mrf.mxu2 }
  0xf3   : > { %4247 = vst [vmem:[#allocation35_spill] sm:$0xff] %v3567_v56  ;;  %1026 = vmatmul.f32.gmra.mxu1 %v3196_v22  ;;  %v3596_v22 = vsel %vm1081_vm1, %v1117_v8, %v1118_v38 }
  0xf4   : > { %v3573_v61 = vpop.f32.mrf.mxu3  ;;  %4251 = vst [vmem:[#allocation39_spill] sm:$0xff] %v3596_v22 }
  0xf5   : > { %4248 = vst [vmem:[#allocation36_spill] sm:$0xff] %v3573_v61 }
  0xf6   : > { %v3578_v11 = vpop.f32.mrf.mxu0 }
  0xf7   : > { %1249 = vmatmul.f32.gmra.mxu2 %v3576_v44  ;;  %v1120_v44 = vrot.slane %v3249_v23, 2 }
  0xf8   : > { %v3583_v37 = vpop.f32.mrf.mxu1 }
  0xf9   : > { %1394 = vmatmul.f32.gmra.mxu3 %v3198_v16  ;;  %1552 = vmatmul.f32.gmra.mxu0 %v2966_v32  ;;  %v652_v32 = vld [vmem:[%s4154_s3 + $0x330] sm:$0xff] }
  0xfa   : > { %v3590_v41 = vpop.f32.mrf.mxu2  ;;  %1800 = vmatpush.msra.mxu2 %v652_v32  ;;  %v3619_v32 = vsel %vm1081_vm1, %v1118_v38, %v1120_v44 }
  0xfb   : > { %1029 = vmatmul.f32.gmra.mxu1 %v3198_v16  ;;  %v668_v16 = vld [vmem:[%s4154_s3 + $0x3b0] sm:$0xff]  ;;  %4254 = vst [vmem:[#allocation42_spill] sm:$0xff] %v3619_v32 }
  0xfc   : > { %v3593_v27 = vpop.f32.mrf.mxu3  ;;  %1955 = vmatpush.msra.mxu3 %v668_v16  ;;  %1801 = vmatpush.msra.mxu2 %v651_v26 }
  0xfd   : > { %4250 = vst [vmem:[#allocation38_spill] sm:$0xff] %v3593_v27  ;;  %v1122_v27 = vrot.slane %v2940_v10, 2 }
  0xfe   : > { %v3598_v61 = vpop.f32.mrf.mxu0 }
  0xff   : > { %1252 = vmatmul.f32.gmra.mxu2 %v3596_v22  ;;  %v1123_v22 = vrot.slane %v2950_v17, 2 }
 0x100   : > { %v985_v56 = vpop.f32.mrf.mxu1 }
 0x101   : > { %1397 = vmatmul.f32.gmra.mxu3 %v2940_v10  ;;  %1555 = vmatmul.f32.gmra.mxu0 %v3015_v63 }
 0x102   : > { %v3610_v8 = vpop.f32.mrf.mxu2 }
 0x103   : > { %4252 = vst [vmem:[#allocation40_spill] sm:$0xff] %v3610_v8  ;;  %1032 = vmatmul.f32.gmra.mxu1 %v2940_v10  ;;  %v3635_v10 = vsel %vm1081_vm1, %v1122_v27, %v1123_v22 }
 0x104   : > { %v3616_v23 = vpop.f32.mrf.mxu3  ;;  %4257 = vst [vmem:[#allocation45_spill] sm:$0xff] %v3635_v10 }
 0x105   : > { %4253 = vst [vmem:[#allocation41_spill] sm:$0xff] %v3616_v23  ;;  %v684_v23 = vld [vmem:[%s4154_s3 + $0x430] sm:$0xff] }
 0x106   : > { %v1511_v63 = vpop.f32.mrf.mxu0  ;;  %2107 = vmatpush.msra.mxu0 %v684_v23  ;;  %v986_v23 = vadd.f32 %v985_v56, %v3439_v39 }
 0x107   : > { %1255 = vmatmul.f32.gmra.mxu2 %v3619_v32 }
 0x108   : > { %v988_v16 = vpop.f32.mrf.mxu1 }
 0x109   : > { %1400 = vmatmul.f32.gmra.mxu3 %v2950_v17  ;;  %1558 = vmatmul.f32.gmra.mxu0 %v3090_v54  ;;  %v1125_v54 = vrot.slane %v2961_v28, 2  ;;  %v635_v28 = vld [vmem:[%s4154_s3 + $0x2a8] sm:$0xff] }
 0x10a   : > { %v3629_v8 = vpop.f32.mrf.mxu2  ;;  %1656 = vmatpush.msra.mxu1 %v635_v28 }
 0x10b   : > { %4255 = vst [vmem:[#allocation43_spill] sm:$0xff] %v3629_v8  ;;  %1035 = vmatmul.f32.gmra.mxu1 %v2950_v17  ;;  %v667_v17 = vld [vmem:[%s4154_s3 + $0x3a8] sm:$0xff]  ;;  %v3653_v39 = vsel %vm1081_vm1, %v1123_v22, %v1125_v54  ;;  %v989_v8 = vadd.f32 %v988_v16, %v3464_v1  ;;  %v650_v16 = vld [vmem:[%s4154_s3 + $0x320] sm:$0xff] }
 0x10c   : > { %v3632_v44 = vpop.f32.mrf.mxu3  ;;  %1956 = vmatpush.msra.mxu3 %v667_v17  ;;  %v1127_v17 = vrot.slane %v3026_v5, 2  ;;  %v683_v54 = vld [vmem:[%s4154_s3 + $0x428] sm:$0xff]  ;;  %1802 = vmatpush.msra.mxu2 %v650_v16  ;;  %v1133_v16 = vrot.slane %v3166_v58, 2 }
 0x10d   : > { %4256 = vst [vmem:[#allocation44_spill] sm:$0xff] %v3632_v44  ;;  %2108 = vmatpush.msra.mxu0 %v683_v54 }
 0x10e   : > { %v1514_v38 = vpop.f32.mrf.mxu0 }
 0x10f   : > { %1258 = vmatmul.f32.gmra.mxu2 %v3635_v10 }
 0x110   : > { %v991_v32 = vpop.f32.mrf.mxu1 }
 0x111   : > { %1403 = vmatmul.f32.gmra.mxu3 %v3026_v5  ;;  %1561 = vmatmul.f32.gmra.mxu0 %v3161_v52 }
 0x112   : > { %v1211_v27 = vpop.f32.mrf.mxu2 }
 0x113   : > { %v1307_v44 = vadd.f32 %v1211_v27, %v986_v23  ;;  %1038 = vmatmul.f32.gmra.mxu1 %v3026_v5  ;;  %v1128_v23 = vrot.slane %v3028_v7, 2 }
 0x114   : > { %v1356_v26 = vpop.f32.mrf.mxu3 }
 0x115   : > { %v1452_v56 = vadd.f32 %v1356_v26, %v1307_v44  ;;  %v3668_v5 = vsel %vm1081_vm1, %v1127_v17, %v1128_v23 }
 0x116   : > { %v1517_v52 = vpop.f32.mrf.mxu0 }
 0x117   : > { %v3655_v10 = vadd.f32 %v1511_v63, %v1452_v56  ;;  %1261 = vmatmul.f32.gmra.mxu2 %v3653_v39  ;;  %v1130_v56 = vrot.slane %v3100_v60, 2  ;;  %v634_v60 = vld [vmem:[%s4154_s3 + $0x2a0] sm:$0xff] }
 0x118   : > { %v994_v27 = vpop.f32.mrf.mxu1  ;;  %1657 = vmatpush.msra.mxu1 %v634_v60 }
 0x119   : > { %1406 = vmatmul.f32.gmra.mxu3 %v3028_v7  ;;  %1564 = vmatmul.f32.gmra.mxu0 %v3225_v43 }
 0x11a   : > { %v1214_v22 = vpop.f32.mrf.mxu2 }
 0x11b   : > { %v1308_v63 = vadd.f32 %v1214_v22, %v989_v8  ;;  %1041 = vmatmul.f32.gmra.mxu1 %v3028_v7  ;;  %v992_v7 = vadd.f32 %v991_v32, %v3488_v30  ;;  %v666_v8 = vld [vmem:[%s4154_s3 + $0x3a0] sm:$0xff]  ;;  %v3688_v30 = vsel %vm1081_vm1, %v1128_v23, %v1130_v56 }
 0x11c   : > { %v1359_v44 = vpop.f32.mrf.mxu3  ;;  %1957 = vmatpush.msra.mxu3 %v666_v8  ;;  %v995_v8 = vadd.f32 %v994_v27, %v3508_v59  ;;  %v682_v23 = vld [vmem:[%s4154_s3 + $0x420] sm:$0xff]  ;;  %v649_v27 = vld [vmem:[%s4154_s3 + $0x318] sm:$0xff] }
 0x11d   : > { %v1453_v28 = vadd.f32 %v1359_v44, %v1308_v63  ;;  %2109 = vmatpush.msra.mxu0 %v682_v23  ;;  %1803 = vmatpush.msra.mxu2 %v649_v27 }
 0x11e   : > { %v1520_v26 = vpop.f32.mrf.mxu0 }
 0x11f   : > { %v3670_v1 = vadd.f32 %v1514_v38, %v1453_v28  ;;  %1264 = vmatmul.f32.gmra.mxu2 %v3668_v5  ;;  %v1132_v28 = vrot.slane %v3164_v55, 2 }
 0x120   : > { %v997_v54 = vpop.f32.mrf.mxu1 }
 0x121   : > { %1409 = vmatmul.f32.gmra.mxu3 %v3164_v55  ;;  %1567 = vmatmul.f32.gmra.mxu0 %v3269_v2 }
 0x122   : > { %v1217_v38 = vpop.f32.mrf.mxu2 }
 0x123   : > { %v1309_v17 = vadd.f32 %v1217_v38, %v992_v7  ;;  %1044 = vmatmul.f32.gmra.mxu1 %v3164_v55  ;;  %v3703_v55 = vsel %vm1081_vm1, %v1132_v28, %v1133_v16 }
 0x124   : > { %v1362_v22 = vpop.f32.mrf.mxu3 }
 0x125   : > { %v1454_v32 = vadd.f32 %v1362_v22, %v1309_v17  ;;  %v1135_v22 = vrot.slane %v3229_v49, 2  ;;  %v633_v49 = vld [vmem:[%s4154_s3 + $0x298] sm:$0xff] }
 0x126   : > { %v1523_v63 = vpop.f32.mrf.mxu0  ;;  %1658 = vmatpush.msra.mxu1 %v633_v49  ;;  %v1140_v49 = vrot.slane %v3306_v42, 2  ;;  %v632_v42 = vld [vmem:[%s4154_s3 + $0x290] sm:$0xff] }
 0x127   : > { %v3690_v44 = vadd.f32 %v1517_v52, %v1454_v32  ;;  %1267 = vmatmul.f32.gmra.mxu2 %v3688_v30 }
 0x128   : > { %v1000_v7 = vpop.f32.mrf.mxu1  ;;  %1659 = vmatpush.msra.mxu1 %v632_v42 }
 0x129   : > { %1412 = vmatmul.f32.gmra.mxu3 %v3166_v58  ;;  %1570 = vmatmul.f32.gmra.mxu0 %v3304_v48 }
 0x12a   : > { %v1220_v56 = vpop.f32.mrf.mxu2 }
 0x12b   : > { %v1310_v52 = vadd.f32 %v1220_v56, %v995_v8  ;;  %1047 = vmatmul.f32.gmra.mxu1 %v3166_v58  ;;  %v998_v58 = vadd.f32 %v997_v54, %v3533_v19  ;;  %v3723_v19 = vsel %vm1081_vm1, %v1133_v16, %v1135_v22  ;;  %v681_v16 = vld [vmem:[%s4154_s3 + $0x418] sm:$0xff] }
 0x12c   : > { %v1365_v38 = vpop.f32.mrf.mxu3  ;;  %2110 = vmatpush.msra.mxu0 %v681_v16 }
 0x12d   : > { %v1455_v17 = vadd.f32 %v1365_v38, %v1310_v52  ;;  %v1137_v38 = vrot.slane %v3272_v47, 2 }
 0x12e   : > { %v1526_v60 = vpop.f32.mrf.mxu0 }
 0x12f   : > { %v3705_v59 = vadd.f32 %v1520_v26, %v1455_v17  ;;  %1270 = vmatmul.f32.gmra.mxu2 %v3703_v55  ;;  %v665_v26 = vld [vmem:[%s4154_s3 + $0x398] sm:$0xff]  ;;  %v1138_v17 = vrot.slane %v3274_v50, 2 }
 0x130   : > { %v1003_v32 = vpop.f32.mrf.mxu1  ;;  %1958 = vmatpush.msra.mxu3 %v665_v26 }
 0x131   : > { %1415 = vmatmul.f32.gmra.mxu3 %v3272_v47  ;;  %1573 = vmatmul.f32.gmra.mxu0 %v3331_v25 }
 0x132   : > { %v1223_v28 = vpop.f32.mrf.mxu2 }
 0x133   : > { %v1311_v8 = vadd.f32 %v1223_v28, %v998_v58  ;;  %1050 = vmatmul.f32.gmra.mxu1 %v3272_v47  ;;  %v1001_v58 = vadd.f32 %v1000_v7, %v3553_v51  ;;  %v3738_v47 = vsel %vm1081_vm1, %v1137_v38, %v1138_v17  ;;  %v648_v7 = vld [vmem:[%s4154_s3 + $0x310] sm:$0xff]  ;;  %v4260_v38 = vld [vmem:[#allocation9_spill] sm:$0xff] }
 0x134   : > { %v1368_v23 = vpop.f32.mrf.mxu3  ;;  %1804 = vmatpush.msra.mxu2 %v648_v7  ;;  %v3766_v7 = vld [vmem:[#allocation2 + $0x128] sm:$0xff] }
 0x135   : > { %v1456_v54 = vadd.f32 %v1368_v23, %v1311_v8  ;;  %4262 = vst [vmem:[#allocation49_spill] sm:$0xff] %v3766_v7 }
 0x136   : > { %v1529_v56 = vpop.f32.mrf.mxu0 }
 0x137   : > { %v3725_v52 = vadd.f32 %v1523_v63, %v1456_v54  ;;  %1273 = vmatmul.f32.gmra.mxu2 %v3723_v19  ;;  %v3748_v54 = vld [vmem:[#allocation2 + $0x120] sm:$0xff] }
 0x138   : > { %v1006_v27 = vpop.f32.mrf.mxu1 }
 0x139   : > { %4258 = vst [vmem:[#allocation46_spill] sm:$0xff] %v3725_v52  ;;  %1418 = vmatmul.f32.gmra.mxu3 %v3274_v50  ;;  %1576 = vmatmul.f32.gmra.mxu0 %v2984_v45  ;;  %v358_v45 = vld [vmem:[%s2689_s12 + $0xf8] sm:$0xff]  ;;  %v3812_v52 = vld [vmem:[#allocation2 + $0x140] sm:$0xff] }
 0x13a   : > { %v1226_v22 = vpop.f32.mrf.mxu2  ;;  %4267 = vst [vmem:[#allocation52_spill] sm:$0xff] %v3812_v52 }
 0x13b   : > { %v1312_v63 = vadd.f32 %v1226_v22, %v1001_v58  ;;  %1053 = vmatmul.f32.gmra.mxu1 %v3274_v50  ;;  %v1004_v50 = vadd.f32 %v1003_v32, %v3578_v11  ;;  %v3760_v32 = vsel %vm1081_vm1, %v1138_v17, %v1140_v49  ;;  %v4263_v17 = vld [vmem:[#allocation12_spill] sm:$0xff] }
 0x13c   : > { %v1371_v26 = vpop.f32.mrf.mxu3 }
 0x13d   : > { %v1457_v28 = vadd.f32 %v1371_v26, %v1312_v63 }
 0x13e   : > { %v1532_v8 = vpop.f32.mrf.mxu0 }
 0x13f   : > { %v3740_v51 = vadd.f32 %v1526_v60, %v1457_v28  ;;  %1276 = vmatmul.f32.gmra.mxu2 %v3738_v47  ;;  %v664_v60 = vld [vmem:[%s4154_s3 + $0x390] sm:$0xff]  ;;  %v1142_v28 = vrot.slane %v3748_v54, 2 }
 0x140   : > { %v1009_v23 = vpop.f32.mrf.mxu1  ;;  %1959 = vmatpush.msra.mxu3 %v664_v60 }
 0x141   : > { %4259 = vst [vmem:[#allocation47_spill] sm:$0xff] %v3740_v51  ;;  %1421 = vmatmul.f32.gmra.mxu3 %v3748_v54  ;;  %1579 = vmatmul.f32.gmra.mxu0 %v4260_v38  ;;  %v3786_v38 = vld [vmem:[#allocation2 + $0x138] sm:$0xff] }
 0x142   : > { %v1229_v58 = vpop.f32.mrf.mxu2 }
 0x143   : > { %v1313_v16 = vadd.f32 %v1229_v58, %v1004_v50  ;;  %1056 = vmatmul.f32.gmra.mxu1 %v3748_v54  ;;  %v1143_v50 = vrot.slane %v3766_v7, 2  ;;  %v1007_v58 = vadd.f32 %v1006_v27, %v3598_v61 }
 0x144   : > { %v1374_v11 = vpop.f32.mrf.mxu3 }
 0x145   : > { %v1458_v22 = vadd.f32 %v1374_v11, %v1313_v16  ;;  %v3777_v11 = vsel %vm1081_vm1, %v1142_v28, %v1143_v50  ;;  %v4265_v28 = vld [vmem:[#allocation15_spill] sm:$0xff] }
 0x146   : > { %v1535_v63 = vpop.f32.mrf.mxu0 }
 0x147   : > { %v3762_v26 = vadd.f32 %v1529_v56, %v1458_v22  ;;  %1279 = vmatmul.f32.gmra.mxu2 %v3760_v32  ;;  %v680_v56 = vld [vmem:[%s4154_s3 + $0x410] sm:$0xff] }
 0x148   : > { %v1012_v60 = vpop.f32.mrf.mxu1  ;;  %2111 = vmatpush.msra.mxu0 %v680_v56 }
 0x149   : > { %4261 = vst [vmem:[#allocation48_spill] sm:$0xff] %v3762_v26  ;;  %1424 = vmatmul.f32.gmra.mxu3 %v3766_v7  ;;  %1582 = vmatmul.f32.gmra.mxu0 %v4263_v17  ;;  %v647_v17 = vld [vmem:[%s4154_s3 + $0x308] sm:$0xff]  ;;  %v2580_v26 = vld [vmem:[#allocation2 + $0x130] sm:$0x3] }
 0x14a   : > { %v1232_v49 = vpop.f32.mrf.mxu2  ;;  %v1145_v56 = vrot.slane %v2580_v26, 2  ;;  %1805 = vmatpush.msra.mxu2 %v647_v17 }
 0x14b   : > { %v1314_v16 = vadd.f32 %v1232_v49, %v1007_v58  ;;  %1059 = vmatmul.f32.gmra.mxu1 %v3766_v7  ;;  %v1010_v49 = vadd.f32 %v1009_v23, %v3425_v9  ;;  %v631_v9 = vld [vmem:[%s4154_s3 + $0x288] sm:$0xff]  ;;  %v2582_v23 = vld [vmem:[%s4152_s1] ss:$0 sm:$0xff] }
 0x14c   : > { %v1377_v42 = vpop.f32.mrf.mxu3  ;;  %1660 = vmatpush.msra.mxu1 %v631_v9  ;;  %v1013_v9 = vadd.f32 %v1012_v60, %v3448_v4 }
 0x14d   : > { %v1459_v22 = vadd.f32 %v1377_v42, %v1314_v16  ;;  %v357_v42 = vld [vmem:[%s2689_s12 + $0xf0] sm:$0xff] }
 0x14e   : > { %v1538_v61 = vpop.f32.mrf.mxu0  ;;  %v393_v26 = vmul.f32 %v2582_v23, %v357_v42  ;;  %v1147_v42 = vrot.slane %v3786_v38, 2 }
 0x14f   : > { %v3779_v27 = vadd.f32 %v1532_v8, %v1459_v22  ;;  %1282 = vmatmul.f32.gmra.mxu2 %v3777_v11  ;;  %v663_v8 = vld [vmem:[%s4154_s3 + $0x388] sm:$0xff] }
 0x150   : > { %v1015_v58 = vpop.f32.mrf.mxu1  ;;  %1960 = vmatpush.msra.mxu3 %v663_v8 }
 0x151   : > { %4264 = vst [vmem:[#allocation50_spill] sm:$0xff] %v3779_v27  ;;  %1427 = vmatmul.f32.gmra.mxu3 %v3786_v38  ;;  %1585 = vmatmul.f32.gmra.mxu0 %v4265_v28  ;;  %v3802_v28 = vsel %vm1081_vm1, %v1143_v50, %v1145_v56  ;;  %v1148_v50 = vrot.slane %v3812_v52, 2 }
 0x152   : > { %v1235_v16 = vpop.f32.mrf.mxu2 }
 0x153   : > { %v1315_v22 = vadd.f32 %v1235_v16, %v1010_v49  ;;  %1062 = vmatmul.f32.gmra.mxu1 %v3786_v38  ;;  %v2583_v49 = vld [vmem:[%s4153_s2] ss:$0 sm:$0xff] }
 0x154   : > { %v1380_v17 = vpop.f32.mrf.mxu3  ;;  %v429_v16 = vadd.f32 %v2583_v49, %v393_v26  ;;  %v4268_v26 = vld [vmem:[#allocation17_spill] sm:$0xff] }
 0x155   : > { %v1460_v8 = vadd.f32 %v1380_v17, %v1315_v22  ;;  %v394_v22 = vmul.f32 %v2582_v23, %v358_v45  ;;  %v3823_v45 = vsel %vm1081_vm1, %v1147_v42, %v1148_v50  ;;  %v3832_v42 = vld [vmem:[#allocation2 + $0x150] sm:$0xff] }
 0x156   : > { %v1541_v27 = vpop.f32.mrf.mxu0  ;;  %v461_v7 = vmax.f32 %v429_v16, 0.0  ;;  %4270 = vst [vmem:[#allocation54_spill] sm:$0xff] %v3832_v42 }
 0x157   : > { %v3807_v51 = vadd.f32 %v1535_v63, %v1460_v8  ;;  %1285 = vmatmul.f32.gmra.mxu2 %v3802_v28  ;;  %v679_v63 = vld [vmem:[%s4154_s3 + $0x408] sm:$0xff]  ;;  %v430_v8 = vadd.f32 %v2583_v49, %v394_v22 }
 0x158   : > { %v1018_v56 = vpop.f32.mrf.mxu1  ;;  %494 = vst [vmem:[#allocation2 + $0x181] sm:$0xff] %v461_v7  ;;  %2112 = vmatpush.msra.mxu0 %v679_v63  ;;  %v646_v7 = vld [vmem:[%s4154_s3 + $0x300] sm:$0xff]  ;;  %v2585_v49 = vld [vmem:[#allocation2 + $0x148] sm:$0x3]  ;;  %v1016_v63 = vadd.f32 %v1015_v58, %v3470_v33 }
 0x159   : > { %4266 = vst [vmem:[#allocation51_spill] sm:$0xff] %v3807_v51  ;;  %1430 = vmatmul.f32.gmra.mxu3 %v3812_v52  ;;  %1588 = vmatmul.f32.gmra.mxu0 %v4268_v26  ;;  %v462_v4 = vmax.f32 %v430_v8, 0.0  ;;  %v1150_v22 = vrot.slane %v2585_v49, 2  ;;  %v1152_v49 = vrot.slane %v3832_v42, 2 }
 0x15a   : > { %v1238_v17 = vpop.f32.mrf.mxu2  ;;  %1806 = vmatpush.msra.mxu2 %v646_v7 }
 0x15b   : > { %v1316_v16 = vadd.f32 %v1238_v17, %v1013_v9  ;;  %1065 = vmatmul.f32.gmra.mxu1 %v3812_v52  ;;  %495 = vst [vmem:[#allocation2 + $0x189] sm:$0xff] %v462_v4  ;;  %v3844_v58 = vsel %vm1081_vm1, %v1148_v50, %v1150_v22  ;;  %v4275_v50 = vld [vmem:[#allocation23_spill] sm:$0xff] }
 0x15c   : > { %v1383_v51 = vpop.f32.mrf.mxu3  ;;  %4272 = vst [vmem:[#allocation55_spill] sm:$0xff] %v3844_v58 }
 0x15d   : > { %v1461_v60 = vadd.f32 %v1383_v51, %v1316_v16  ;;  %v4271_v51 = vld [vmem:[#allocation19_spill] sm:$0xff]  ;;  %v630_v16 = vld [vmem:[%s4154_s3 + $0x280] sm:$0xff] }
 0x15e   : > { %v1544_v23 = vpop.f32.mrf.mxu0  ;;  %1661 = vmatpush.msra.mxu1 %v630_v16 }
 0x15f   : > { %v3825_v26 = vadd.f32 %v1538_v61, %v1461_v60  ;;  %1288 = vmatmul.f32.gmra.mxu2 %v3823_v45  ;;  %v662_v61 = vld [vmem:[%s4154_s3 + $0x380] sm:$0xff] }
 0x160   : > { %v1021_v9 = vpop.f32.mrf.mxu1  ;;  %1961 = vmatpush.msra.mxu3 %v662_v61 }
 0x161   : > { %4269 = vst [vmem:[#allocation53_spill] sm:$0xff] %v3825_v26  ;;  %1433 = vmatmul.f32.gmra.mxu3 %v3832_v42  ;;  %1591 = vmatmul.f32.gmra.mxu0 %v4271_v51  ;;  %v1019_v51 = vadd.f32 %v1018_v56, %v3493_v15 }
 0x162   : > { %v1241_v17 = vpop.f32.mrf.mxu2  ;;  %v3866_v56 = vld [vmem:[#allocation2 + $0x188] sm:$0xff] }
 0x163   : > { %v1317_v8 = vadd.f32 %v1241_v17, %v1016_v63  ;;  %1068 = vmatmul.f32.gmra.mxu1 %v3832_v42  ;;  %v3850_v63 = vld [vmem:[#allocation2 + $0x158] sm:$0xff] }
 0x164   : > { %v1386_v33 = vpop.f32.mrf.mxu3  ;;  %4274 = vst [vmem:[#allocation57_spill] sm:$0xff] %v3850_v63  ;;  %v1153_v61 = vrot.slane %v3850_v63, 2 }
 0x165   : > { %v1462_v4 = vadd.f32 %v1386_v33, %v1317_v8 }
 0x166   : > { %v1547_v60 = vpop.f32.mrf.mxu0  ;;  %v3861_v33 = vsel %vm1081_vm1, %v1152_v49, %v1153_v61 }
 0x167   : > { %v3846_v7 = vadd.f32 %v1541_v27, %v1462_v4  ;;  %1291 = vmatmul.f32.gmra.mxu2 %v3844_v58  ;;  %v678_v27 = vld [vmem:[%s4154_s3 + $0x400] sm:$0xff]  ;;  %4276 = vst [vmem:[#allocation58_spill] sm:$0xff] %v3861_v33 }
 0x168   : > { %v1024_v17 = vpop.f32.mrf.mxu1  ;;  %2113 = vmatpush.msra.mxu0 %v678_v27  ;;  %v1022_v27 = vadd.f32 %v1021_v9, %v3515_v31 }
 0x169   : > { %4273 = vst [vmem:[#allocation56_spill] sm:$0xff] %v3846_v7  ;;  %1436 = vmatmul.f32.gmra.mxu3 %v3850_v63  ;;  %1594 = vmatmul.f32.gmra.mxu0 %v4275_v50  ;;  %v2588_v50 = vld [vmem:[#allocation2 + $0x160] sm:$0x3]  ;;  %v1025_v58 = vadd.f32 %v1024_v17, %v3538_v34  ;;  %v1160_v17 = vrot.slane %v3315_v24, 2 }
 0x16a   : > { %v1244_v22 = vpop.f32.mrf.mxu2  ;;  %v1155_v26 = vrot.slane %v2588_v50, 2 }
 0x16b   : > { %v1318_v8 = vadd.f32 %v1244_v22, %v1019_v51  ;;  %1071 = vmatmul.f32.gmra.mxu1 %v3850_v63  ;;  %v4278_v51 = vld [vmem:[#allocation20_spill] sm:$0xff]  ;;  %v3870_v22 = vld [vmem:[#allocation2 + $0x180] sm:$0xff] }
 0x16c   : > { %v1389_v16 = vpop.f32.mrf.mxu3  ;;  %v3877_v50 = vsel %vm1081_vm1, %v1153_v61, %v1155_v26 }
 0x16d   : > { %v1463_v4 = vadd.f32 %v1389_v16, %v1318_v8  ;;  %v1487_v8 = vrot.slane %v3870_v22, 1 }
 0x16e   : > { %v1550_v7 = vpop.f32.mrf.mxu0 }
 0x16f   : > { %v3863_v15 = vadd.f32 %v1544_v23, %v1463_v4  ;;  %1294 = vmatmul.f32.gmra.mxu2 %v3861_v33  ;;  %v1488_v23 = vrot.slane %v3866_v56, 1  ;;  %v1157_v33 = vrot.slane %v4278_v51, 2 }
 0x170   : > { %v1027_v42 = vpop.f32.mrf.mxu1 }
 0x171   : > { %4277 = vst [vmem:[#allocation59_spill] sm:$0xff] %v3863_v15  ;;  %1439 = vmatmul.f32.gmra.mxu3 %v4278_v51  ;;  %1597 = vmatmul.f32.gmra.mxu0 %v3334_v13  ;;  %v3880_v9 = vsel %vm742_vm0, %v1487_v8, %v1488_v23  ;;  %v3885_v13 = vld [vmem:[#allocation2 + $0x190] sm:$0x3] }
 0x172   : > { %v1247_v49 = vpop.f32.mrf.mxu2  ;;  %4279 = vst [vmem:[#allocation20_spill] sm:$0xff] %v3880_v9  ;;  %v1490_v61 = vrot.slane %v3885_v13, 1 }
 0x173   : > { %v1319_v16 = vadd.f32 %v1247_v49, %v1022_v27  ;;  %1074 = vmatmul.f32.gmra.mxu1 %v4278_v51  ;;  %v4280_v27 = vld [vmem:[#allocation21_spill] sm:$0xff] }
 0x174   : > { %v1392_v4 = vpop.f32.mrf.mxu3  ;;  %v1158_v49 = vrot.slane %v4280_v27, 2 }
 0x175   : > { %v1464_v15 = vadd.f32 %v1392_v4, %v1319_v16  ;;  %v3898_v4 = vsel %vm742_vm0, %v1488_v23, %v1490_v61 }
 0x176   : > { %v1553_v31 = vpop.f32.mrf.mxu0  ;;  %v3895_v8 = vsel %vm1081_vm1, %v1157_v33, %v1158_v49  ;;  %v3909_v23 = vsel %vm1081_vm1, %v1158_v49, %v1160_v17 }
 0x177   : > { %v3882_v63 = vadd.f32 %v1547_v60, %v1464_v15  ;;  %1297 = vmatmul.f32.gmra.mxu2 %v3877_v50 }
 0x178   : > { %v1030_v52 = vpop.f32.mrf.mxu1 }
 0x179   : > { %1442 = vmatmul.f32.gmra.mxu3 %v4280_v27  ;;  %1600 = vmatmul.f32.gmra.mxu0 %v3880_v9 }
 0x17a   : > { %v1250_v26 = vpop.f32.mrf.mxu2 }
 0x17b   : > { %v1320_v60 = vadd.f32 %v1250_v26, %v1025_v58  ;;  %1077 = vmatmul.f32.gmra.mxu1 %v4280_v27  ;;  %v1028_v58 = vadd.f32 %v1027_v42, %v3560_v21  ;;  %v1031_v21 = vadd.f32 %v1030_v52, %v3583_v37 }
 0x17c   : > { %v1395_v15 = vpop.f32.mrf.mxu3 }
 0x17d   : > { %v1465_v51 = vadd.f32 %v1395_v15, %v1320_v60 }
 0x17e   : > { %v1556_v16 = vpop.f32.mrf.mxu0 }
 0x17f   : > { %v3900_v34 = vadd.f32 %v1550_v7, %v1465_v51  ;;  %1300 = vmatmul.f32.gmra.mxu2 %v3895_v8 }
 0x180   : > { %v1033_v9 = vpop.f32.mrf.mxu1 }
 0x181   : > { %1445 = vmatmul.f32.gmra.mxu3 %v3870_v22  ;;  %1603 = vmatmul.f32.gmra.mxu0 %v3898_v4 }
 0x182   : > { %v1253_v33 = vpop.f32.mrf.mxu2 }
 0x183   : > { %v1321_v27 = vadd.f32 %v1253_v33, %v1028_v58  ;;  %1662 = vmatmul.f32.vlgmr.msra.gmra.mxu1 %v3365_v35  ;;  %v1034_v33 = vadd.f32 %v1033_v9, %v3477_v12 }
 0x184   : > { %v1398_v26 = vpop.f32.mrf.mxu3 }
 0x185   : > { %v1466_v7 = vadd.f32 %v1398_v26, %v1321_v27 }
 0x186   : > { %v1559_v61 = vpop.f32.mrf.mxu0 }
 0x187   : > { %v3911_v60 = vadd.f32 %v1553_v31, %v1466_v7  ;;  %1303 = vmatmul.f32.gmra.mxu2 %v3909_v23  ;;  %v2589_v31 = vld [vmem:[#allocation2 + $0x30] sm:$0xff] }
 0x188   : > { %v1036_v24 = vpop.f32.mrf.mxu1 }
 0x189   : > { %1448 = vmatmul.f32.gmra.mxu3 %v3866_v56  ;;  %2114 = vmatmul.f32.vlgmr.msra.gmra.mxu0 %v3394_v6 }
 0x18a   : > { %v1256_v42 = vpop.f32.mrf.mxu2 }
 0x18b   : > { %v1322_v15 = vadd.f32 %v1256_v42, %v1031_v21  ;;  %1665 = vmatmul.f32.gmra.mxu1 %v3382_v18  ;;  %v1037_v42 = vadd.f32 %v1036_v24, %v3500_v62 }
 0x18c   : > { %v1401_v35 = vpop.f32.mrf.mxu3 }
 0x18d   : > { %v1467_v49 = vadd.f32 %v1401_v35, %v1322_v15 }
 0x18e   : > { %v1562_v51 = vpop.f32.mrf.mxu0 }
 0x18f   : > { %v3918_v17 = vadd.f32 %v1556_v16, %v1467_v49  ;;  %1807 = vmatmul.f32.vlgmr.msra.gmra.mxu2 %v2589_v31  ;;  %v2590_v16 = vld [vmem:[#allocation2 + $0x38] sm:$0xff] }
 0x190   : > { %v1039_v58 = vpop.f32.mrf.mxu1 }
 0x191   : > { %1962 = vmatmul.f32.vlgmr.msra.gmra.mxu3 %v3176_v29  ;;  %2117 = vmatmul.f32.gmra.mxu0 %v3411_v57  ;;  %v1040_v31 = vadd.f32 %v1039_v58, %v3522_v40 }
 0x192   : > { %v1259_v37 = vpop.f32.mrf.mxu2 }
 0x193   : > { %v1323_v52 = vadd.f32 %v1259_v37, %v1034_v33  ;;  %1668 = vmatmul.f32.gmra.mxu1 %v3394_v6 }
 0x194   : > { %v1404_v27 = vpop.f32.mrf.mxu3 }
 0x195   : > { %v1468_v18 = vadd.f32 %v1404_v27, %v1323_v52 }
 0x196   : > { %v1565_v26 = vpop.f32.mrf.mxu0 }
 0x197   : > { %v3924_v7 = vadd.f32 %v1559_v61, %v1468_v18  ;;  %1810 = vmatmul.f32.gmra.mxu2 %v2590_v16  ;;  %v2591_v61 = vld [vmem:[#allocation2 + $0x48] sm:$0xff] }
 0x198   : > { %v1042_v21 = vpop.f32.mrf.mxu1 }
 0x199   : > { %1965 = vmatmul.f32.gmra.mxu3 %v3235_v53  ;;  %2120 = vmatmul.f32.gmra.mxu0 %v3423_v14  ;;  %v1043_v27 = vadd.f32 %v1042_v21, %v3545_v36  ;;  %v4284_v36 = vld [vmem:[#allocation28_spill] sm:$0xff] }
 0x19a   : > { %v1262_v29 = vpop.f32.mrf.mxu2 }
 0x19b   : > { %v1324_v12 = vadd.f32 %v1262_v29, %v1037_v42  ;;  %1671 = vmatmul.f32.gmra.mxu1 %v3411_v57  ;;  %v4282_v29 = vld [vmem:[#allocation35_spill] sm:$0xff] }
 0x19c   : > { %v1407_v9 = vpop.f32.mrf.mxu3 }
 0x19d   : > { %v1469_v6 = vadd.f32 %v1407_v9, %v1324_v12  ;;  %v4283_v9 = vld [vmem:[#allocation3_spill] sm:$0xff] }
 0x19e   : > { %v1568_v15 = vpop.f32.mrf.mxu0 }
 0x19f   : > { %v3930_v35 = vadd.f32 %v1562_v51, %v1469_v6  ;;  %1813 = vmatmul.f32.gmra.mxu2 %v2591_v61  ;;  %v2592_v51 = vld [vmem:[#allocation2 + $0x50] sm:$0xff] }
 0x1a0   : > { %v1045_v49 = vpop.f32.mrf.mxu1 }
 0x1a1   : > { %1968 = vmatmul.f32.gmra.mxu3 %v3280_v46  ;;  %2123 = vmatmul.f32.gmra.mxu0 %v3446_v20  ;;  %v1046_v12 = vadd.f32 %v1045_v49, %v4282_v29  ;;  %v4287_v49 = vld [vmem:[#allocation30_spill] sm:$0xff]  ;;  %v4289_v29 = vld [vmem:[#allocation7_spill] sm:$0xff] }
 0x1a2   : > { %v1265_v53 = vpop.f32.mrf.mxu2 }
 0x1a3   : > { %v1325_v62 = vadd.f32 %v1265_v53, %v1040_v31  ;;  %1674 = vmatmul.f32.gmra.mxu1 %v3423_v14 }
 0x1a4   : > { %v1410_v24 = vpop.f32.mrf.mxu3 }
 0x1a5   : > { %v1470_v57 = vadd.f32 %v1410_v24, %v1325_v62  ;;  %v4286_v24 = vld [vmem:[#allocation4_spill] sm:$0xff] }
 0x1a6   : > { %v1571_v33 = vpop.f32.mrf.mxu0 }
 0x1a7   : > { %v3936_v37 = vadd.f32 %v1565_v26, %v1470_v57  ;;  %1816 = vmatmul.f32.gmra.mxu2 %v2592_v51  ;;  %v4281_v26 = vld [vmem:[#allocation25_spill] sm:$0xff] }
 0x1a8   : > { %v1048_v52 = vpop.f32.mrf.mxu1 }
 0x1a9   : > { %1971 = vmatmul.f32.gmra.mxu3 %v3312_v0  ;;  %2126 = vmatmul.f32.gmra.mxu0 %v3462_v3  ;;  %v1049_v62 = vadd.f32 %v1048_v52, %v3590_v41  ;;  %v4290_v41 = vld [vmem:[#allocation32_spill] sm:$0xff] }
 0x1aa   : > { %v1268_v46 = vpop.f32.mrf.mxu2 }
 0x1ab   : > { %v1326_v40 = vadd.f32 %v1268_v46, %v1043_v27  ;;  %1677 = vmatmul.f32.gmra.mxu1 %v3446_v20 }
 0x1ac   : > { %v1413_v58 = vpop.f32.mrf.mxu3 }
 0x1ad   : > { %v1471_v14 = vadd.f32 %v1413_v58, %v1326_v40 }
 0x1ae   : > { %v1574_v18 = vpop.f32.mrf.mxu0 }
 0x1af   : > { %v3942_v16 = vadd.f32 %v1568_v15, %v1471_v14  ;;  %1819 = vmatmul.f32.gmra.mxu2 %v4281_v26  ;;  %v4285_v15 = vld [vmem:[#allocation26_spill] sm:$0xff]  ;;  %v4288_v14 = vld [vmem:[#allocation40_spill] sm:$0xff] }
 0x1b0   : > { %v1051_v42 = vpop.f32.mrf.mxu1 }
 0x1b1   : > { %1974 = vmatmul.f32.gmra.mxu3 %v4283_v9  ;;  %2129 = vmatmul.f32.gmra.mxu0 %v4284_v36  ;;  %v1052_v26 = vadd.f32 %v1051_v42, %v4288_v14  ;;  %v4293_v42 = vld [vmem:[#allocation34_spill] sm:$0xff]  ;;  %v4294_v14 = vld [vmem:[#allocation27_spill] sm:$0xff] }
 0x1b2   : > { %v1271_v0 = vpop.f32.mrf.mxu2 }
 0x1b3   : > { %v1327_v21 = vadd.f32 %v1271_v0, %v1046_v12  ;;  %1680 = vmatmul.f32.gmra.mxu1 %v3462_v3 }
 0x1b4   : > { %v1416_v6 = vpop.f32.mrf.mxu3 }
 0x1b5   : > { %v1472_v20 = vadd.f32 %v1416_v6, %v1327_v21 }
 0x1b6   : > { %v1577_v61 = vpop.f32.mrf.mxu0 }
 0x1b7   : > { %v3949_v31 = vadd.f32 %v1571_v33, %v1472_v20  ;;  %1822 = vmatmul.f32.gmra.mxu2 %v4285_v15  ;;  %v2593_v33 = vld [vmem:[#allocation2 + $0x78] sm:$0xff]  ;;  %v4291_v20 = vld [vmem:[#allocation43_spill] sm:$0xff] }
 0x1b8   : > { %v1054_v53 = vpop.f32.mrf.mxu1 }
 0x1b9   : > { %1977 = vmatmul.f32.gmra.mxu3 %v4286_v24  ;;  %2132 = vmatmul.f32.gmra.mxu0 %v4287_v49  ;;  %v1055_v15 = vadd.f32 %v1054_v53, %v4291_v20  ;;  %v4296_v53 = vld [vmem:[#allocation37_spill] sm:$0xff] }
 0x1ba   : > { %v1274_v57 = vpop.f32.mrf.mxu2 }
 0x1bb   : > { %v1328_v51 = vadd.f32 %v1274_v57, %v1049_v62  ;;  %1683 = vmatmul.f32.gmra.mxu1 %v4284_v36  ;;  %v4292_v62 = vld [vmem:[#allocation10_spill] sm:$0xff] }
 0x1bc   : > { %v1419_v27 = vpop.f32.mrf.mxu3 }
 0x1bd   : > { %v1473_v3 = vadd.f32 %v1419_v27, %v1328_v51 }
 0x1be   : > { %v1580_v46 = vpop.f32.mrf.mxu0 }
 0x1bf   : > { %v3956_v40 = vadd.f32 %v1574_v18, %v1473_v3  ;;  %1825 = vmatmul.f32.gmra.mxu2 %v2593_v33  ;;  %v2594_v18 = vld [vmem:[#allocation2 + $0x80] sm:$0xff] }
 0x1c0   : > { %v1057_v58 = vpop.f32.mrf.mxu1 }
 0x1c1   : > { %1980 = vmatmul.f32.gmra.mxu3 %v4289_v29  ;;  %2135 = vmatmul.f32.gmra.mxu0 %v4290_v41  ;;  %v4295_v29 = vld [vmem:[#allocation13_spill] sm:$0xff] }
 0x1c2   : > { %v1277_v52 = vpop.f32.mrf.mxu2 }
 0x1c3   : > { %v1329_v12 = vadd.f32 %v1277_v52, %v1052_v26  ;;  %1686 = vmatmul.f32.gmra.mxu1 %v4287_v49  ;;  %v1058_v26 = vadd.f32 %v1057_v58, %v4294_v14  ;;  %v4299_v58 = vld [vmem:[#allocation39_spill] sm:$0xff] }
 0x1c4   : > { %v1422_v9 = vpop.f32.mrf.mxu3 }
 0x1c5   : > { %v1474_v36 = vadd.f32 %v1422_v9, %v1329_v12 }
 0x1c6   : > { %v1583_v0 = vpop.f32.mrf.mxu0 }
 0x1c7   : > { %v3962_v21 = vadd.f32 %v1577_v61, %v1474_v36  ;;  %1828 = vmatmul.f32.gmra.mxu2 %v2594_v18  ;;  %v2595_v61 = vld [vmem:[#allocation2 + $0x90] sm:$0xff] }
 0x1c8   : > { %v1060_v6 = vpop.f32.mrf.mxu1 }
 0x1c9   : > { %1983 = vmatmul.f32.gmra.mxu3 %v4292_v62  ;;  %2138 = vmatmul.f32.gmra.mxu0 %v4293_v42 }
 0x1ca   : > { %v1280_v24 = vpop.f32.mrf.mxu2 }
 0x1cb   : > { %v1330_v57 = vadd.f32 %v1280_v24, %v1055_v15  ;;  %1689 = vmatmul.f32.gmra.mxu1 %v4290_v41  ;;  %v4297_v15 = vld [vmem:[#allocation29_spill] sm:$0xff]  ;;  %v4298_v24 = vld [vmem:[#allocation16_spill] sm:$0xff] }
 0x1cc   : > { %v1425_v51 = vpop.f32.mrf.mxu3  ;;  %v1061_v62 = vadd.f32 %v1060_v6, %v4297_v15  ;;  %v4302_v6 = vld [vmem:[#allocation42_spill] sm:$0xff] }
 0x1cd   : > { %v1475_v49 = vadd.f32 %v1425_v51, %v1330_v57 }
 0x1ce   : > { %v1586_v27 = vpop.f32.mrf.mxu0 }
 0x1cf   : > { %v3968_v3 = vadd.f32 %v1580_v46, %v1475_v49  ;;  %1831 = vmatmul.f32.gmra.mxu2 %v2595_v61  ;;  %v2596_v46 = vld [vmem:[#allocation2 + $0x98] sm:$0xff] }
 0x1d0   : > { %v1063_v33 = vpop.f32.mrf.mxu1 }
 0x1d1   : > { %1986 = vmatmul.f32.gmra.mxu3 %v4295_v29  ;;  %2141 = vmatmul.f32.gmra.mxu0 %v4296_v53  ;;  %v4300_v29 = vld [vmem:[#allocation31_spill] sm:$0xff] }
 0x1d2   : > { %v1283_v52 = vpop.f32.mrf.mxu2 }
 0x1d3   : > { %v1331_v12 = vadd.f32 %v1283_v52, %v1058_v26  ;;  %1692 = vmatmul.f32.gmra.mxu1 %v4293_v42  ;;  %v1064_v52 = vadd.f32 %v1063_v33, %v4300_v29  ;;  %v4305_v33 = vld [vmem:[#allocation45_spill] sm:$0xff] }
 0x1d4   : > { %v1428_v9 = vpop.f32.mrf.mxu3 }
 0x1d5   : > { %v1476_v41 = vadd.f32 %v1428_v9, %v1331_v12  ;;  %v4301_v12 = vld [vmem:[#allocation18_spill] sm:$0xff] }
 0x1d6   : > { %v1589_v36 = vpop.f32.mrf.mxu0 }
 0x1d7   : > { %v3974_v18 = vadd.f32 %v1583_v0, %v1476_v41  ;;  %1834 = vmatmul.f32.gmra.mxu2 %v2596_v46  ;;  %v2597_v0 = vld [vmem:[#allocation2 + $0xa8] sm:$0xff] }
 0x1d8   : > { %v1066_v20 = vpop.f32.mrf.mxu1 }
 0x1d9   : > { %1989 = vmatmul.f32.gmra.mxu3 %v4298_v24  ;;  %2144 = vmatmul.f32.gmra.mxu0 %v4299_v58 }
 0x1da   : > { %v1286_v57 = vpop.f32.mrf.mxu2 }
 0x1db   : > { %v1332_v51 = vadd.f32 %v1286_v57, %v1061_v62  ;;  %1695 = vmatmul.f32.gmra.mxu1 %v4296_v53  ;;  %v4303_v57 = vld [vmem:[#allocation33_spill] sm:$0xff] }
 0x1dc   : > { %v1431_v49 = vpop.f32.mrf.mxu3 }
 0x1dd   : > { %v1477_v42 = vadd.f32 %v1431_v49, %v1332_v51  ;;  %v1067_v51 = vadd.f32 %v1066_v20, %v4303_v57  ;;  %v4304_v49 = vld [vmem:[#allocation22_spill] sm:$0xff] }
 0x1de   : > { %v1592_v61 = vpop.f32.mrf.mxu0 }
 0x1df   : > { %v3980_v14 = vadd.f32 %v1586_v27, %v1477_v42  ;;  %1837 = vmatmul.f32.gmra.mxu2 %v2597_v0  ;;  %v2598_v27 = vld [vmem:[#allocation2 + $0xb0] sm:$0xff] }
 0x1e0   : > { %v1069_v26 = vpop.f32.mrf.mxu1 }
 0x1e1   : > { %1992 = vmatmul.f32.gmra.mxu3 %v4301_v12  ;;  %2147 = vmatmul.f32.gmra.mxu0 %v4302_v6 }
 0x1e2   : > { %v1289_v9 = vpop.f32.mrf.mxu2 }
 0x1e3   : > { %v1333_v41 = vadd.f32 %v1289_v9, %v1064_v52  ;;  %1698 = vmatmul.f32.gmra.mxu1 %v4299_v58 }
 0x1e4   : > { %v1434_v46 = vpop.f32.mrf.mxu3 }
 0x1e5   : > { %v1478_v53 = vadd.f32 %v1434_v46, %v1333_v41  ;;  %v4306_v41 = vld [vmem:[#allocation36_spill] sm:$0xff] }
 0x1e6   : > { %v1595_v15 = vpop.f32.mrf.mxu0  ;;  %v1070_v46 = vadd.f32 %v1069_v26, %v4306_v41 }
 0x1e7   : > { %v3986_v62 = vadd.f32 %v1589_v36, %v1478_v53  ;;  %1840 = vmatmul.f32.gmra.mxu2 %v2598_v27  ;;  %v2599_v36 = vld [vmem:[#allocation2 + $0xc0] sm:$0xff] }
 0x1e8   : > { %v1072_v24 = vpop.f32.mrf.mxu1  ;;  %v4307_v53 = vld [vmem:[#allocation5_spill] sm:$0xff] }
 0x1e9   : > { %1995 = vmatmul.f32.gmra.mxu3 %v4304_v49  ;;  %2150 = vmatmul.f32.gmra.mxu0 %v4305_v33 }
 0x1ea   : > { %v1292_v42 = vpop.f32.mrf.mxu2 }
 0x1eb   : > { %v1334_v0 = vadd.f32 %v1292_v42, %v1067_v51  ;;  %1701 = vmatmul.f32.gmra.mxu1 %v4302_v6 }
 0x1ec   : > { %v1437_v29 = vpop.f32.mrf.mxu3 }
 0x1ed   : > { %v1479_v58 = vadd.f32 %v1437_v29, %v1334_v0  ;;  %v4308_v0 = vld [vmem:[#allocation38_spill] sm:$0xff] }
 0x1ee   : > { %v1598_v52 = vpop.f32.mrf.mxu0  ;;  %v1073_v29 = vadd.f32 %v1072_v24, %v4308_v0 }
 0x1ef   : > { %v3992_v12 = vadd.f32 %v1592_v61, %v1479_v58  ;;  %1843 = vmatmul.f32.gmra.mxu2 %v2599_v36  ;;  %v2600_v61 = vld [vmem:[#allocation2 + $0xc8] sm:$0xff]  ;;  %v4309_v58 = vld [vmem:[#allocation8_spill] sm:$0xff] }
 0x1f0   : > { %v1075_v9 = vpop.f32.mrf.mxu1 }
 0x1f1   : > { %1998 = vmatmul.f32.gmra.mxu3 %v4307_v53  ;;  %2153 = vmatmul.f32.gmra.mxu0 %v3653_v39 }
 0x1f2   : > { %v1295_v20 = vpop.f32.mrf.mxu2 }
 0x1f3   : > { %v1335_v27 = vadd.f32 %v1295_v20, %v1070_v46  ;;  %1704 = vmatmul.f32.gmra.mxu1 %v4305_v33 }
 0x1f4   : > { %v1440_v57 = vpop.f32.mrf.mxu3 }
 0x1f5   : > { %v1480_v6 = vadd.f32 %v1440_v57, %v1335_v27  ;;  %v4310_v27 = vld [vmem:[#allocation41_spill] sm:$0xff] }
 0x1f6   : > { %v1601_v51 = vpop.f32.mrf.mxu0  ;;  %v1076_v57 = vadd.f32 %v1075_v9, %v4310_v27 }
 0x1f7   : > { %v3998_v49 = vadd.f32 %v1595_v15, %v1480_v6  ;;  %1846 = vmatmul.f32.gmra.mxu2 %v2600_v61  ;;  %v2601_v15 = vld [vmem:[#allocation2 + $0xd8] sm:$0xff]  ;;  %v4311_v6 = vld [vmem:[#allocation11_spill] sm:$0xff] }
 0x1f8   : > { %v1078_v42 = vpop.f32.mrf.mxu1 }
 0x1f9   : > { %2001 = vmatmul.f32.gmra.mxu3 %v4309_v58  ;;  %2156 = vmatmul.f32.gmra.mxu0 %v3668_v5 }
 0x1fa   : > { %v1298_v26 = vpop.f32.mrf.mxu2 }
 0x1fb   : > { %v1336_v36 = vadd.f32 %v1298_v26, %v1073_v29  ;;  %1707 = vmatmul.f32.gmra.mxu1 %v3653_v39 }
 0x1fc   : > { %v1443_v41 = vpop.f32.mrf.mxu3 }
 0x1fd   : > { %v1481_v33 = vadd.f32 %v1443_v41, %v1336_v36  ;;  %v4312_v36 = vld [vmem:[#allocation44_spill] sm:$0xff] }
 0x1fe   : > { %v1604_v46 = vpop.f32.mrf.mxu0  ;;  %v1079_v41 = vadd.f32 %v1078_v42, %v4312_v36 }
 0x1ff   : > { %v4004_v53 = vadd.f32 %v1598_v52, %v1481_v33  ;;  %1849 = vmatmul.f32.gmra.mxu2 %v2601_v15  ;;  %v2602_v52 = vld [vmem:[#allocation2 + $0xe0] sm:$0xff]  ;;  %v4313_v33 = vld [vmem:[#allocation14_spill] sm:$0xff] }
 0x200   : > { %v1663_v20 = vpop.f32.mrf.mxu1 }
 0x201   : > { %2004 = vmatmul.f32.gmra.mxu3 %v4311_v6  ;;  %2159 = vmatmul.f32.gmra.mxu0 %v3688_v30 }
 0x202   : > { %v1301_v24 = vpop.f32.mrf.mxu2 }
 0x203   : > { %v1337_v61 = vadd.f32 %v1301_v24, %v1076_v57  ;;  %1710 = vmatmul.f32.gmra.mxu1 %v3668_v5 }
 0x204   : > { %v1446_v0 = vpop.f32.mrf.mxu3 }
 0x205   : > { %v1482_v39 = vadd.f32 %v1446_v0, %v1337_v61  ;;  %v1759_v61 = vadd.f32 %v1663_v20, %v3655_v10  ;;  %v2604_v10 = vld [vmem:[#allocation2 + $0xf8] sm:$0xff] }
 0x206   : > { %v2115_v29 = vpop.f32.mrf.mxu0 }
 0x207   : > { %v4010_v58 = vadd.f32 %v1601_v51, %v1482_v39  ;;  %1852 = vmatmul.f32.gmra.mxu2 %v2602_v52  ;;  %v2603_v51 = vld [vmem:[#allocation2 + $0xf0] sm:$0xff] }
 0x208   : > { %v1666_v26 = vpop.f32.mrf.mxu1 }
 0x209   : > { %2007 = vmatmul.f32.gmra.mxu3 %v4313_v33  ;;  %2162 = vmatmul.f32.gmra.mxu0 %v3703_v55  ;;  %v1760_v20 = vadd.f32 %v1666_v26, %v3670_v1 }
 0x20a   : > { %v1304_v9 = vpop.f32.mrf.mxu2 }
 0x20b   : > { %v1338_v15 = vadd.f32 %v1304_v9, %v1079_v41  ;;  %1713 = vmatmul.f32.gmra.mxu1 %v3688_v30 }
 0x20c   : > { %v1449_v5 = vpop.f32.mrf.mxu3 }
 0x20d   : > { %v1483_v27 = vadd.f32 %v1449_v5, %v1338_v15 }
 0x20e   : > { %v2118_v57 = vpop.f32.mrf.mxu0 }
 0x20f   : > { %v4016_v6 = vadd.f32 %v1604_v46, %v1483_v27  ;;  %1855 = vmatmul.f32.gmra.mxu2 %v2603_v51 }
 0x210   : > { %v1669_v24 = vpop.f32.mrf.mxu1 }
 0x211   : > { %2010 = vmatmul.f32.gmra.mxu3 %v3225_v43  ;;  %2165 = vmatmul.f32.gmra.mxu0 %v3723_v19  ;;  %v1761_v5 = vadd.f32 %v1669_v24, %v3690_v44  ;;  %v2606_v44 = vld [vmem:[#allocation2 + $0x110] sm:$0xff] }
 0x212   : > { %v1808_v42 = vpop.f32.mrf.mxu2 }
 0x213   : > { %v1904_v0 = vadd.f32 %v1808_v42, %v1759_v61  ;;  %1716 = vmatmul.f32.gmra.mxu1 %v3703_v55 }
 0x214   : > { %v1963_v30 = vpop.f32.mrf.mxu3 }
 0x215   : > { %v2059_v39 = vadd.f32 %v1963_v30, %v1904_v0 }
 0x216   : > { %v2121_v46 = vpop.f32.mrf.mxu0 }
 0x217   : > { %v2211_v52 = vadd.f32 %v2115_v29, %v2059_v39  ;;  %1858 = vmatmul.f32.gmra.mxu2 %v2604_v10  ;;  %v2605_v29 = vld [vmem:[#allocation2 + $0x108] sm:$0xff] }
 0x218   : > { %v1672_v43 = vpop.f32.mrf.mxu1 }
 0x219   : > { %2243 = vst [vmem:[%s4027_s20] sm:$0xff] %v2211_v52  ;;  %2013 = vmatmul.f32.gmra.mxu3 %v3269_v2  ;;  %2168 = vmatmul.f32.gmra.mxu0 %v3738_v47  ;;  %v2313_v1 = vmul.f32 %v2211_v52, %v2211_v52  ;;  %v1762_v39 = vadd.f32 %v1672_v43, %v3705_v59  ;;  %v4314_v43 = vld [vmem:[#allocation46_spill] sm:$0xff] }
 0x21a   : > { %v1811_v55 = vpop.f32.mrf.mxu2 }
 0x21b   : > { %v1905_v36 = vadd.f32 %v1811_v55, %v1760_v20  ;;  %1719 = vmatmul.f32.gmra.mxu1 %v3723_v19 }
 0x21c   : > { %v1966_v41 = vpop.f32.mrf.mxu3 }
 0x21d   : > { %v2060_v33 = vadd.f32 %v1966_v41, %v1905_v36 }
 0x21e   : > { %v2124_v9 = vpop.f32.mrf.mxu0 }
 0x21f   : > { %v2212_v15 = vadd.f32 %v2118_v57, %v2060_v33  ;;  %1861 = vmatmul.f32.gmra.mxu2 %v2605_v29  ;;  %v4315_v29 = vld [vmem:[#allocation6_spill] sm:$0xff] }
 0x220   : > { %v1675_v27 = vpop.f32.mrf.mxu1 }
 0x221   : > { %2244 = vst [vmem:[%s4027_s20 + $0x8] sm:$0xff] %v2212_v15  ;;  %v2275_v26 = vadd.f32 %v2212_v15, %v2211_v52  ;;  %v2314_v2 = vmul.f32 %v2212_v15, %v2212_v15  ;;  %2016 = vmatmul.f32.gmra.mxu3 %v3304_v48  ;;  %2171 = vmatmul.f32.gmra.mxu0 %v3760_v32 }
 0x222   : > { %v1814_v51 = vpop.f32.mrf.mxu2  ;;  %v1763_v33 = vadd.f32 %v1675_v27, %v4314_v43  ;;  %v4321_v43 = vld [vmem:[#allocation55_spill] sm:$0xff] }
 0x223   : > { %v2345_v19 = vadd.f32 %v2314_v2, %v2313_v1  ;;  %v1906_v61 = vadd.f32 %v1814_v51, %v1761_v5  ;;  %1722 = vmatmul.f32.gmra.mxu1 %v3738_v47  ;;  %v4316_v51 = vld [vmem:[#allocation49_spill] sm:$0xff] }
 0x224   : > { %v1969_v57 = vpop.f32.mrf.mxu3 }
 0x225   : > { %v2061_v42 = vadd.f32 %v1969_v57, %v1906_v61 }
 0x226   : > { %v2127_v0 = vpop.f32.mrf.mxu0 }
 0x227   : > { %v2213_v30 = vadd.f32 %v2121_v46, %v2061_v42  ;;  %1864 = vmatmul.f32.gmra.mxu2 %v2606_v44 }
 0x228   : > { %v1678_v24 = vpop.f32.mrf.mxu1 }
 0x229   : > { %2245 = vst [vmem:[%s4027_s20 + $0x10] sm:$0xff] %v2213_v30  ;;  %v2276_v52 = vadd.f32 %v2275_v26, %v2213_v30  ;;  %v2315_v48 = vmul.f32 %v2213_v30, %v2213_v30  ;;  %2019 = vmatmul.f32.gmra.mxu3 %v3331_v25  ;;  %2174 = vmatmul.f32.gmra.mxu0 %v3777_v11  ;;  %v4318_v30 = vld [vmem:[#allocation9_spill] sm:$0xff] }
 0x22a   : > { %v1817_v10 = vpop.f32.mrf.mxu2 }
 0x22b   : > { %v2346_v20 = vadd.f32 %v2345_v19, %v2315_v48  ;;  %v1907_v47 = vadd.f32 %v1817_v10, %v1762_v39  ;;  %1725 = vmatmul.f32.gmra.mxu1 %v3760_v32  ;;  %v4317_v19 = vld [vmem:[#allocation47_spill] sm:$0xff] }
 0x22c   : > { %v1972_v55 = vpop.f32.mrf.mxu3  ;;  %v1764_v61 = vadd.f32 %v1678_v24, %v4317_v19 }
 0x22d   : > { %v2062_v46 = vadd.f32 %v1972_v55, %v1907_v47 }
 0x22e   : > { %v2130_v36 = vpop.f32.mrf.mxu0 }
 0x22f   : > { %v2214_v41 = vadd.f32 %v2124_v9, %v2062_v46  ;;  %1867 = vmatmul.f32.gmra.mxu2 %v3748_v54 }
 0x230   : > { %v1681_v59 = vpop.f32.mrf.mxu1 }
 0x231   : > { %2246 = vst [vmem:[%s4027_s20 + $0x18] sm:$0xff] %v2214_v41  ;;  %v2277_v15 = vadd.f32 %v2276_v52, %v2214_v41  ;;  %v2316_v25 = vmul.f32 %v2214_v41, %v2214_v41  ;;  %2022 = vmatmul.f32.gmra.mxu3 %v4315_v29  ;;  %2177 = vmatmul.f32.gmra.mxu0 %v3802_v28  ;;  %v4320_v41 = vld [vmem:[#allocation12_spill] sm:$0xff] }
 0x232   : > { %v1820_v5 = vpop.f32.mrf.mxu2 }
 0x233   : > { %v2347_v1 = vadd.f32 %v2346_v20, %v2316_v25  ;;  %v1908_v32 = vadd.f32 %v1820_v5, %v1763_v33  ;;  %1728 = vmatmul.f32.gmra.mxu1 %v3777_v11  ;;  %v4319_v20 = vld [vmem:[#allocation48_spill] sm:$0xff] }
 0x234   : > { %v1975_v26 = vpop.f32.mrf.mxu3  ;;  %v1765_v47 = vadd.f32 %v1681_v59, %v4319_v20  ;;  %v4322_v5 = vld [vmem:[#allocation52_spill] sm:$0xff] }
 0x235   : > { %v2063_v9 = vadd.f32 %v1975_v26, %v1908_v32 }
 0x236   : > { %v2133_v2 = vpop.f32.mrf.mxu0 }
 0x237   : > { %v2215_v54 = vadd.f32 %v2127_v0, %v2063_v9  ;;  %1870 = vmatmul.f32.gmra.mxu2 %v4316_v51  ;;  %v4325_v51 = vld [vmem:[#allocation58_spill] sm:$0xff] }
 0x238   : > { %v1684_v27 = vpop.f32.mrf.mxu1 }
 0x239   : > { %2247 = vst [vmem:[%s4027_s20 + $0x20] sm:$0xff] %v2215_v54  ;;  %v2278_v57 = vadd.f32 %v2277_v15, %v2215_v54  ;;  %v2317_v42 = vmul.f32 %v2215_v54, %v2215_v54  ;;  %2025 = vmatmul.f32.gmra.mxu3 %v4318_v30  ;;  %2180 = vmatmul.f32.gmra.mxu0 %v3823_v45  ;;  %v4324_v54 = vld [vmem:[#allocation15_spill] sm:$0xff] }
 0x23a   : > { %v1823_v44 = vpop.f32.mrf.mxu2 }
 0x23b   : > { %v2348_v39 = vadd.f32 %v2347_v1, %v2317_v42  ;;  %v1909_v11 = vadd.f32 %v1823_v44, %v1764_v61  ;;  %1731 = vmatmul.f32.gmra.mxu1 %v3802_v28  ;;  %v4323_v1 = vld [vmem:[#allocation50_spill] sm:$0xff] }
 0x23c   : > { %v1978_v52 = vpop.f32.mrf.mxu3  ;;  %v1766_v32 = vadd.f32 %v1684_v27, %v4323_v1  ;;  %v4326_v44 = vld [vmem:[#allocation54_spill] sm:$0xff] }
 0x23d   : > { %v2064_v0 = vadd.f32 %v1978_v52, %v1909_v11 }
 0x23e   : > { %v2136_v48 = vpop.f32.mrf.mxu0 }
 0x23f   : > { %v2216_v10 = vadd.f32 %v2130_v36, %v2064_v0  ;;  %1873 = vmatmul.f32.gmra.mxu2 %v3786_v38 }
 0x240   : > { %v1687_v24 = vpop.f32.mrf.mxu1 }
 0x241   : > { %2248 = vst [vmem:[%s4027_s20 + $0x28] sm:$0xff] %v2216_v10  ;;  %v2279_v55 = vadd.f32 %v2278_v57, %v2216_v10  ;;  %v2318_v46 = vmul.f32 %v2216_v10, %v2216_v10  ;;  %2028 = vmatmul.f32.gmra.mxu3 %v4320_v41  ;;  %2183 = vmatmul.f32.gmra.mxu0 %v4321_v43  ;;  %v4328_v10 = vld [vmem:[#allocation17_spill] sm:$0xff] }
 0x242   : > { %v1826_v33 = vpop.f32.mrf.mxu2 }
 0x243   : > { %v2349_v15 = vadd.f32 %v2348_v39, %v2318_v46  ;;  %v1910_v28 = vadd.f32 %v1826_v33, %v1765_v47  ;;  %1734 = vmatmul.f32.gmra.mxu1 %v3823_v45  ;;  %v4327_v39 = vld [vmem:[#allocation51_spill] sm:$0xff]  ;;  %v4329_v33 = vld [vmem:[#allocation57_spill] sm:$0xff] }
 0x244   : > { %v1981_v25 = vpop.f32.mrf.mxu3  ;;  %v1767_v11 = vadd.f32 %v1687_v24, %v4327_v39 }
 0x245   : > { %v2065_v36 = vadd.f32 %v1981_v25, %v1910_v28 }
 0x246   : > { %v2139_v29 = vpop.f32.mrf.mxu0 }
 0x247   : > { %v2217_v38 = vadd.f32 %v2133_v2, %v2065_v36  ;;  %1876 = vmatmul.f32.gmra.mxu2 %v4322_v5 }
 0x248   : > { %v1690_v59 = vpop.f32.mrf.mxu1 }
 0x249   : > { %2249 = vst [vmem:[%s4027_s20 + $0x30] sm:$0xff] %v2217_v38  ;;  %v2280_v26 = vadd.f32 %v2279_v55, %v2217_v38  ;;  %v2319_v9 = vmul.f32 %v2217_v38, %v2217_v38  ;;  %2031 = vmatmul.f32.gmra.mxu3 %v4324_v54  ;;  %2186 = vmatmul.f32.gmra.mxu0 %v4325_v51  ;;  %v4331_v38 = vld [vmem:[#allocation19_spill] sm:$0xff] }
 0x24a   : > { %v1829_v19 = vpop.f32.mrf.mxu2 }
 0x24b   : > { %v2350_v61 = vadd.f32 %v2349_v15, %v2319_v9  ;;  %v1911_v45 = vadd.f32 %v1829_v19, %v1766_v32  ;;  %1737 = vmatmul.f32.gmra.mxu1 %v4321_v43  ;;  %v4330_v15 = vld [vmem:[#allocation53_spill] sm:$0xff]  ;;  %v4332_v19 = vld [vmem:[#allocation56_spill] sm:$0xff] }
 0x24c   : > { %v1984_v57 = vpop.f32.mrf.mxu3  ;;  %v1768_v28 = vadd.f32 %v1690_v59, %v4330_v15 }
 0x24d   : > { %v2066_v2 = vadd.f32 %v1984_v57, %v1911_v45 }
 0x24e   : > { %v2142_v42 = vpop.f32.mrf.mxu0 }
 0x24f   : > { %v2218_v30 = vadd.f32 %v2136_v48, %v2066_v2  ;;  %1879 = vmatmul.f32.gmra.mxu2 %v4326_v44  ;;  %v4333_v2 = vld [vmem:[#allocation23_spill] sm:$0xff]  ;;  %v1640_v44 = vrot.slane %v3866_v56, 2 }
 0x250   : > { %v1693_v27 = vpop.f32.mrf.mxu1 }
 0x251   : > { %2250 = vst [vmem:[%s4027_s20 + $0x38] sm:$0xff] %v2218_v30  ;;  %v2281_v52 = vadd.f32 %v2280_v26, %v2218_v30  ;;  %v2320_v0 = vmul.f32 %v2218_v30, %v2218_v30  ;;  %2034 = vmatmul.f32.gmra.mxu3 %v4328_v10  ;;  %2189 = vmatmul.f32.gmra.mxu0 %v3877_v50 }
 0x252   : > { %v1832_v20 = vpop.f32.mrf.mxu2 }
 0x253   : > { %v2351_v47 = vadd.f32 %v2350_v61, %v2320_v0  ;;  %v1912_v55 = vadd.f32 %v1832_v20, %v1767_v11  ;;  %1740 = vmatmul.f32.gmra.mxu1 %v4325_v51  ;;  %v2607_v51 = vld [vmem:[#allocation2 + $0x168] sm:$0xff]  ;;  %v1769_v61 = vadd.f32 %v1693_v27, %v4332_v19  ;;  %v2608_v20 = vld [vmem:[#allocation2 + $0x170] sm:$0xff] }
 0x254   : > { %v1987_v46 = vpop.f32.mrf.mxu3 }
 0x255   : > { %v2067_v48 = vadd.f32 %v1987_v46, %v1912_v55  ;;  %v4334_v55 = vld [vmem:[#allocation59_spill] sm:$0xff] }
 0x256   : > { %v2145_v41 = vpop.f32.mrf.mxu0 }
 0x257   : > { %v2219_v43 = vadd.f32 %v2139_v29, %v2067_v48  ;;  %1882 = vmatmul.f32.gmra.mxu2 %v4329_v33  ;;  %v4335_v33 = vld [vmem:[#allocation24_spill] sm:$0xff] }
 0x258   : > { %v1696_v24 = vpop.f32.mrf.mxu1 }
 0x259   : > { %2251 = vst [vmem:[%s4027_s20 + $0x40] sm:$0xff] %v2219_v43  ;;  %v2282_v25 = vadd.f32 %v2281_v52, %v2219_v43  ;;  %v2321_v36 = vmul.f32 %v2219_v43, %v2219_v43  ;;  %2037 = vmatmul.f32.gmra.mxu3 %v4331_v38  ;;  %2192 = vmatmul.f32.gmra.mxu0 %v3895_v8 }
 0x25a   : > { %v1835_v5 = vpop.f32.mrf.mxu2  ;;  %v1770_v46 = vadd.f32 %v1696_v24, %v4334_v55 }
 0x25b   : > { %v2352_v1 = vadd.f32 %v2351_v47, %v2321_v36  ;;  %v1913_v32 = vadd.f32 %v1835_v5, %v1768_v28  ;;  %1743 = vmatmul.f32.gmra.mxu1 %v3877_v50  ;;  %v1639_v50 = vrot.slane %v3870_v22, 2 }
 0x25c   : > { %v1990_v26 = vpop.f32.mrf.mxu3 }
 0x25d   : > { %v2068_v29 = vadd.f32 %v1990_v26, %v1913_v32  ;;  %v1641_v0 = vsel %vm1081_vm1, %v1639_v50, %v1640_v44  ;;  %v549_v50 = vld [vmem:[#allocation2 + $0x1a8] sm:$0x3] }
 0x25e   : > { %v2148_v9 = vpop.f32.mrf.mxu0 }
 0x25f   : > { %v2220_v54 = vadd.f32 %v2142_v42, %v2068_v29  ;;  %1885 = vmatmul.f32.gmra.mxu2 %v2607_v51 }
 0x260   : > { %v1699_v59 = vpop.f32.mrf.mxu1 }
 0x261   : > { %2252 = vst [vmem:[%s4027_s20 + $0x48] sm:$0xff] %v2220_v54  ;;  %v2283_v45 = vadd.f32 %v2282_v25, %v2220_v54  ;;  %v2322_v57 = vmul.f32 %v2220_v54, %v2220_v54  ;;  %2040 = vmatmul.f32.gmra.mxu3 %v4333_v2  ;;  %2195 = vmatmul.f32.gmra.mxu0 %v3909_v23  ;;  %v4336_v54 = vld [vmem:[#allocation20_spill] sm:$0xff] }
 0x262   : > { %v1838_v30 = vpop.f32.mrf.mxu2  ;;  %v1771_v32 = vadd.f32 %v1699_v59, %v3882_v63 }
 0x263   : > { %v2353_v39 = vadd.f32 %v2352_v1, %v2322_v57  ;;  %v1914_v42 = vadd.f32 %v1838_v30, %v1769_v61  ;;  %1746 = vmatmul.f32.gmra.mxu1 %v3895_v8  ;;  %v1642_v8 = vrot.slane %v3885_v13, 2 }
 0x264   : > { %v1993_v11 = vpop.f32.mrf.mxu3 }
 0x265   : > { %v2069_v52 = vadd.f32 %v1993_v11, %v1914_v42  ;;  %v1643_v5 = vsel %vm1081_vm1, %v1640_v44, %v1642_v8  ;;  %v2094_v42 = vrot.slane %v549_v50, 2 }
 0x266   : > { %v2151_v27 = vpop.f32.mrf.mxu0 }
 0x267   : > { %v2221_v10 = vadd.f32 %v2145_v41, %v2069_v52  ;;  %1888 = vmatmul.f32.gmra.mxu2 %v2608_v20 }
 0x268   : > { %v1702_v47 = vpop.f32.mrf.mxu1 }
 0x269   : > { %2253 = vst [vmem:[%s4027_s20 + $0x50] sm:$0xff] %v2221_v10  ;;  %v2284_v48 = vadd.f32 %v2283_v45, %v2221_v10  ;;  %v2323_v43 = vmul.f32 %v2221_v10, %v2221_v10  ;;  %2043 = vmatmul.f32.gmra.mxu3 %v4335_v33  ;;  %2198 = vmatmul.f32.gmra.mxu0 %v1641_v0 }
 0x26a   : > { %v1841_v15 = vpop.f32.mrf.mxu2  ;;  %v1772_v59 = vadd.f32 %v1702_v47, %v3900_v34 }
 0x26b   : > { %v2354_v28 = vadd.f32 %v2353_v39, %v2323_v43  ;;  %v1915_v25 = vadd.f32 %v1841_v15, %v1770_v46  ;;  %1749 = vmatmul.f32.gmra.mxu1 %v3909_v23  ;;  %v2609_v23 = vld [vmem:[#allocation2] sm:$0xff] }
 0x26c   : > { %v1996_v41 = vpop.f32.mrf.mxu3  ;;  %v2091_v51 = vrot.slane %v2609_v23, 2  ;;  %v1939_v39 = vrot.slane %v2609_v23, 1 }
 0x26d   : > { %v2070_v36 = vadd.f32 %v1996_v41, %v1915_v25 }
 0x26e   : > { %v2154_v38 = vpop.f32.mrf.mxu0  ;;  %v2095_v10 = vsel %vm1081_vm1, %v2091_v51, %v2094_v42 }
 0x26f   : > { %v2222_v24 = vadd.f32 %v2148_v9, %v2070_v36  ;;  %1891 = vmatmul.f32.gmra.mxu2 %v3870_v22 }
 0x270   : > { %v1705_v1 = vpop.f32.mrf.mxu1 }
 0x271   : > { %2254 = vst [vmem:[%s4027_s20 + $0x58] sm:$0xff] %v2222_v24  ;;  %v2285_v26 = vadd.f32 %v2284_v48, %v2222_v24  ;;  %v2324_v29 = vmul.f32 %v2222_v24, %v2222_v24  ;;  %2046 = vmatmul.f32.gmra.mxu3 %v4336_v54  ;;  %2201 = vmatmul.f32.gmra.mxu0 %v1643_v5  ;;  %v1942_v48 = vrot.slane %v549_v50, 1 }
 0x272   : > { %v1844_v13 = vpop.f32.mrf.mxu2  ;;  %v1773_v47 = vadd.f32 %v1705_v1, %v3911_v60 }
 0x273   : > { %v2355_v19 = vadd.f32 %v2354_v28, %v2324_v29  ;;  %v1916_v61 = vadd.f32 %v1844_v13, %v1771_v32  ;;  %1752 = vmatmul.f32.gmra.mxu1 %v1641_v0  ;;  %v1943_v28 = vsel %vm742_vm0, %v1939_v39, %v1942_v48 }
 0x274   : > { %v1999_v45 = vpop.f32.mrf.mxu3 }
 0x275   : > { %v2071_v9 = vadd.f32 %v1999_v45, %v1916_v61 }
 0x276   : > { %v2157_v57 = vpop.f32.mrf.mxu0 }
 0x277   : > { %v2223_v22 = vadd.f32 %v2151_v27, %v2071_v9  ;;  %1894 = vmatmul.f32.gmra.mxu2 %v3866_v56 }
 0x278   : > { %v1708_v63 = vpop.f32.mrf.mxu1 }
 0x279   : > { %2255 = vst [vmem:[%s4027_s20 + $0x60] sm:$0xff] %v2223_v22  ;;  %v2286_v2 = vadd.f32 %v2285_v26, %v2223_v22  ;;  %v2325_v30 = vmul.f32 %v2223_v22, %v2223_v22  ;;  %2049 = vmatmul.f32.gmra.mxu3 %v3898_v4  ;;  %2204 = vmatmul.f32.gmra.mxu0 %v2091_v51 }
 0x27a   : > { %v1847_v44 = vpop.f32.mrf.mxu2  ;;  %v1774_v60 = vadd.f32 %v1708_v63, %v3918_v17 }
 0x27b   : > { %v2356_v11 = vadd.f32 %v2355_v19, %v2325_v30  ;;  %v1917_v52 = vadd.f32 %v1847_v44, %v1772_v59  ;;  %1755 = vmatmul.f32.gmra.mxu1 %v1643_v5 }
 0x27c   : > { %v2002_v27 = vpop.f32.mrf.mxu3 }
 0x27d   : > { %v2072_v0 = vadd.f32 %v2002_v27, %v1917_v52 }
 0x27e   : > { %v2160_v56 = vpop.f32.mrf.mxu0 }
 0x27f   : > { %v2224_v34 = vadd.f32 %v2154_v38, %v2072_v0  ;;  %1897 = vmatmul.f32.gmra.mxu2 %v2609_v23 }
 0x280   : > { %v1711_v20 = vpop.f32.mrf.mxu1 }
 0x281   : > { %2256 = vst [vmem:[%s4027_s20 + $0x68] sm:$0xff] %v2224_v34  ;;  %v2287_v4 = vadd.f32 %v2286_v2, %v2224_v34  ;;  %v2326_v55 = vmul.f32 %v2224_v34, %v2224_v34  ;;  %2052 = vmatmul.f32.gmra.mxu3 %v1939_v39  ;;  %2207 = vmatmul.f32.gmra.mxu0 %v2095_v10 }
 0x282   : > { %v1850_v46 = vpop.f32.mrf.mxu2  ;;  %v1775_v19 = vadd.f32 %v1711_v20, %v3924_v7 }
 0x283   : > { %v2357_v43 = vadd.f32 %v2356_v11, %v2326_v55  ;;  %v1918_v33 = vadd.f32 %v1850_v46, %v1773_v47 }
 0x284   : > { %v2005_v15 = vpop.f32.mrf.mxu3 }
 0x285   : > { %v2073_v8 = vadd.f32 %v2005_v15, %v1918_v33 }
 0x286   : > { %v2163_v25 = vpop.f32.mrf.mxu0 }
 0x287   : > { %v2225_v41 = vadd.f32 %v2157_v57, %v2073_v8  ;;  %1900 = vmatmul.f32.gmra.mxu2 %v2609_v23 }
 0x288   : > { %v1714_v36 = vpop.f32.mrf.mxu1 }
 0x289   : > { %2257 = vst [vmem:[%s4027_s20 + $0x70] sm:$0xff] %v2225_v41  ;;  %v2288_v38 = vadd.f32 %v2287_v4, %v2225_v41  ;;  %v2327_v5 = vmul.f32 %v2225_v41, %v2225_v41  ;;  %2055 = vmatmul.f32.gmra.mxu3 %v1943_v28  ;;  %v1776_v30 = vadd.f32 %v1714_v36, %v3930_v35 }
 0x28a   : > { %v1853_v24 = vpop.f32.mrf.mxu2 }
 0x28b   : > { %v2358_v1 = vadd.f32 %v2357_v43, %v2327_v5  ;;  %v1919_v32 = vadd.f32 %v1853_v24, %v1774_v60 }
 0x28c   : > { %v2008_v26 = vpop.f32.mrf.mxu3 }
 0x28d   : > { %v2074_v29 = vadd.f32 %v2008_v26, %v1919_v32 }
 0x28e   : > { %v2166_v54 = vpop.f32.mrf.mxu0 }
 0x28f   : > { %v2226_v13 = vadd.f32 %v2160_v56, %v2074_v29 }
 0x290   : > { %v1717_v51 = vpop.f32.mrf.mxu1 }
 0x291   : > { %2258 = vst [vmem:[%s4027_s20 + $0x78] sm:$0xff] %v2226_v13  ;;  %v2289_v23 = vadd.f32 %v2288_v38, %v2226_v13  ;;  %v2328_v61 = vmul.f32 %v2226_v13, %v2226_v13  ;;  %v1777_v10 = vadd.f32 %v1717_v51, %v3936_v37 }
 0x292   : > { %v1856_v45 = vpop.f32.mrf.mxu2 }
 0x293   : > { %v2359_v17 = vadd.f32 %v2358_v1, %v2328_v61  ;;  %v1920_v9 = vadd.f32 %v1856_v45, %v1775_v19 }
 0x294   : > { %v2011_v57 = vpop.f32.mrf.mxu3 }
 0x295   : > { %v2075_v22 = vadd.f32 %v2011_v57, %v1920_v9 }
 0x296   : > { %v2169_v63 = vpop.f32.mrf.mxu0 }
 0x297   : > { %v2227_v59 = vadd.f32 %v2163_v25, %v2075_v22 }
 0x298   : > { %v1720_v2 = vpop.f32.mrf.mxu1 }
 0x299   : > { %2259 = vst [vmem:[%s4027_s20 + $0x80] sm:$0xff] %v2227_v59  ;;  %v2290_v50 = vadd.f32 %v2289_v23, %v2227_v59  ;;  %v2329_v44 = vmul.f32 %v2227_v59, %v2227_v59  ;;  %v1778_v15 = vadd.f32 %v1720_v2, %v3942_v16 }
 0x29a   : > { %v1859_v39 = vpop.f32.mrf.mxu2 }
 0x29b   : > { %v2360_v42 = vadd.f32 %v2359_v17, %v2329_v44  ;;  %v1921_v7 = vadd.f32 %v1859_v39, %v1776_v30 }
 0x29c   : > { %v2014_v11 = vpop.f32.mrf.mxu3 }
 0x29d   : > { %v2076_v52 = vadd.f32 %v2014_v11, %v1921_v7 }
 0x29e   : > { %v2172_v27 = vpop.f32.mrf.mxu0 }
 0x29f   : > { %v2228_v0 = vadd.f32 %v2166_v54, %v2076_v52 }
 0x2a0   : > { %v1723_v56 = vpop.f32.mrf.mxu1 }
 0x2a1   : > { %2260 = vst [vmem:[%s4027_s20 + $0x88] sm:$0xff] %v2228_v0  ;;  %v2291_v34 = vadd.f32 %v2290_v50, %v2228_v0  ;;  %v2330_v20 = vmul.f32 %v2228_v0, %v2228_v0  ;;  %v1779_v1 = vadd.f32 %v1723_v56, %v3949_v31 }
 0x2a2   : > { %v1862_v47 = vpop.f32.mrf.mxu2 }
 0x2a3   : > { %v2361_v4 = vadd.f32 %v2360_v42, %v2330_v20  ;;  %v1922_v35 = vadd.f32 %v1862_v47, %v1777_v10 }
 0x2a4   : > { %v2017_v55 = vpop.f32.mrf.mxu3 }
 0x2a5   : > { %v2077_v46 = vadd.f32 %v2017_v55, %v1922_v35 }
 0x2a6   : > { %v2175_v48 = vpop.f32.mrf.mxu0 }
 0x2a7   : > { %v2229_v43 = vadd.f32 %v2169_v63, %v2077_v46 }
 0x2a8   : > { %v1726_v33 = vpop.f32.mrf.mxu1 }
 0x2a9   : > { %2261 = vst [vmem:[%s4027_s20 + $0x90] sm:$0xff] %v2229_v43  ;;  %v2292_v8 = vadd.f32 %v2291_v34, %v2229_v43  ;;  %v2331_v28 = vmul.f32 %v2229_v43, %v2229_v43  ;;  %v1780_v45 = vadd.f32 %v1726_v33, %v3956_v40 }
 0x2aa   : > { %v1865_v25 = vpop.f32.mrf.mxu2 }
 0x2ab   : > { %v2362_v41 = vadd.f32 %v2361_v4, %v2331_v28  ;;  %v1923_v37 = vadd.f32 %v1865_v25, %v1778_v15 }
 0x2ac   : > { %v2020_v36 = vpop.f32.mrf.mxu3 }
 0x2ad   : > { %v2078_v60 = vadd.f32 %v2020_v36, %v1923_v37 }
 0x2ae   : > { %v2178_v38 = vpop.f32.mrf.mxu0 }
 0x2af   : > { %v2230_v5 = vadd.f32 %v2172_v27, %v2078_v60 }
 0x2b0   : > { %v1729_v24 = vpop.f32.mrf.mxu1 }
 0x2b1   : > { %2262 = vst [vmem:[%s4027_s20 + $0x98] sm:$0xff] %v2230_v5  ;;  %v2293_v32 = vadd.f32 %v2292_v8, %v2230_v5  ;;  %v2332_v26 = vmul.f32 %v2230_v5, %v2230_v5  ;;  %v1781_v44 = vadd.f32 %v1729_v24, %v3962_v21 }
 0x2b2   : > { %v1868_v29 = vpop.f32.mrf.mxu2 }
 0x2b3   : > { %v2363_v54 = vadd.f32 %v2362_v41, %v2332_v26  ;;  %v1924_v16 = vadd.f32 %v1868_v29, %v1779_v1 }
 0x2b4   : > { %v2023_v13 = vpop.f32.mrf.mxu3 }
 0x2b5   : > { %v2079_v51 = vadd.f32 %v2023_v13, %v1924_v16 }
 0x2b6   : > { %v2181_v19 = vpop.f32.mrf.mxu0 }
 0x2b7   : > { %v2231_v23 = vadd.f32 %v2175_v48, %v2079_v51 }
 0x2b8   : > { %v1732_v61 = vpop.f32.mrf.mxu1 }
 0x2b9   : > { %2263 = vst [vmem:[%s4027_s20 + $0xa0] sm:$0xff] %v2231_v23  ;;  %v2294_v17 = vadd.f32 %v2293_v32, %v2231_v23  ;;  %v2333_v9 = vmul.f32 %v2231_v23, %v2231_v23  ;;  %v1782_v10 = vadd.f32 %v1732_v61, %v3968_v3 }
 0x2ba   : > { %v1871_v57 = vpop.f32.mrf.mxu2 }
 0x2bb   : > { %v2364_v22 = vadd.f32 %v2363_v54, %v2333_v9  ;;  %v1925_v31 = vadd.f32 %v1871_v57, %v1780_v45 }
 0x2bc   : > { %v2026_v63 = vpop.f32.mrf.mxu3 }
 0x2bd   : > { %v2080_v59 = vadd.f32 %v2026_v63, %v1925_v31 }
 0x2be   : > { %v2184_v2 = vpop.f32.mrf.mxu0 }
 0x2bf   : > { %v2232_v30 = vadd.f32 %v2178_v38, %v2080_v59 }
 0x2c0   : > { %v1735_v50 = vpop.f32.mrf.mxu1 }
 0x2c1   : > { %2264 = vst [vmem:[%s4027_s20 + $0xa8] sm:$0xff] %v2232_v30  ;;  %v2295_v39 = vadd.f32 %v2294_v17, %v2232_v30  ;;  %v2334_v42 = vmul.f32 %v2232_v30, %v2232_v30  ;;  %v1783_v33 = vadd.f32 %v1735_v50, %v3974_v18 }
 0x2c2   : > { %v1874_v7 = vpop.f32.mrf.mxu2 }
 0x2c3   : > { %v2365_v11 = vadd.f32 %v2364_v22, %v2334_v42  ;;  %v1926_v40 = vadd.f32 %v1874_v7, %v1781_v44 }
 0x2c4   : > { %v2029_v52 = vpop.f32.mrf.mxu3 }
 0x2c5   : > { %v2081_v27 = vadd.f32 %v2029_v52, %v1926_v40 }
 0x2c6   : > { %v2187_v0 = vpop.f32.mrf.mxu0 }
 0x2c7   : > { %v2233_v56 = vadd.f32 %v2181_v19, %v2081_v27 }
 0x2c8   : > { %v1738_v4 = vpop.f32.mrf.mxu1 }
 0x2c9   : > { %2265 = vst [vmem:[%s4027_s20 + $0xb0] sm:$0xff] %v2233_v56  ;;  %v2296_v34 = vadd.f32 %v2295_v39, %v2233_v56  ;;  %v2335_v20 = vmul.f32 %v2233_v56, %v2233_v56  ;;  %v1784_v38 = vadd.f32 %v1738_v4, %v3980_v14 }
 0x2ca   : > { %v1877_v47 = vpop.f32.mrf.mxu2 }
 0x2cb   : > { %v2366_v35 = vadd.f32 %v2365_v11, %v2335_v20  ;;  %v1927_v21 = vadd.f32 %v1877_v47, %v1782_v10 }
 0x2cc   : > { %v2032_v55 = vpop.f32.mrf.mxu3 }
 0x2cd   : > { %v2082_v46 = vadd.f32 %v2032_v55, %v1927_v21 }
 0x2ce   : > { %v2190_v43 = vpop.f32.mrf.mxu0 }
 0x2cf   : > { %v2234_v48 = vadd.f32 %v2184_v2, %v2082_v46 }
 0x2d0   : > { %v1741_v37 = vpop.f32.mrf.mxu1 }
 0x2d1   : > { %2266 = vst [vmem:[%s4027_s20 + $0xb8] sm:$0xff] %v2234_v48  ;;  %v2297_v15 = vadd.f32 %v2296_v34, %v2234_v48  ;;  %v2336_v8 = vmul.f32 %v2234_v48, %v2234_v48  ;;  %v1785_v51 = vadd.f32 %v1741_v37, %v3986_v62 }
 0x2d2   : > { %v1880_v28 = vpop.f32.mrf.mxu2 }
 0x2d3   : > { %v2367_v25 = vadd.f32 %v2366_v35, %v2336_v8  ;;  %v1928_v3 = vadd.f32 %v1880_v28, %v1783_v33 }
 0x2d4   : > { %v2035_v41 = vpop.f32.mrf.mxu3 }
 0x2d5   : > { %v2083_v36 = vadd.f32 %v2035_v41, %v1928_v3 }
 0x2d6   : > { %v2193_v32 = vpop.f32.mrf.mxu0 }
 0x2d7   : > { %v2235_v60 = vadd.f32 %v2187_v0, %v2083_v36 }
 0x2d8   : > { %v1744_v16 = vpop.f32.mrf.mxu1 }
 0x2d9   : > { %2267 = vst [vmem:[%s4027_s20 + $0xc0] sm:$0xff] %v2235_v60  ;;  %v2298_v5 = vadd.f32 %v2297_v15, %v2235_v60  ;;  %v2337_v24 = vmul.f32 %v2235_v60, %v2235_v60  ;;  %v1786_v63 = vadd.f32 %v1744_v16, %v3992_v12 }
 0x2da   : > { %v1883_v1 = vpop.f32.mrf.mxu2 }
 0x2db   : > { %v2368_v26 = vadd.f32 %v2367_v25, %v2337_v24  ;;  %v1929_v18 = vadd.f32 %v1883_v1, %v1784_v38 }
 0x2dc   : > { %v2038_v29 = vpop.f32.mrf.mxu3 }
 0x2dd   : > { %v2084_v54 = vadd.f32 %v2038_v29, %v1929_v18 }
 0x2de   : > { %v2196_v9 = vpop.f32.mrf.mxu0 }
 0x2df   : > { %v2236_v13 = vadd.f32 %v2190_v43, %v2084_v54 }
 0x2e0   : > { %v1747_v31 = vpop.f32.mrf.mxu1 }
 0x2e1   : > { %2268 = vst [vmem:[%s4027_s20 + $0xc8] sm:$0xff] %v2236_v13  ;;  %v2299_v19 = vadd.f32 %v2298_v5, %v2236_v13  ;;  %v2338_v23 = vmul.f32 %v2236_v13, %v2236_v13  ;;  %v1787_v11 = vadd.f32 %v1747_v31, %v3998_v49 }
 0x2e2   : > { %v1886_v61 = vpop.f32.mrf.mxu2 }
 0x2e3   : > { %v2369_v45 = vadd.f32 %v2368_v26, %v2338_v23  ;;  %v1930_v14 = vadd.f32 %v1886_v61, %v1785_v51 }
 0x2e4   : > { %v2041_v17 = vpop.f32.mrf.mxu3 }
 0x2e5   : > { %v2085_v57 = vadd.f32 %v2041_v17, %v1930_v14 }
 0x2e6   : > { %v2199_v42 = vpop.f32.mrf.mxu0 }
 0x2e7   : > { %v2237_v22 = vadd.f32 %v2193_v32, %v2085_v57 }
 0x2e8   : > { %v1750_v0 = vpop.f32.mrf.mxu1 }
 0x2e9   : > { %2269 = vst [vmem:[%s4027_s20 + $0xd0] sm:$0xff] %v2237_v22  ;;  %v2300_v59 = vadd.f32 %v2299_v19, %v2237_v22  ;;  %v2339_v2 = vmul.f32 %v2237_v22, %v2237_v22  ;;  %v1788_v4 = vadd.f32 %v1750_v0, %v4004_v53 }
 0x2ea   : > { %v1889_v30 = vpop.f32.mrf.mxu2 }
 0x2eb   : > { %v2370_v50 = vadd.f32 %v2369_v45, %v2339_v2  ;;  %v1931_v62 = vadd.f32 %v1889_v30, %v1786_v63 }
 0x2ec   : > { %v2044_v44 = vpop.f32.mrf.mxu3 }
 0x2ed   : > { %v2086_v39 = vadd.f32 %v2044_v44, %v1931_v62 }
 0x2ee   : > { %v2202_v47 = vpop.f32.mrf.mxu0 }
 0x2ef   : > { %v2238_v7 = vadd.f32 %v2196_v9, %v2086_v39 }
 0x2f0   : > { %v1753_v48 = vpop.f32.mrf.mxu1 }
 0x2f1   : > { %2270 = vst [vmem:[%s4027_s20 + $0xd8] sm:$0xff] %v2238_v7  ;;  %v2301_v40 = vadd.f32 %v2300_v59, %v2238_v7  ;;  %v2340_v52 = vmul.f32 %v2238_v7, %v2238_v7  ;;  %v1789_v8 = vadd.f32 %v1753_v48, %v4010_v58 }
 0x2f2   : > { %v1892_v27 = vpop.f32.mrf.mxu2 }
 0x2f3   : > { %v2371_v56 = vadd.f32 %v2370_v50, %v2340_v52  ;;  %v1932_v12 = vadd.f32 %v1892_v27, %v1787_v11 }
 0x2f4   : > { %v2047_v10 = vpop.f32.mrf.mxu3 }
 0x2f5   : > { %v2087_v34 = vadd.f32 %v2047_v10, %v1932_v12 }
 0x2f6   : > { %v2205_v41 = vpop.f32.mrf.mxu0 }
 0x2f7   : > { %v2239_v20 = vadd.f32 %v2199_v42, %v2087_v34 }
 0x2f8   : > { %v1756_v38 = vpop.f32.mrf.mxu1 }
 0x2f9   : > { %2271 = vst [vmem:[%s4027_s20 + $0xe0] sm:$0xff] %v2239_v20  ;;  %v2302_v35 = vadd.f32 %v2301_v40, %v2239_v20  ;;  %v2341_v21 = vmul.f32 %v2239_v20, %v2239_v20  ;;  %v1790_v24 = vadd.f32 %v1756_v38, %v4016_v6 }
 0x2fa   : > { %v1895_v55 = vpop.f32.mrf.mxu2 }
 0x2fb   : > { %v2372_v46 = vadd.f32 %v2371_v56, %v2341_v21  ;;  %v1933_v49 = vadd.f32 %v1895_v55, %v1788_v4 }
 0x2fc   : > { %v2050_v43 = vpop.f32.mrf.mxu3 }
 0x2fd   : > { %v2088_v33 = vadd.f32 %v2050_v43, %v1933_v49 }
 0x2fe   : > { %v2208_v54 = vpop.f32.mrf.mxu0 }
 0x2ff   : > { %v2240_v15 = vadd.f32 %v2202_v47, %v2088_v33 }
 0x301   : > { %2272 = vst [vmem:[%s4027_s20 + $0xe8] sm:$0xff] %v2240_v15  ;;  %v2303_v28 = vadd.f32 %v2302_v35, %v2240_v15  ;;  %v2342_v25 = vmul.f32 %v2240_v15, %v2240_v15 }
 0x302   : > { %v1898_v3 = vpop.f32.mrf.mxu2 }
 0x303   : > { %v2373_v37 = vadd.f32 %v2372_v46, %v2342_v25  ;;  %v1934_v53 = vadd.f32 %v1898_v3, %v1789_v8 }
 0x304   : > { %v2053_v36 = vpop.f32.mrf.mxu3 }
 0x305   : > { %v2089_v60 = vadd.f32 %v2053_v36, %v1934_v53 }
 0x307   : > { %v2241_v5 = vadd.f32 %v2205_v41, %v2089_v60 }
 0x309   : > { %2273 = vst [vmem:[%s4027_s20 + $0xf0] sm:$0xff] %v2241_v5  ;;  %v2304_v1 = vadd.f32 %v2303_v28, %v2241_v5  ;;  %v2343_v32 = vmul.f32 %v2241_v5, %v2241_v5 }
 0x30a   : > { %v1901_v26 = vpop.f32.mrf.mxu2 }
 0x30b   : > { %v2374_v58 = vadd.f32 %v2373_v37, %v2343_v32  ;;  %v1935_v18 = vadd.f32 %v1901_v26, %v1790_v24 }
 0x30c   : > { %v2056_v29 = vpop.f32.mrf.mxu3 }
 0x30d   : > { %v2090_v16 = vadd.f32 %v2056_v29, %v1935_v18 }
 0x30f   : > { %v2242_v13 = vadd.f32 %v2208_v54, %v2090_v16 }
 0x311   : > { %2274 = vst [vmem:[%s4027_s20 + $0xf8] sm:$0xff] %v2242_v13  ;;  %v2305_v51 = vadd.f32 %v2304_v1, %v2242_v13  ;;  %v2344_v19 = vmul.f32 %v2242_v13, %v2242_v13 }
 0x313   : > { %v2306_v23 = vrot.slane %v2305_v51, 4  ;;  %v2375_v61 = vadd.f32 %v2374_v58, %v2344_v19 }
 0x315   : > { %v2307_v45 = vadd.f32 %v2306_v23, %v2305_v51  ;;  %v2376_v14 = vrot.slane %v2375_v61, 4 }
 0x317   : > { %v2308_v17 = vrot.slane %v2307_v45, 2  ;;  %v2377_v6 = vadd.f32 %v2376_v14, %v2375_v61 }
 0x319   : > { %v2309_v9 = vadd.f32 %v2308_v17, %v2307_v45  ;;  %v2378_v57 = vrot.slane %v2377_v6, 2 }
 0x31b   : > { %v2310_v22 = vrot.slane %v2309_v9, 1  ;;  %v2379_v31 = vadd.f32 %v2378_v57, %v2377_v6 }
 0x31d   : > { %v2311_v63 = vadd.f32 %v2310_v22, %v2309_v9  ;;  %v2380_v59 = vrot.slane %v2379_v31, 1 }
 0x31f   : > { %2312 = vst [vmem:[%s268_s25] sm:$0xff] %v2311_v63  ;;  %v2381_v2 = vadd.f32 %v2380_v59, %v2379_v31 }
 0x321   : > { %2382 = vst [vmem:[%s272_s28] sm:$0xff] %v2381_v2 }
 0x322 PF: > { %s17_s21 = sadd.s32 1, %s2616_s21  }
 0x323   : > { %p14_p4 = scmp.ge.s32.totalorder %s17_s21, 4  }
 0x325   :  { %16 = sbr.rel (!%p14_p4) target bundleno = 1 (0x1), region = 91 }

</bundles_post_ra>
